<compile_context>
chip_gen: v6e
topology: v6e:2x2x1
jax: 0.10.0
libtpu: 0.0.40
codegen_flags: <defaults>
</compile_context>

<pallas_src>
import math

import numpy as np
import jax
import jax.numpy as jnp
from jax.experimental import pallas as pl
from jax.experimental.pallas import tpu as pltpu

# ----------------------------- configuration -------------------------------
N_SPACE = 3
HIDDEN_DIM = 128
TIME_DIM = 64
NUM_FREQS = 16
DIS_DIM = NUM_FREQS * 2 * N_SPACE          # SinusoidsEmbedding.dim = 96
NUM_LAYERS = 2
DIM_ATOMIC_REP = 16
DIM_L = N_SPACE * N_SPACE                  # non_symmetric -> n_space ** 2

NUM_ATOMS = (3, 5)                         # atoms per graph (static)
B = len(NUM_ATOMS)
MAX_ATOMS = max(NUM_ATOMS)
S = B * MAX_ATOMS                          # slot count (graph-major, MAX_ATOMS each)
N_EDGES = sum(n * n for n in NUM_ATOMS)    # fc graph with self edges = 34
E_PAD = ((N_EDGES + 7) // 8) * 8           # 40

A_FLAT = MAX_ATOMS * DIM_ATOMIC_REP        # 80
F_FLAT = MAX_ATOMS * N_SPACE               # 15
LAT_OFF = A_FLAT + F_FLAT                  # 95
D_FLAT = LAT_OFF + DIM_L                   # 104

EDGE_IN_DIM = 2 * HIDDEN_DIM + DIM_L + DIS_DIM   # 361 (original edge-MLP fan-in)

# ---------------- bf16 weight/operator slab layout ([RA, 256]) ----------------
R_AT = 0                                   # 16 rows : at_w (cols 0:128)
LAYER_ROWS = 4 * HIDDEN_DIM                # 512 rows per layer
R_LAYER0 = 16                              # per layer: [Whi|Whj], [w_ex|ew2], [nw1h|nw1a], [nw2|0]
R_HEAD = R_LAYER0 + NUM_LAYERS * LAYER_ROWS      # 128 rows : [head_w | lattice_w]
R_G0 = R_HEAD + HIDDEN_DIM                 # 40 rows : edge-source one-hot (cols 0:S)
R_G1 = R_G0 + E_PAD                        # 40 rows : edge-target one-hot
R_AGG = R_G1 + E_PAD                       # S  rows : scatter-add to source slot (cols 0:E_PAD)
R_POOL = R_AGG + S                         # B  rows : graph sum-pool one-hot (cols 0:S)
RA = R_POOL + B

# ---------------- f32 misc slab layout ([RB, 128]) ----------------
R_TIMEW, R_HEADB, R_FLNG, R_FLNB, R_PHASE = 0, 1, 2, 3, 4
R_F2 = 5                                   # 3 rows : block-diag sinusoid freqs (sin 0:48, cos 48:96)
R_LBIAS = R_F2 + N_SPACE                   # per layer 6 rows: ln_g, ln_b, eb1, eb2, nb1, nb2
R_GD = R_LBIAS + 6 * NUM_LAYERS            # 40 rows : g1 - g0 (f32, keeps frac precision)
R_E2G = R_GD + E_PAD                       # 40 rows : edge -> graph one-hot
R_N2G = R_E2G + E_PAD                      # S rows  : slot -> graph one-hot
R_IDEG = R_N2G + S                         # S rows  : 1/deg (col 0)
R_ICNT = R_IDEG + S                        # B rows  : 1/num_atoms (col 0)
RB = R_ICNT + B


# ------------------------- single fused Pallas kernel ------------------------
def _fused_cspnet_kernel(x_ref, t_ref, wb_ref, ms_ref, out_ref,
                         node_scr, lm_scr, m6_scr, eg_scr, hn_scr, lo_scr):
    f32 = jnp.float32
    bf16 = jnp.bfloat16

    def dot32(a, b):
        return jnp.dot(a, b, preferred_element_type=f32)

    def dotb(a, b):
        return jnp.dot(a.astype(bf16), b, preferred_element_type=f32)

    def silu(v):
        return v * jax.nn.sigmoid(v)

    def layer_norm(v, g, b):
        mu = jnp.mean(v, axis=-1, keepdims=True)
        vc = v - mu
        var = jnp.mean(vc * vc, axis=-1, keepdims=True)
        return vc * jax.lax.rsqrt(var + 1e-5) * g + b

    def mrow(r):
        return ms_ref[r:r + 1, :]

    # ---- stage x into slot-major layout (atom types | frac) and per-graph lattice rows
    for b in range(B):
        for i in range(MAX_ATOMS):
            s = b * MAX_ATOMS + i
            node_scr[s:s + 1, 0:DIM_ATOMIC_REP] = x_ref[b:b + 1, 16 * i:16 * i + 16]
            node_scr[s:s + 1, 16:19] = x_ref[b:b + 1, A_FLAT + 3 * i:A_FLAT + 3 * i + 3]
        for r in range(N_SPACE):
            lm_scr[3 * b + r:3 * b + r + 1, :] = x_ref[b:b + 1, LAT_OFF + 3 * r:LAT_OFF + 3 * r + 3]

    atoms = node_scr[:, 0:DIM_ATOMIC_REP]      # [S, 16]
    frac = node_scr[:, 16:19]                  # [S, 3]
    lm = lm_scr[...]                           # [3B, 3]  (row 3b+i = L[b, i, :])

    # ---- per-graph L @ L^T (non_symmetric rep), placed at lanes 96:105 of eg_scr
    m6_scr[...] = jax.lax.dot_general(
        lm, lm, (((1,), (1,)), ((), ())), preferred_element_type=f32)   # [3B, 3B]
    eg_scr[...] = jnp.zeros((B, HIDDEN_DIM), f32)
    for b in range(B):
        for i in range(N_SPACE):
            eg_scr[b:b + 1, 96 + 3 * i:99 + 3 * i] = m6_scr[3 * b + i:3 * b + i + 1, 3 * b:3 * b + 3]

    # ---- per-edge geometric features (computed once, f32 for precision)
    gdiff = ms_ref[R_GD:R_GD + E_PAD, 0:S]
    fd = dot32(gdiff, frac)                    # frac[dst] - frac[src]
    fd = jnp.mod(fd + 0.5, 1.0) - 0.5          # FlatTorus01.logmap (projx mod is folded away)
    # sinusoid emb: cols 0:48 = sin(emb), 48:96 = sin(emb + pi/2) = cos(emb), 96:128 = 0
    sc = jnp.sin(dot32(fd, ms_ref[R_F2:R_F2 + N_SPACE, :]) + mrow(R_PHASE))
    lat_e = dot32(ms_ref[R_E2G:R_E2G + E_PAD, 0:B], eg_scr[...])        # LL^T at cols 96:105
    # padded edge rows (N_EDGES..E_PAD) carry junk here but are zero columns of agg0.
    extra_e = (sc + lat_e).astype(bf16)        # [E_PAD, 128]

    # ---- node embedding (node_embedding + time_emb folded into atom_latent_emb; all bias-free)
    t_slot = dot32(ms_ref[R_N2G:R_N2G + S, 0:B], t_ref[...])            # [S, 1]
    nf = dotb(atoms, wb_ref[R_AT:R_AT + DIM_ATOMIC_REP, 0:HIDDEN_DIM]) + t_slot * mrow(R_TIMEW)

    g0s = wb_ref[R_G0:R_G0 + E_PAD, 0:S]
    g1s = wb_ref[R_G1:R_G1 + E_PAD, 0:S]
    agg0 = wb_ref[R_AGG:R_AGG + S, 0:E_PAD]
    inv_deg = ms_ref[R_IDEG:R_IDEG + S, 0:1]

    for l in range(NUM_LAYERS):                # static unroll (2 layers)
        base = R_LAYER0 + l * LAYER_ROWS
        rb = R_LBIAS + 6 * l
        h = layer_norm(nf, mrow(rb), mrow(rb + 1))
        hb = h.astype(bf16)

        # edge MLP layer 1: split-K, [hi|hj|LL^T|sin|cos] never materialized.
        hw = jnp.dot(hb, wb_ref[base:base + HIDDEN_DIM, :], preferred_element_type=f32)  # [S,256]
        e = (jnp.dot(g0s, hw[:, 0:HIDDEN_DIM].astype(bf16), preferred_element_type=f32)
             + jnp.dot(g1s, hw[:, HIDDEN_DIM:2 * HIDDEN_DIM].astype(bf16),
                       preferred_element_type=f32)
             + dotb(extra_e, wb_ref[base + HIDDEN_DIM:base + 2 * HIDDEN_DIM, 0:HIDDEN_DIM])
             + mrow(rb + 2))
        e = silu(e)
        e = silu(dotb(e, wb_ref[base + HIDDEN_DIM:base + 2 * HIDDEN_DIM, HIDDEN_DIM:])
                 + mrow(rb + 3))

        # scatter(reduce='mean') to edge source slot; 1/deg applied in f32 after accumulate.
        agg = jnp.dot(agg0, e.astype(bf16), preferred_element_type=f32) * inv_deg

        # node MLP (split-K, no [h | agg] concat)
        n = silu(dotb(hb, wb_ref[base + 2 * HIDDEN_DIM:base + 3 * HIDDEN_DIM, 0:HIDDEN_DIM])
                 + dotb(agg, wb_ref[base + 2 * HIDDEN_DIM:base + 3 * HIDDEN_DIM, HIDDEN_DIM:])
                 + mrow(rb + 4))
        n = silu(dotb(n, wb_ref[base + 3 * HIDDEN_DIM:base + 4 * HIDDEN_DIM, 0:HIDDEN_DIM])
                 + mrow(rb + 5))
        nf = nf + n                            # residual

    hf = layer_norm(nf, mrow(R_FLNG), mrow(R_FLNB))
    hfb = hf.astype(bf16)

    # fused per-node heads (cols 0:3 = coord_out, 3:19 = type_out), staged for scatter
    hn_scr[...] = (jnp.dot(hfb, wb_ref[R_HEAD:R_HEAD + HIDDEN_DIM, 0:HIDDEN_DIM],
                           preferred_element_type=f32) + mrow(R_HEADB))

    # graph mean-pool (1/num_atoms in f32) + lattice head
    gf = (jnp.dot(wb_ref[R_POOL:R_POOL + B, 0:S], hfb, preferred_element_type=f32)
          * ms_ref[R_ICNT:R_ICNT + B, 0:1])
    lo_scr[...] = dotb(gf, wb_ref[R_HEAD:R_HEAD + HIDDEN_DIM, HIDDEN_DIM:])     # [B,128], 0:9 valid

    # lattice_out = (gf @ lattice_w).view(3,3) @ L : one block-diagonal [6,6]@[6,3] matmul
    m6_scr[...] = jnp.zeros((3 * B, 3 * B), f32)
    for b in range(B):
        for i in range(N_SPACE):
            m6_scr[3 * b + i:3 * b + i + 1, 3 * b:3 * b + 3] = lo_scr[b:b + 1, 3 * i:3 * i + 3]
    lat_out = jnp.dot(m6_scr[...], lm, preferred_element_type=f32)              # row 3b+i = out[b,i,:]
    lm_scr[...] = lat_out

    # ---- assemble the flat output rep directly (zeros at padded atom slots) ----
    out_ref[...] = jnp.zeros((B, D_FLAT), f32)
    for b in range(B):
        for i in range(NUM_ATOMS[b]):
            s = b * MAX_ATOMS + i
            out_ref[b:b + 1, 16 * i:16 * i + 16] = hn_scr[s:s + 1, 3:19]                      # types
            out_ref[b:b + 1, A_FLAT + 3 * i:A_FLAT + 3 * i + 3] = hn_scr[s:s + 1, 0:3]        # coords
        for i in range(N_SPACE):
            out_ref[b:b + 1, LAT_OFF + 3 * i:LAT_OFF + 3 * i + 3] = lm_scr[3 * b + i:3 * b + i + 1, :]


def projected_conjugated_forward(wb, ms, t, x):
    """Full ProjectedConjugatedCSPNet forward: x, t -> v, in one pallas_call."""
    return pl.pallas_call(
        _fused_cspnet_kernel,
        out_shape=jax.ShapeDtypeStruct((B, D_FLAT), jnp.float32),
        scratch_shapes=[
            pltpu.VMEM((S, 32), jnp.float32),        # slot staging: atoms 0:16 | frac 16:19
            pltpu.VMEM((3 * B, 3), jnp.float32),     # lattice rows / lattice_out rows
            pltpu.VMEM((3 * B, 3 * B), jnp.float32), # LL^T / block-diag lattice-out staging
            pltpu.VMEM((B, HIDDEN_DIM), jnp.float32),# per-graph LL^T rhs (lanes 96:105)
            pltpu.VMEM((S, HIDDEN_DIM), jnp.float32),# head staging
            pltpu.VMEM((B, HIDDEN_DIM), jnp.float32),# lattice head staging
        ],
        # ~1.2 MiB resident (weights+operators+activations); well under every chip's VMEM.
        compiler_params=pltpu.CompilerParams(vmem_limit_bytes=16 * 1024 * 1024),
        cost_estimate=pl.CostEstimate(
            flops=9_700_000, transcendentals=32_000, bytes_accessed=720_000),
    )(x, t, wb, ms)


# ----------------------------- parameters ----------------------------------
def _w_init(key, fan_in, fan_out):
    bound = 1.0 / math.sqrt(fan_in)
    return jax.random.uniform(key, (fan_in, fan_out), jnp.float32, -bound, bound)


def _b_init(key, fan_in, n):
    bound = 1.0 / math.sqrt(fan_in)
    return jax.random.uniform(key, (n,), jnp.float32, -bound, bound)


def init_params(key):
    keys = iter(jax.random.split(key, 64))
    p = {}
    p["time_w"] = _w_init(next(keys), 1, TIME_DIM)                      # time_emb (bias=False)
    p["node_emb_w"] = _w_init(next(keys), DIM_ATOMIC_REP, HIDDEN_DIM)   # node_embedding (bias=False)
    p["atom_latent_w"] = _w_init(next(keys), HIDDEN_DIM + TIME_DIM, HIDDEN_DIM)  # bias=False
    layers = []
    for _ in range(NUM_LAYERS):
        layers.append({
            "edge_w1": _w_init(next(keys), EDGE_IN_DIM, HIDDEN_DIM),
            "edge_b1": _b_init(next(keys), EDGE_IN_DIM, HIDDEN_DIM),
            "edge_w2": _w_init(next(keys), HIDDEN_DIM, HIDDEN_DIM),
            "edge_b2": _b_init(next(keys), HIDDEN_DIM, HIDDEN_DIM),
            "node_w1": _w_init(next(keys), 2 * HIDDEN_DIM, HIDDEN_DIM),
            "node_b1": _b_init(next(keys), 2 * HIDDEN_DIM, HIDDEN_DIM),
            "node_w2": _w_init(next(keys), HIDDEN_DIM, HIDDEN_DIM),
            "node_b2": _b_init(next(keys), HIDDEN_DIM, HIDDEN_DIM),
            "ln_g": jnp.ones((HIDDEN_DIM,), jnp.float32),
            "ln_b": jnp.zeros((HIDDEN_DIM,), jnp.float32),
        })
    p["layers"] = layers
    p["final_ln_g"] = jnp.ones((HIDDEN_DIM,), jnp.float32)
    p["final_ln_b"] = jnp.zeros((HIDDEN_DIM,), jnp.float32)
    p["coord_w"] = _w_init(next(keys), HIDDEN_DIM, N_SPACE)             # coord_out (bias=False)
    p["lattice_w"] = _w_init(next(keys), HIDDEN_DIM, DIM_L)             # lattice_out (bias=False)
    p["type_w"] = _w_init(next(keys), HIDDEN_DIM, DIM_ATOMIC_REP)
    p["type_b"] = _b_init(next(keys), HIDDEN_DIM, DIM_ATOMIC_REP)
    return p


# ------------------------- static graph / operators --------------------------
def build_static():
    """Fully-connected graph with self edges (edge_style='fc'), slot-indexed, one-hot operators."""
    # TODO(synk): edge_style='knn' (radius_graph_pbc + reorder_symmetric_edges) not translated.
    src, dst, eg = [], [], []
    for b, n in enumerate(NUM_ATOMS):
        for i in range(n):
            for j in range(n):
                src.append(b * MAX_ATOMS + i)
                dst.append(b * MAX_ATOMS + j)
                eg.append(b)
    E = len(src)
    src = np.asarray(src); dst = np.asarray(dst); eg = np.asarray(eg)

    g0 = np.zeros((E_PAD, S), np.float32); g0[np.arange(E), src] = 1.0
    g1 = np.zeros((E_PAD, S), np.float32); g1[np.arange(E), dst] = 1.0
    e2g = np.zeros((E_PAD, B), np.float32); e2g[np.arange(E), eg] = 1.0
    agg0 = np.zeros((S, E_PAD), np.float32); agg0[src, np.arange(E)] = 1.0
    deg = agg0.sum(axis=1)
    inv_deg = np.zeros((S,), np.float32)
    inv_deg[deg > 0] = 1.0 / deg[deg > 0]
    pool0 = np.zeros((B, S), np.float32)
    n2g = np.zeros((S, B), np.float32)
    for b, n in enumerate(NUM_ATOMS):
        for i in range(MAX_ATOMS):
            s = b * MAX_ATOMS + i
            n2g[s, b] = 1.0
            if i < n:
                pool0[b, s] = 1.0
    inv_cnt = 1.0 / np.asarray(NUM_ATOMS, np.float32)
    return dict(g0=g0, g1=g1, e2g=e2g, agg0=agg0, inv_deg=inv_deg,
                pool0=pool0, n2g=n2g, inv_cnt=inv_cnt)


def pack_params(p, st):
    """Fold/pack the nn.Module weights + static operators into the two kernel slabs."""
    wb = np.zeros((RA, 256), np.float32)
    ms = np.zeros((RB, HIDDEN_DIM), np.float32)

    W = np.asarray(p["atom_latent_w"])
    # fold node_embedding / time_emb into atom_latent_emb (all three are bias-free Linears)
    wb[R_AT:R_AT + DIM_ATOMIC_REP, 0:HIDDEN_DIM] = np.asarray(p["node_emb_w"]) @ W[:HIDDEN_DIM]
    ms[R_TIMEW, :] = (np.asarray(p["time_w"]) @ W[HIDDEN_DIM:]).reshape(-1)

    for l, lp in enumerate(p["layers"]):
        base = R_LAYER0 + l * LAYER_ROWS
        ew1 = np.asarray(lp["edge_w1"])                  # rows: hi | hj | lat(9) | sin+cos(96)
        wb[base:base + 128, 0:128] = ew1[0:128]
        wb[base:base + 128, 128:256] = ew1[128:256]
        wb[base + 128:base + 128 + 96, 0:128] = ew1[265:361]       # sin|cos rows -> extra 0:96
        wb[base + 224:base + 233, 0:128] = ew1[256:265]            # lattice rows -> extra 96:105
        wb[base + 128:base + 256, 128:256] = np.asarray(lp["edge_w2"])
        nw1 = np.asarray(lp["node_w1"])
        wb[base + 256:base + 384, 0:128] = nw1[0:128]
        wb[base + 256:base + 384, 128:256] = nw1[128:256]
        wb[base + 384:base + 512, 0:128] = np.asarray(lp["node_w2"])
        r = R_LBIAS + 6 * l
        ms[r + 0, :] = np.asarray(lp["ln_g"]); ms[r + 1, :] = np.asarray(lp["ln_b"])
        ms[r + 2, :] = np.asarray(lp["edge_b1"]); ms[r + 3, :] = np.asarray(lp["edge_b2"])
        ms[r + 4, :] = np.asarray(lp["node_b1"]); ms[r + 5, :] = np.asarray(lp["node_b2"])

    # fused heads: [head_w | lattice_w]; bf16(0) == 0 exactly so padding stays clean
    wb[R_HEAD:R_HEAD + 128, 0:N_SPACE] = np.asarray(p["coord_w"])
    wb[R_HEAD:R_HEAD + 128, N_SPACE:N_SPACE + DIM_ATOMIC_REP] = np.asarray(p["type_w"])
    wb[R_HEAD:R_HEAD + 128, 128:128 + DIM_L] = np.asarray(p["lattice_w"])
    ms[R_HEADB, N_SPACE:N_SPACE + DIM_ATOMIC_REP] = np.asarray(p["type_b"])
    ms[R_FLNG, :] = np.asarray(p["final_ln_g"]); ms[R_FLNB, :] = np.asarray(p["final_ln_b"])

    # sinusoid freqs (block diag) + cos phase
    freqs = 2.0 * np.pi * np.arange(NUM_FREQS, dtype=np.float32)
    for j in range(N_SPACE):
        ms[R_F2 + j, NUM_FREQS * j:NUM_FREQS * (j + 1)] = freqs
        ms[R_F2 + j, 48 + NUM_FREQS * j:48 + NUM_FREQS * (j + 1)] = freqs
    ms[R_PHASE, 48:96] = np.pi / 2.0

    # graph operators (one-hot, exact in bf16; 1/deg & 1/count kept f32 and applied in-kernel)
    wb[R_G0:R_G0 + E_PAD, 0:S] = st["g0"]
    wb[R_G1:R_G1 + E_PAD, 0:S] = st["g1"]
    wb[R_AGG:R_AGG + S, 0:E_PAD] = st["agg0"]
    wb[R_POOL:R_POOL + B, 0:S] = st["pool0"]
    ms[R_GD:R_GD + E_PAD, 0:S] = st["g1"] - st["g0"]
    ms[R_E2G:R_E2G + E_PAD, 0:B] = st["e2g"]
    ms[R_N2G:R_N2G + S, 0:B] = st["n2g"]
    ms[R_IDEG:R_IDEG + S, 0] = st["inv_deg"]
    ms[R_ICNT:R_ICNT + B, 0] = st["inv_cnt"]

    return jnp.asarray(wb, dtype=jnp.bfloat16), jnp.asarray(ms, dtype=jnp.float32)


# --------------------------------- main --------------------------------------
if __name__ == "__main__":
    # TODO(synk): simplex / analog-bits atom-type manifolds of ManifoldGetter not translated;
    # the flat rep uses a fixed MAX_ATOMS-padded layout (zeros at unused atom slots).
    key = jax.random.PRNGKey(0)
    kx, kt, kp = jax.random.split(key, 3)
    x = jax.random.normal(kx, (B, D_FLAT), jnp.float32)
    t = jax.random.uniform(kt, (B, 1), jnp.float32)

    params = init_params(kp)
    statics = build_static()
    wb, ms = pack_params(params, statics)      # fold/pack once, outside the traced forward

    fwd = jax.jit(projected_conjugated_forward)
    v = fwd(wb, ms, t, x)
    jax.block_until_ready(v)
    assert v.shape == (B, D_FLAT) and v.dtype == jnp.float32
    assert bool(jnp.all(jnp.isfinite(v)))
    print("KERNEL_OK")
</pallas_src>

<mosaic_0001>
module attributes {stable_mosaic.version = 11 : i64} {
  func.func @_fused_cspnet_kernel(%arg0: memref<2x104xf32, #tpu.memory_space<vmem>>, %arg1: memref<2x1xf32, #tpu.memory_space<vmem>>, %arg2: memref<1260x256xbf16, #tpu.memory_space<vmem>>, %arg3: memref<122x128xf32, #tpu.memory_space<vmem>>, %arg4: memref<2x104xf32, #tpu.memory_space<vmem>>, %arg5: memref<10x32xf32, #tpu.memory_space<vmem>>, %arg6: memref<6x3xf32, #tpu.memory_space<vmem>>, %arg7: memref<6x6xf32, #tpu.memory_space<vmem>>, %arg8: memref<2x128xf32, #tpu.memory_space<vmem>>, %arg9: memref<10x128xf32, #tpu.memory_space<vmem>>, %arg10: memref<2x128xf32, #tpu.memory_space<vmem>>) attributes {dimension_semantics = [], scalar_prefetch = 0 : i64, scratch_operands = 6 : i64, tpu.core_type = #tpu.core_type<tc>} {
    %c0 = arith.constant 0 : index
    %c0_0 = arith.constant 0 : index
    %0 = vector.load %arg0[%c0, %c0_0] : memref<2x104xf32, #tpu.memory_space<vmem>>, vector<1x16xf32>
    %c0_1 = arith.constant 0 : index
    %c0_2 = arith.constant 0 : index
    %1 = vector.load %arg5[%c0_1, %c0_2] : memref<10x32xf32, #tpu.memory_space<vmem>>, vector<1x16xf32>
    tpu.vector_store %arg5[%c0_1, %c0_2], %0 {strides = array<i32>} : memref<10x32xf32, #tpu.memory_space<vmem>>, vector<1x16xf32>,
    %c0_3 = arith.constant 0 : index
    %c80 = arith.constant 80 : index
    %2 = vector.load %arg0[%c0_3, %c80] : memref<2x104xf32, #tpu.memory_space<vmem>>, vector<1x3xf32>
    %c0_4 = arith.constant 0 : index
    %c16 = arith.constant 16 : index
    %3 = vector.load %arg5[%c0_4, %c16] : memref<10x32xf32, #tpu.memory_space<vmem>>, vector<1x3xf32>
    tpu.vector_store %arg5[%c0_4, %c16], %2 {strides = array<i32>} : memref<10x32xf32, #tpu.memory_space<vmem>>, vector<1x3xf32>,
    %c0_5 = arith.constant 0 : index
    %c16_6 = arith.constant 16 : index
    %4 = vector.load %arg0[%c0_5, %c16_6] : memref<2x104xf32, #tpu.memory_space<vmem>>, vector<1x16xf32>
    %c1 = arith.constant 1 : index
    %c0_7 = arith.constant 0 : index
    %5 = vector.load %arg5[%c1, %c0_7] : memref<10x32xf32, #tpu.memory_space<vmem>>, vector<1x16xf32>
    tpu.vector_store %arg5[%c1, %c0_7], %4 {strides = array<i32>} : memref<10x32xf32, #tpu.memory_space<vmem>>, vector<1x16xf32>,
    %c0_8 = arith.constant 0 : index
    %c83 = arith.constant 83 : index
    %6 = vector.load %arg0[%c0_8, %c83] : memref<2x104xf32, #tpu.memory_space<vmem>>, vector<1x3xf32>
    %c1_9 = arith.constant 1 : index
    %c16_10 = arith.constant 16 : index
    %7 = vector.load %arg5[%c1_9, %c16_10] : memref<10x32xf32, #tpu.memory_space<vmem>>, vector<1x3xf32>
    tpu.vector_store %arg5[%c1_9, %c16_10], %6 {strides = array<i32>} : memref<10x32xf32, #tpu.memory_space<vmem>>, vector<1x3xf32>,
    %c0_11 = arith.constant 0 : index
    %c32 = arith.constant 32 : index
    %8 = vector.load %arg0[%c0_11, %c32] : memref<2x104xf32, #tpu.memory_space<vmem>>, vector<1x16xf32>
    %c2 = arith.constant 2 : index
    %c0_12 = arith.constant 0 : index
    %9 = vector.load %arg5[%c2, %c0_12] : memref<10x32xf32, #tpu.memory_space<vmem>>, vector<1x16xf32>
    tpu.vector_store %arg5[%c2, %c0_12], %8 {strides = array<i32>} : memref<10x32xf32, #tpu.memory_space<vmem>>, vector<1x16xf32>,
    %c0_13 = arith.constant 0 : index
    %c86 = arith.constant 86 : index
    %10 = vector.load %arg0[%c0_13, %c86] : memref<2x104xf32, #tpu.memory_space<vmem>>, vector<1x3xf32>
    %c2_14 = arith.constant 2 : index
    %c16_15 = arith.constant 16 : index
    %11 = vector.load %arg5[%c2_14, %c16_15] : memref<10x32xf32, #tpu.memory_space<vmem>>, vector<1x3xf32>
    tpu.vector_store %arg5[%c2_14, %c16_15], %10 {strides = array<i32>} : memref<10x32xf32, #tpu.memory_space<vmem>>, vector<1x3xf32>,
    %c0_16 = arith.constant 0 : index
    %c48 = arith.constant 48 : index
    %12 = vector.load %arg0[%c0_16, %c48] : memref<2x104xf32, #tpu.memory_space<vmem>>, vector<1x16xf32>
    %c3 = arith.constant 3 : index
    %c0_17 = arith.constant 0 : index
    %13 = vector.load %arg5[%c3, %c0_17] : memref<10x32xf32, #tpu.memory_space<vmem>>, vector<1x16xf32>
    tpu.vector_store %arg5[%c3, %c0_17], %12 {strides = array<i32>} : memref<10x32xf32, #tpu.memory_space<vmem>>, vector<1x16xf32>,
    %c0_18 = arith.constant 0 : index
    %c89 = arith.constant 89 : index
    %14 = vector.load %arg0[%c0_18, %c89] : memref<2x104xf32, #tpu.memory_space<vmem>>, vector<1x3xf32>
    %c3_19 = arith.constant 3 : index
    %c16_20 = arith.constant 16 : index
    %15 = vector.load %arg5[%c3_19, %c16_20] : memref<10x32xf32, #tpu.memory_space<vmem>>, vector<1x3xf32>
    tpu.vector_store %arg5[%c3_19, %c16_20], %14 {strides = array<i32>} : memref<10x32xf32, #tpu.memory_space<vmem>>, vector<1x3xf32>,
    %c0_21 = arith.constant 0 : index
    %c64 = arith.constant 64 : index
    %16 = vector.load %arg0[%c0_21, %c64] : memref<2x104xf32, #tpu.memory_space<vmem>>, vector<1x16xf32>
    %c4 = arith.constant 4 : index
    %c0_22 = arith.constant 0 : index
    %17 = vector.load %arg5[%c4, %c0_22] : memref<10x32xf32, #tpu.memory_space<vmem>>, vector<1x16xf32>
    tpu.vector_store %arg5[%c4, %c0_22], %16 {strides = array<i32>} : memref<10x32xf32, #tpu.memory_space<vmem>>, vector<1x16xf32>,
    %c0_23 = arith.constant 0 : index
    %c92 = arith.constant 92 : index
    %18 = vector.load %arg0[%c0_23, %c92] : memref<2x104xf32, #tpu.memory_space<vmem>>, vector<1x3xf32>
    %c4_24 = arith.constant 4 : index
    %c16_25 = arith.constant 16 : index
    %19 = vector.load %arg5[%c4_24, %c16_25] : memref<10x32xf32, #tpu.memory_space<vmem>>, vector<1x3xf32>
    tpu.vector_store %arg5[%c4_24, %c16_25], %18 {strides = array<i32>} : memref<10x32xf32, #tpu.memory_space<vmem>>, vector<1x3xf32>,
    %c0_26 = arith.constant 0 : index
    %c95 = arith.constant 95 : index
    %20 = vector.load %arg0[%c0_26, %c95] : memref<2x104xf32, #tpu.memory_space<vmem>>, vector<1x3xf32>
    %c0_27 = arith.constant 0 : index
    %c0_28 = arith.constant 0 : index
    %21 = vector.load %arg6[%c0_27, %c0_28] : memref<6x3xf32, #tpu.memory_space<vmem>>, vector<1x3xf32>
    tpu.vector_store %arg6[%c0_27, %c0_28], %20 {strides = array<i32>} : memref<6x3xf32, #tpu.memory_space<vmem>>, vector<1x3xf32>,
    %c0_29 = arith.constant 0 : index
    %c98 = arith.constant 98 : index
    %22 = vector.load %arg0[%c0_29, %c98] : memref<2x104xf32, #tpu.memory_space<vmem>>, vector<1x3xf32>
    %c1_30 = arith.constant 1 : index
    %c0_31 = arith.constant 0 : index
    %23 = vector.load %arg6[%c1_30, %c0_31] : memref<6x3xf32, #tpu.memory_space<vmem>>, vector<1x3xf32>
    tpu.vector_store %arg6[%c1_30, %c0_31], %22 {strides = array<i32>} : memref<6x3xf32, #tpu.memory_space<vmem>>, vector<1x3xf32>,
    %c0_32 = arith.constant 0 : index
    %c101 = arith.constant 101 : index
    %24 = vector.load %arg0[%c0_32, %c101] : memref<2x104xf32, #tpu.memory_space<vmem>>, vector<1x3xf32>
    %c2_33 = arith.constant 2 : index
    %c0_34 = arith.constant 0 : index
    %25 = vector.load %arg6[%c2_33, %c0_34] : memref<6x3xf32, #tpu.memory_space<vmem>>, vector<1x3xf32>
    tpu.vector_store %arg6[%c2_33, %c0_34], %24 {strides = array<i32>} : memref<6x3xf32, #tpu.memory_space<vmem>>, vector<1x3xf32>,
    %c1_35 = arith.constant 1 : index
    %c0_36 = arith.constant 0 : index
    %26 = vector.load %arg0[%c1_35, %c0_36] : memref<2x104xf32, #tpu.memory_space<vmem>>, vector<1x16xf32>
    %c5 = arith.constant 5 : index
    %c0_37 = arith.constant 0 : index
    %27 = vector.load %arg5[%c5, %c0_37] : memref<10x32xf32, #tpu.memory_space<vmem>>, vector<1x16xf32>
    tpu.vector_store %arg5[%c5, %c0_37], %26 {strides = array<i32>} : memref<10x32xf32, #tpu.memory_space<vmem>>, vector<1x16xf32>,
    %c1_38 = arith.constant 1 : index
    %c80_39 = arith.constant 80 : index
    %28 = vector.load %arg0[%c1_38, %c80_39] : memref<2x104xf32, #tpu.memory_space<vmem>>, vector<1x3xf32>
    %c5_40 = arith.constant 5 : index
    %c16_41 = arith.constant 16 : index
    %29 = vector.load %arg5[%c5_40, %c16_41] : memref<10x32xf32, #tpu.memory_space<vmem>>, vector<1x3xf32>
    tpu.vector_store %arg5[%c5_40, %c16_41], %28 {strides = array<i32>} : memref<10x32xf32, #tpu.memory_space<vmem>>, vector<1x3xf32>,
    %c1_42 = arith.constant 1 : index
    %c16_43 = arith.constant 16 : index
    %30 = vector.load %arg0[%c1_42, %c16_43] : memref<2x104xf32, #tpu.memory_space<vmem>>, vector<1x16xf32>
    %c6 = arith.constant 6 : index
    %c0_44 = arith.constant 0 : index
    %31 = vector.load %arg5[%c6, %c0_44] : memref<10x32xf32, #tpu.memory_space<vmem>>, vector<1x16xf32>
    tpu.vector_store %arg5[%c6, %c0_44], %30 {strides = array<i32>} : memref<10x32xf32, #tpu.memory_space<vmem>>, vector<1x16xf32>,
    %c1_45 = arith.constant 1 : index
    %c83_46 = arith.constant 83 : index
    %32 = vector.load %arg0[%c1_45, %c83_46] : memref<2x104xf32, #tpu.memory_space<vmem>>, vector<1x3xf32>
    %c6_47 = arith.constant 6 : index
    %c16_48 = arith.constant 16 : index
    %33 = vector.load %arg5[%c6_47, %c16_48] : memref<10x32xf32, #tpu.memory_space<vmem>>, vector<1x3xf32>
    tpu.vector_store %arg5[%c6_47, %c16_48], %32 {strides = array<i32>} : memref<10x32xf32, #tpu.memory_space<vmem>>, vector<1x3xf32>,
    %c1_49 = arith.constant 1 : index
    %c32_50 = arith.constant 32 : index
    %34 = vector.load %arg0[%c1_49, %c32_50] : memref<2x104xf32, #tpu.memory_space<vmem>>, vector<1x16xf32>
    %c7 = arith.constant 7 : index
    %c0_51 = arith.constant 0 : index
    %35 = vector.load %arg5[%c7, %c0_51] : memref<10x32xf32, #tpu.memory_space<vmem>>, vector<1x16xf32>
    tpu.vector_store %arg5[%c7, %c0_51], %34 {strides = array<i32>} : memref<10x32xf32, #tpu.memory_space<vmem>>, vector<1x16xf32>,
    %c1_52 = arith.constant 1 : index
    %c86_53 = arith.constant 86 : index
    %36 = vector.load %arg0[%c1_52, %c86_53] : memref<2x104xf32, #tpu.memory_space<vmem>>, vector<1x3xf32>
    %c7_54 = arith.constant 7 : index
    %c16_55 = arith.constant 16 : index
    %37 = vector.load %arg5[%c7_54, %c16_55] : memref<10x32xf32, #tpu.memory_space<vmem>>, vector<1x3xf32>
    tpu.vector_store %arg5[%c7_54, %c16_55], %36 {strides = array<i32>} : memref<10x32xf32, #tpu.memory_space<vmem>>, vector<1x3xf32>,
    %c1_56 = arith.constant 1 : index
    %c48_57 = arith.constant 48 : index
    %38 = vector.load %arg0[%c1_56, %c48_57] : memref<2x104xf32, #tpu.memory_space<vmem>>, vector<1x16xf32>
    %c8 = arith.constant 8 : index
    %c0_58 = arith.constant 0 : index
    %39 = vector.load %arg5[%c8, %c0_58] : memref<10x32xf32, #tpu.memory_space<vmem>>, vector<1x16xf32>
    tpu.vector_store %arg5[%c8, %c0_58], %38 {strides = array<i32>} : memref<10x32xf32, #tpu.memory_space<vmem>>, vector<1x16xf32>,
    %c1_59 = arith.constant 1 : index
    %c89_60 = arith.constant 89 : index
    %40 = vector.load %arg0[%c1_59, %c89_60] : memref<2x104xf32, #tpu.memory_space<vmem>>, vector<1x3xf32>
    %c8_61 = arith.constant 8 : index
    %c16_62 = arith.constant 16 : index
    %41 = vector.load %arg5[%c8_61, %c16_62] : memref<10x32xf32, #tpu.memory_space<vmem>>, vector<1x3xf32>
    tpu.vector_store %arg5[%c8_61, %c16_62], %40 {strides = array<i32>} : memref<10x32xf32, #tpu.memory_space<vmem>>, vector<1x3xf32>,
    %c1_63 = arith.constant 1 : index
    %c64_64 = arith.constant 64 : index
    %42 = vector.load %arg0[%c1_63, %c64_64] : memref<2x104xf32, #tpu.memory_space<vmem>>, vector<1x16xf32>
    %c9 = arith.constant 9 : index
    %c0_65 = arith.constant 0 : index
    %43 = vector.load %arg5[%c9, %c0_65] : memref<10x32xf32, #tpu.memory_space<vmem>>, vector<1x16xf32>
    tpu.vector_store %arg5[%c9, %c0_65], %42 {strides = array<i32>} : memref<10x32xf32, #tpu.memory_space<vmem>>, vector<1x16xf32>,
    %c1_66 = arith.constant 1 : index
    %c92_67 = arith.constant 92 : index
    %44 = vector.load %arg0[%c1_66, %c92_67] : memref<2x104xf32, #tpu.memory_space<vmem>>, vector<1x3xf32>
    %c9_68 = arith.constant 9 : index
    %c16_69 = arith.constant 16 : index
    %45 = vector.load %arg5[%c9_68, %c16_69] : memref<10x32xf32, #tpu.memory_space<vmem>>, vector<1x3xf32>
    tpu.vector_store %arg5[%c9_68, %c16_69], %44 {strides = array<i32>} : memref<10x32xf32, #tpu.memory_space<vmem>>, vector<1x3xf32>,
    %c1_70 = arith.constant 1 : index
    %c95_71 = arith.constant 95 : index
    %46 = vector.load %arg0[%c1_70, %c95_71] : memref<2x104xf32, #tpu.memory_space<vmem>>, vector<1x3xf32>
    %c3_72 = arith.constant 3 : index
    %c0_73 = arith.constant 0 : index
    %47 = vector.load %arg6[%c3_72, %c0_73] : memref<6x3xf32, #tpu.memory_space<vmem>>, vector<1x3xf32>
    tpu.vector_store %arg6[%c3_72, %c0_73], %46 {strides = array<i32>} : memref<6x3xf32, #tpu.memory_space<vmem>>, vector<1x3xf32>,
    %c1_74 = arith.constant 1 : index
    %c98_75 = arith.constant 98 : index
    %48 = vector.load %arg0[%c1_74, %c98_75] : memref<2x104xf32, #tpu.memory_space<vmem>>, vector<1x3xf32>
    %c4_76 = arith.constant 4 : index
    %c0_77 = arith.constant 0 : index
    %49 = vector.load %arg6[%c4_76, %c0_77] : memref<6x3xf32, #tpu.memory_space<vmem>>, vector<1x3xf32>
    tpu.vector_store %arg6[%c4_76, %c0_77], %48 {strides = array<i32>} : memref<6x3xf32, #tpu.memory_space<vmem>>, vector<1x3xf32>,
    %c1_78 = arith.constant 1 : index
    %c101_79 = arith.constant 101 : index
    %50 = vector.load %arg0[%c1_78, %c101_79] : memref<2x104xf32, #tpu.memory_space<vmem>>, vector<1x3xf32>
    %c5_80 = arith.constant 5 : index
    %c0_81 = arith.constant 0 : index
    %51 = vector.load %arg6[%c5_80, %c0_81] : memref<6x3xf32, #tpu.memory_space<vmem>>, vector<1x3xf32>
    tpu.vector_store %arg6[%c5_80, %c0_81], %50 {strides = array<i32>} : memref<6x3xf32, #tpu.memory_space<vmem>>, vector<1x3xf32>,
    %c0_82 = arith.constant 0 : index
    %c0_83 = arith.constant 0 : index
    %52 = vector.load %arg5[%c0_82, %c0_83] : memref<10x32xf32, #tpu.memory_space<vmem>>, vector<10x16xf32>
    %c0_84 = arith.constant 0 : index
    %c16_85 = arith.constant 16 : index
    %53 = vector.load %arg5[%c0_84, %c16_85] : memref<10x32xf32, #tpu.memory_space<vmem>>, vector<10x3xf32>
    %c0_86 = arith.constant 0 : index
    %c0_87 = arith.constant 0 : index
    %54 = vector.load %arg6[%c0_86, %c0_87] : memref<6x3xf32, #tpu.memory_space<vmem>>, vector<6x3xf32>
    %cst = arith.constant dense<0.000000e+00> : vector<6x6xf32>
    %55 = tpu.matmul %54, %54, %cst {dimension_numbers = #tpu.dot_dimension_numbers<[1], [1], [0], [0], [0, 0, 1, 0], [], []>} : vector<6x3xf32>, vector<6x3xf32>, vector<6x6xf32> -> vector<6x6xf32>
    %c0_88 = arith.constant 0 : index
    %c0_89 = arith.constant 0 : index
    %56 = vector.load %arg7[%c0_88, %c0_89] : memref<6x6xf32, #tpu.memory_space<vmem>>, vector<6x6xf32>
    tpu.vector_store %arg7[%c0_88, %c0_89], %55 {strides = array<i32>} : memref<6x6xf32, #tpu.memory_space<vmem>>, vector<6x6xf32>,
    %cst_90 = arith.constant 0.000000e+00 : f32
    %57 = vector.broadcast %cst_90 : f32 to vector<2x128xf32>
    %c0_91 = arith.constant 0 : index
    %c0_92 = arith.constant 0 : index
    %58 = vector.load %arg8[%c0_91, %c0_92] : memref<2x128xf32, #tpu.memory_space<vmem>>, vector<2x128xf32>
    tpu.vector_store %arg8[%c0_91, %c0_92], %57 {strides = array<i32>} : memref<2x128xf32, #tpu.memory_space<vmem>>, vector<2x128xf32>,
    %c0_93 = arith.constant 0 : index
    %c0_94 = arith.constant 0 : index
    %59 = vector.load %arg7[%c0_93, %c0_94] : memref<6x6xf32, #tpu.memory_space<vmem>>, vector<1x3xf32>
    %c0_95 = arith.constant 0 : index
    %c96 = arith.constant 96 : index
    %60 = vector.load %arg8[%c0_95, %c96] : memref<2x128xf32, #tpu.memory_space<vmem>>, vector<1x3xf32>
    tpu.vector_store %arg8[%c0_95, %c96], %59 {strides = array<i32>} : memref<2x128xf32, #tpu.memory_space<vmem>>, vector<1x3xf32>,
    %c1_96 = arith.constant 1 : index
    %c0_97 = arith.constant 0 : index
    %61 = vector.load %arg7[%c1_96, %c0_97] : memref<6x6xf32, #tpu.memory_space<vmem>>, vector<1x3xf32>
    %c0_98 = arith.constant 0 : index
    %c99 = arith.constant 99 : index
    %62 = vector.load %arg8[%c0_98, %c99] : memref<2x128xf32, #tpu.memory_space<vmem>>, vector<1x3xf32>
    tpu.vector_store %arg8[%c0_98, %c99], %61 {strides = array<i32>} : memref<2x128xf32, #tpu.memory_space<vmem>>, vector<1x3xf32>,
    %c2_99 = arith.constant 2 : index
    %c0_100 = arith.constant 0 : index
    %63 = vector.load %arg7[%c2_99, %c0_100] : memref<6x6xf32, #tpu.memory_space<vmem>>, vector<1x3xf32>
    %c0_101 = arith.constant 0 : index
    %c102 = arith.constant 102 : index
    %64 = vector.load %arg8[%c0_101, %c102] : memref<2x128xf32, #tpu.memory_space<vmem>>, vector<1x3xf32>
    tpu.vector_store %arg8[%c0_101, %c102], %63 {strides = array<i32>} : memref<2x128xf32, #tpu.memory_space<vmem>>, vector<1x3xf32>,
    %c3_102 = arith.constant 3 : index
    %c3_103 = arith.constant 3 : index
    %65 = vector.load %arg7[%c3_102, %c3_103] : memref<6x6xf32, #tpu.memory_space<vmem>>, vector<1x3xf32>
    %c1_104 = arith.constant 1 : index
    %c96_105 = arith.constant 96 : index
    %66 = vector.load %arg8[%c1_104, %c96_105] : memref<2x128xf32, #tpu.memory_space<vmem>>, vector<1x3xf32>
    tpu.vector_store %arg8[%c1_104, %c96_105], %65 {strides = array<i32>} : memref<2x128xf32, #tpu.memory_space<vmem>>, vector<1x3xf32>,
    %c4_106 = arith.constant 4 : index
    %c3_107 = arith.constant 3 : index
    %67 = vector.load %arg7[%c4_106, %c3_107] : memref<6x6xf32, #tpu.memory_space<vmem>>, vector<1x3xf32>
    %c1_108 = arith.constant 1 : index
    %c99_109 = arith.constant 99 : index
    %68 = vector.load %arg8[%c1_108, %c99_109] : memref<2x128xf32, #tpu.memory_space<vmem>>, vector<1x3xf32>
    tpu.vector_store %arg8[%c1_108, %c99_109], %67 {strides = array<i32>} : memref<2x128xf32, #tpu.memory_space<vmem>>, vector<1x3xf32>,
    %c5_110 = arith.constant 5 : index
    %c3_111 = arith.constant 3 : index
    %69 = vector.load %arg7[%c5_110, %c3_111] : memref<6x6xf32, #tpu.memory_space<vmem>>, vector<1x3xf32>
    %c1_112 = arith.constant 1 : index
    %c102_113 = arith.constant 102 : index
    %70 = vector.load %arg8[%c1_112, %c102_113] : memref<2x128xf32, #tpu.memory_space<vmem>>, vector<1x3xf32>
    tpu.vector_store %arg8[%c1_112, %c102_113], %69 {strides = array<i32>} : memref<2x128xf32, #tpu.memory_space<vmem>>, vector<1x3xf32>,
    %c20 = arith.constant 20 : index
    %c0_114 = arith.constant 0 : index
    %71 = vector.load %arg3[%c20, %c0_114] : memref<122x128xf32, #tpu.memory_space<vmem>>, vector<40x10xf32>
    %cst_115 = arith.constant dense<0.000000e+00> : vector<40x3xf32>
    %72 = tpu.matmul %71, %53, %cst_115 {dimension_numbers = #tpu.dot_dimension_numbers<[1], [0], [0], [1], [0, 0, 1, 1], [], []>} : vector<40x10xf32>, vector<10x3xf32>, vector<40x3xf32> -> vector<40x3xf32>
    %cst_116 = arith.constant 5.000000e-01 : f32
    %73 = vector.broadcast %cst_116 : f32 to vector<40x3xf32>
    %74 = arith.addf %72, %73 : vector<40x3xf32>
    %cst_117 = arith.constant 1.000000e+00 : f32
    %75 = vector.broadcast %cst_117 : f32 to vector<40x3xf32>
    %76 = arith.remf %74, %75 : vector<40x3xf32>
    %cst_118 = arith.constant 0.000000e+00 : f32
    %77 = vector.broadcast %cst_118 : f32 to vector<40x3xf32>
    %78 = arith.cmpf one, %76, %77 : vector<40x3xf32>
    %cst_119 = arith.constant 0.000000e+00 : f32
    %79 = vector.broadcast %cst_119 : f32 to vector<40x3xf32>
    %80 = arith.cmpf olt, %76, %79 : vector<40x3xf32>
    %cst_120 = arith.constant 0.000000e+00 : f32
    %81 = arith.cmpf olt, %cst_117, %cst_120 : f32
    %82 = vector.broadcast %81 : i1 to vector<40x3xi1>
    %83 = vector.broadcast %82 : vector<40x3xi1> to vector<40x3xi1>
    %84 = arith.xori %80, %83 : vector<40x3xi1>
    %85 = arith.andi %84, %78 : vector<40x3xi1>
    %86 = vector.broadcast %cst_117 : f32 to vector<40x3xf32>
    %87 = arith.addf %76, %86 : vector<40x3xf32>
    %88 = arith.select %85, %87, %76 : vector<40x3xi1>, vector<40x3xf32>
    %cst_121 = arith.constant 5.000000e-01 : f32
    %89 = vector.broadcast %cst_121 : f32 to vector<40x3xf32>
    %90 = arith.subf %88, %89 : vector<40x3xf32>
    %c5_122 = arith.constant 5 : index
    %c0_123 = arith.constant 0 : index
    %91 = vector.load %arg3[%c5_122, %c0_123] : memref<122x128xf32, #tpu.memory_space<vmem>>, vector<3x128xf32>
    %cst_124 = arith.constant dense<0.000000e+00> : vector<40x128xf32>
    %92 = tpu.matmul %90, %91, %cst_124 {dimension_numbers = #tpu.dot_dimension_numbers<[1], [0], [0], [1], [0, 0, 1, 1], [], []>} : vector<40x3xf32>, vector<3x128xf32>, vector<40x128xf32> -> vector<40x128xf32>
    %c4_125 = arith.constant 4 : index
    %c0_126 = arith.constant 0 : index
    %93 = vector.load %arg3[%c4_125, %c0_126] : memref<122x128xf32, #tpu.memory_space<vmem>>, vector<1x128xf32>
    %94 = vector.broadcast %93 : vector<1x128xf32> to vector<40x128xf32>
    %95 = arith.addf %92, %94 : vector<40x128xf32>
    %96 = math.sin %95 : vector<40x128xf32>
    %c60 = arith.constant 60 : index
    %c0_127 = arith.constant 0 : index
    %97 = vector.load %arg3[%c60, %c0_127] : memref<122x128xf32, #tpu.memory_space<vmem>>, vector<40x2xf32>
    %c0_128 = arith.constant 0 : index
    %c0_129 = arith.constant 0 : index
    %98 = vector.load %arg8[%c0_128, %c0_129] : memref<2x128xf32, #tpu.memory_space<vmem>>, vector<2x128xf32>
    %cst_130 = arith.constant dense<0.000000e+00> : vector<40x128xf32>
    %99 = tpu.matmul %97, %98, %cst_130 {dimension_numbers = #tpu.dot_dimension_numbers<[1], [0], [0], [1], [0, 0, 1, 1], [], []>} : vector<40x2xf32>, vector<2x128xf32>, vector<40x128xf32> -> vector<40x128xf32>
    %100 = arith.addf %96, %99 : vector<40x128xf32>
    %101 = arith.truncf %100 : vector<40x128xf32> to vector<40x128xbf16>
    %c100 = arith.constant 100 : index
    %c0_131 = arith.constant 0 : index
    %102 = vector.load %arg3[%c100, %c0_131] : memref<122x128xf32, #tpu.memory_space<vmem>>, vector<10x2xf32>
    %c0_132 = arith.constant 0 : index
    %c0_133 = arith.constant 0 : index
    %103 = vector.load %arg1[%c0_132, %c0_133] : memref<2x1xf32, #tpu.memory_space<vmem>>, vector<2x1xf32>
    %cst_134 = arith.constant dense<0.000000e+00> : vector<10x1xf32>
    %104 = tpu.matmul %102, %103, %cst_134 {dimension_numbers = #tpu.dot_dimension_numbers<[1], [0], [0], [1], [0, 0, 1, 1], [], []>} : vector<10x2xf32>, vector<2x1xf32>, vector<10x1xf32> -> vector<10x1xf32>
    %c0_135 = arith.constant 0 : index
    %c0_136 = arith.constant 0 : index
    %105 = vector.load %arg2[%c0_135, %c0_136] : memref<1260x256xbf16, #tpu.memory_space<vmem>>, vector<16x128xbf16>
    %106 = arith.truncf %52 : vector<10x16xf32> to vector<10x16xbf16>
    %cst_137 = arith.constant dense<0.000000e+00> : vector<10x128xf32>
    %107 = tpu.matmul %106, %105, %cst_137 {dimension_numbers = #tpu.dot_dimension_numbers<[1], [0], [0], [1], [0, 0, 1, 1], [], []>} : vector<10x16xbf16>, vector<16x128xbf16>, vector<10x128xf32> -> vector<10x128xf32>
    %c0_138 = arith.constant 0 : index
    %c0_139 = arith.constant 0 : index
    %108 = vector.load %arg3[%c0_138, %c0_139] : memref<122x128xf32, #tpu.memory_space<vmem>>, vector<1x128xf32>
    %109 = vector.broadcast %104 : vector<10x1xf32> to vector<10x128xf32>
    %110 = vector.broadcast %108 : vector<1x128xf32> to vector<10x128xf32>
    %111 = arith.mulf %109, %110 : vector<10x128xf32>
    %112 = arith.addf %107, %111 : vector<10x128xf32>
    %c1168 = arith.constant 1168 : index
    %c0_140 = arith.constant 0 : index
    %113 = vector.load %arg2[%c1168, %c0_140] : memref<1260x256xbf16, #tpu.memory_space<vmem>>, vector<40x10xbf16>
    %c1208 = arith.constant 1208 : index
    %c0_141 = arith.constant 0 : index
    %114 = vector.load %arg2[%c1208, %c0_141] : memref<1260x256xbf16, #tpu.memory_space<vmem>>, vector<40x10xbf16>
    %c1248 = arith.constant 1248 : index
    %c0_142 = arith.constant 0 : index
    %115 = vector.load %arg2[%c1248, %c0_142] : memref<1260x256xbf16, #tpu.memory_space<vmem>>, vector<10x40xbf16>
    %c110 = arith.constant 110 : index
    %c0_143 = arith.constant 0 : index
    %116 = vector.load %arg3[%c110, %c0_143] : memref<122x128xf32, #tpu.memory_space<vmem>>, vector<10x1xf32>
    %c8_144 = arith.constant 8 : index
    %c0_145 = arith.constant 0 : index
    %117 = vector.load %arg3[%c8_144, %c0_145] : memref<122x128xf32, #tpu.memory_space<vmem>>, vector<1x128xf32>
    %c9_146 = arith.constant 9 : index
    %c0_147 = arith.constant 0 : index
    %118 = vector.load %arg3[%c9_146, %c0_147] : memref<122x128xf32, #tpu.memory_space<vmem>>, vector<1x128xf32>
    %cst_148 = arith.constant dense<0.000000e+00> : vector<10xf32>
    %119 = vector.multi_reduction <add>, %112, %cst_148 [1] : vector<10x128xf32> to vector<10xf32>
    %120 = vector.shape_cast %119 : vector<10xf32> to vector<10x1xf32>
    %cst_149 = arith.constant 1.280000e+02 : f32
    %121 = vector.broadcast %cst_149 : f32 to vector<10x1xf32>
    %122 = arith.divf %120, %121 : vector<10x1xf32>
    %123 = vector.broadcast %122 : vector<10x1xf32> to vector<10x128xf32>
    %124 = arith.subf %112, %123 : vector<10x128xf32>
    %125 = arith.mulf %124, %124 : vector<10x128xf32>
    %cst_150 = arith.constant dense<0.000000e+00> : vector<10xf32>
    %126 = vector.multi_reduction <add>, %125, %cst_150 [1] : vector<10x128xf32> to vector<10xf32>
    %127 = vector.shape_cast %126 : vector<10xf32> to vector<10x1xf32>
    %cst_151 = arith.constant 1.280000e+02 : f32
    %128 = vector.broadcast %cst_151 : f32 to vector<10x1xf32>
    %129 = arith.divf %127, %128 : vector<10x1xf32>
    %cst_152 = arith.constant 9.99999974E-6 : f32
    %130 = vector.broadcast %cst_152 : f32 to vector<10x1xf32>
    %131 = arith.addf %129, %130 : vector<10x1xf32>
    %132 = math.rsqrt %131 : vector<10x1xf32>
    %133 = vector.broadcast %132 : vector<10x1xf32> to vector<10x128xf32>
    %134 = arith.mulf %124, %133 : vector<10x128xf32>
    %135 = vector.broadcast %117 : vector<1x128xf32> to vector<10x128xf32>
    %136 = arith.mulf %134, %135 : vector<10x128xf32>
    %137 = vector.broadcast %118 : vector<1x128xf32> to vector<10x128xf32>
    %138 = arith.addf %136, %137 : vector<10x128xf32>
    %139 = arith.truncf %138 : vector<10x128xf32> to vector<10x128xbf16>
    %c16_153 = arith.constant 16 : index
    %c0_154 = arith.constant 0 : index
    %140 = vector.load %arg2[%c16_153, %c0_154] : memref<1260x256xbf16, #tpu.memory_space<vmem>>, vector<128x256xbf16>
    %cst_155 = arith.constant dense<0.000000e+00> : vector<10x256xf32>
    %141 = tpu.matmul %139, %140, %cst_155 {dimension_numbers = #tpu.dot_dimension_numbers<[1], [0], [0], [1], [0, 0, 1, 1], [], []>} : vector<10x128xbf16>, vector<128x256xbf16>, vector<10x256xf32> -> vector<10x256xf32>
    %142 = vector.extract_strided_slice %141 {offsets = [0, 0], sizes = [10, 128], strides = [1, 1]} : vector<10x256xf32> to vector<10x128xf32>
    %143 = arith.truncf %142 : vector<10x128xf32> to vector<10x128xbf16>
    %cst_156 = arith.constant dense<0.000000e+00> : vector<40x128xf32>
    %144 = tpu.matmul %113, %143, %cst_156 {dimension_numbers = #tpu.dot_dimension_numbers<[1], [0], [0], [1], [0, 0, 1, 1], [], []>} : vector<40x10xbf16>, vector<10x128xbf16>, vector<40x128xf32> -> vector<40x128xf32>
    %145 = vector.extract_strided_slice %141 {offsets = [0, 128], sizes = [10, 128], strides = [1, 1]} : vector<10x256xf32> to vector<10x128xf32>
    %146 = arith.truncf %145 : vector<10x128xf32> to vector<10x128xbf16>
    %cst_157 = arith.constant dense<0.000000e+00> : vector<40x128xf32>
    %147 = tpu.matmul %114, %146, %cst_157 {dimension_numbers = #tpu.dot_dimension_numbers<[1], [0], [0], [1], [0, 0, 1, 1], [], []>} : vector<40x10xbf16>, vector<10x128xbf16>, vector<40x128xf32> -> vector<40x128xf32>
    %148 = arith.addf %144, %147 : vector<40x128xf32>
    %c144 = arith.constant 144 : index
    %c0_158 = arith.constant 0 : index
    %149 = vector.load %arg2[%c144, %c0_158] : memref<1260x256xbf16, #tpu.memory_space<vmem>>, vector<128x128xbf16>
    %cst_159 = arith.constant dense<0.000000e+00> : vector<40x128xf32>
    %150 = tpu.matmul %101, %149, %cst_159 {dimension_numbers = #tpu.dot_dimension_numbers<[1], [0], [0], [1], [0, 0, 1, 1], [], []>} : vector<40x128xbf16>, vector<128x128xbf16>, vector<40x128xf32> -> vector<40x128xf32>
    %151 = arith.addf %148, %150 : vector<40x128xf32>
    %c10 = arith.constant 10 : index
    %c0_160 = arith.constant 0 : index
    %152 = vector.load %arg3[%c10, %c0_160] : memref<122x128xf32, #tpu.memory_space<vmem>>, vector<1x128xf32>
    %153 = vector.broadcast %152 : vector<1x128xf32> to vector<40x128xf32>
    %154 = arith.addf %151, %153 : vector<40x128xf32>
    %155 = arith.negf %154 : vector<40x128xf32>
    %156 = math.exp %155 : vector<40x128xf32>
    %cst_161 = arith.constant 1.000000e+00 : f32
    %157 = vector.broadcast %cst_161 : f32 to vector<40x128xf32>
    %158 = arith.addf %157, %156 : vector<40x128xf32>
    %159 = arith.divf %157, %158 : vector<40x128xf32>
    %160 = arith.mulf %154, %159 : vector<40x128xf32>
    %c144_162 = arith.constant 144 : index
    %c128 = arith.constant 128 : index
    %161 = vector.load %arg2[%c144_162, %c128] : memref<1260x256xbf16, #tpu.memory_space<vmem>>, vector<128x128xbf16>
    %162 = arith.truncf %160 : vector<40x128xf32> to vector<40x128xbf16>
    %cst_163 = arith.constant dense<0.000000e+00> : vector<40x128xf32>
    %163 = tpu.matmul %162, %161, %cst_163 {dimension_numbers = #tpu.dot_dimension_numbers<[1], [0], [0], [1], [0, 0, 1, 1], [], []>} : vector<40x128xbf16>, vector<128x128xbf16>, vector<40x128xf32> -> vector<40x128xf32>
    %c11 = arith.constant 11 : index
    %c0_164 = arith.constant 0 : index
    %164 = vector.load %arg3[%c11, %c0_164] : memref<122x128xf32, #tpu.memory_space<vmem>>, vector<1x128xf32>
    %165 = vector.broadcast %164 : vector<1x128xf32> to vector<40x128xf32>
    %166 = arith.addf %163, %165 : vector<40x128xf32>
    %167 = arith.negf %166 : vector<40x128xf32>
    %168 = math.exp %167 : vector<40x128xf32>
    %cst_165 = arith.constant 1.000000e+00 : f32
    %169 = vector.broadcast %cst_165 : f32 to vector<40x128xf32>
    %170 = arith.addf %169, %168 : vector<40x128xf32>
    %171 = arith.divf %169, %170 : vector<40x128xf32>
    %172 = arith.mulf %166, %171 : vector<40x128xf32>
    %173 = arith.truncf %172 : vector<40x128xf32> to vector<40x128xbf16>
    %cst_166 = arith.constant dense<0.000000e+00> : vector<10x128xf32>
    %174 = tpu.matmul %115, %173, %cst_166 {dimension_numbers = #tpu.dot_dimension_numbers<[1], [0], [0], [1], [0, 0, 1, 1], [], []>} : vector<10x40xbf16>, vector<40x128xbf16>, vector<10x128xf32> -> vector<10x128xf32>
    %175 = vector.broadcast %116 : vector<10x1xf32> to vector<10x128xf32>
    %176 = arith.mulf %174, %175 : vector<10x128xf32>
    %c272 = arith.constant 272 : index
    %c0_167 = arith.constant 0 : index
    %177 = vector.load %arg2[%c272, %c0_167] : memref<1260x256xbf16, #tpu.memory_space<vmem>>, vector<128x128xbf16>
    %cst_168 = arith.constant dense<0.000000e+00> : vector<10x128xf32>
    %178 = tpu.matmul %139, %177, %cst_168 {dimension_numbers = #tpu.dot_dimension_numbers<[1], [0], [0], [1], [0, 0, 1, 1], [], []>} : vector<10x128xbf16>, vector<128x128xbf16>, vector<10x128xf32> -> vector<10x128xf32>
    %c272_169 = arith.constant 272 : index
    %c128_170 = arith.constant 128 : index
    %179 = vector.load %arg2[%c272_169, %c128_170] : memref<1260x256xbf16, #tpu.memory_space<vmem>>, vector<128x128xbf16>
    %180 = arith.truncf %176 : vector<10x128xf32> to vector<10x128xbf16>
    %cst_171 = arith.constant dense<0.000000e+00> : vector<10x128xf32>
    %181 = tpu.matmul %180, %179, %cst_171 {dimension_numbers = #tpu.dot_dimension_numbers<[1], [0], [0], [1], [0, 0, 1, 1], [], []>} : vector<10x128xbf16>, vector<128x128xbf16>, vector<10x128xf32> -> vector<10x128xf32>
    %182 = arith.addf %178, %181 : vector<10x128xf32>
    %c12 = arith.constant 12 : index
    %c0_172 = arith.constant 0 : index
    %183 = vector.load %arg3[%c12, %c0_172] : memref<122x128xf32, #tpu.memory_space<vmem>>, vector<1x128xf32>
    %184 = vector.broadcast %183 : vector<1x128xf32> to vector<10x128xf32>
    %185 = arith.addf %182, %184 : vector<10x128xf32>
    %186 = arith.negf %185 : vector<10x128xf32>
    %187 = math.exp %186 : vector<10x128xf32>
    %cst_173 = arith.constant 1.000000e+00 : f32
    %188 = vector.broadcast %cst_173 : f32 to vector<10x128xf32>
    %189 = arith.addf %188, %187 : vector<10x128xf32>
    %190 = arith.divf %188, %189 : vector<10x128xf32>
    %191 = arith.mulf %185, %190 : vector<10x128xf32>
    %c400 = arith.constant 400 : index
    %c0_174 = arith.constant 0 : index
    %192 = vector.load %arg2[%c400, %c0_174] : memref<1260x256xbf16, #tpu.memory_space<vmem>>, vector<128x128xbf16>
    %193 = arith.truncf %191 : vector<10x128xf32> to vector<10x128xbf16>
    %cst_175 = arith.constant dense<0.000000e+00> : vector<10x128xf32>
    %194 = tpu.matmul %193, %192, %cst_175 {dimension_numbers = #tpu.dot_dimension_numbers<[1], [0], [0], [1], [0, 0, 1, 1], [], []>} : vector<10x128xbf16>, vector<128x128xbf16>, vector<10x128xf32> -> vector<10x128xf32>
    %c13 = arith.constant 13 : index
    %c0_176 = arith.constant 0 : index
    %195 = vector.load %arg3[%c13, %c0_176] : memref<122x128xf32, #tpu.memory_space<vmem>>, vector<1x128xf32>
    %196 = vector.broadcast %195 : vector<1x128xf32> to vector<10x128xf32>
    %197 = arith.addf %194, %196 : vector<10x128xf32>
    %198 = arith.negf %197 : vector<10x128xf32>
    %199 = math.exp %198 : vector<10x128xf32>
    %cst_177 = arith.constant 1.000000e+00 : f32
    %200 = vector.broadcast %cst_177 : f32 to vector<10x128xf32>
    %201 = arith.addf %200, %199 : vector<10x128xf32>
    %202 = arith.divf %200, %201 : vector<10x128xf32>
    %203 = arith.mulf %197, %202 : vector<10x128xf32>
    %204 = arith.addf %112, %203 : vector<10x128xf32>
    %c14 = arith.constant 14 : index
    %c0_178 = arith.constant 0 : index
    %205 = vector.load %arg3[%c14, %c0_178] : memref<122x128xf32, #tpu.memory_space<vmem>>, vector<1x128xf32>
    %c15 = arith.constant 15 : index
    %c0_179 = arith.constant 0 : index
    %206 = vector.load %arg3[%c15, %c0_179] : memref<122x128xf32, #tpu.memory_space<vmem>>, vector<1x128xf32>
    %cst_180 = arith.constant dense<0.000000e+00> : vector<10xf32>
    %207 = vector.multi_reduction <add>, %204, %cst_180 [1] : vector<10x128xf32> to vector<10xf32>
    %208 = vector.shape_cast %207 : vector<10xf32> to vector<10x1xf32>
    %cst_181 = arith.constant 1.280000e+02 : f32
    %209 = vector.broadcast %cst_181 : f32 to vector<10x1xf32>
    %210 = arith.divf %208, %209 : vector<10x1xf32>
    %211 = vector.broadcast %210 : vector<10x1xf32> to vector<10x128xf32>
    %212 = arith.subf %204, %211 : vector<10x128xf32>
    %213 = arith.mulf %212, %212 : vector<10x128xf32>
    %cst_182 = arith.constant dense<0.000000e+00> : vector<10xf32>
    %214 = vector.multi_reduction <add>, %213, %cst_182 [1] : vector<10x128xf32> to vector<10xf32>
    %215 = vector.shape_cast %214 : vector<10xf32> to vector<10x1xf32>
    %cst_183 = arith.constant 1.280000e+02 : f32
    %216 = vector.broadcast %cst_183 : f32 to vector<10x1xf32>
    %217 = arith.divf %215, %216 : vector<10x1xf32>
    %cst_184 = arith.constant 9.99999974E-6 : f32
    %218 = vector.broadcast %cst_184 : f32 to vector<10x1xf32>
    %219 = arith.addf %217, %218 : vector<10x1xf32>
    %220 = math.rsqrt %219 : vector<10x1xf32>
    %221 = vector.broadcast %220 : vector<10x1xf32> to vector<10x128xf32>
    %222 = arith.mulf %212, %221 : vector<10x128xf32>
    %223 = vector.broadcast %205 : vector<1x128xf32> to vector<10x128xf32>
    %224 = arith.mulf %222, %223 : vector<10x128xf32>
    %225 = vector.broadcast %206 : vector<1x128xf32> to vector<10x128xf32>
    %226 = arith.addf %224, %225 : vector<10x128xf32>
    %227 = arith.truncf %226 : vector<10x128xf32> to vector<10x128xbf16>
    %c528 = arith.constant 528 : index
    %c0_185 = arith.constant 0 : index
    %228 = vector.load %arg2[%c528, %c0_185] : memref<1260x256xbf16, #tpu.memory_space<vmem>>, vector<128x256xbf16>
    %cst_186 = arith.constant dense<0.000000e+00> : vector<10x256xf32>
    %229 = tpu.matmul %227, %228, %cst_186 {dimension_numbers = #tpu.dot_dimension_numbers<[1], [0], [0], [1], [0, 0, 1, 1], [], []>} : vector<10x128xbf16>, vector<128x256xbf16>, vector<10x256xf32> -> vector<10x256xf32>
    %230 = vector.extract_strided_slice %229 {offsets = [0, 0], sizes = [10, 128], strides = [1, 1]} : vector<10x256xf32> to vector<10x128xf32>
    %231 = arith.truncf %230 : vector<10x128xf32> to vector<10x128xbf16>
    %cst_187 = arith.constant dense<0.000000e+00> : vector<40x128xf32>
    %232 = tpu.matmul %113, %231, %cst_187 {dimension_numbers = #tpu.dot_dimension_numbers<[1], [0], [0], [1], [0, 0, 1, 1], [], []>} : vector<40x10xbf16>, vector<10x128xbf16>, vector<40x128xf32> -> vector<40x128xf32>
    %233 = vector.extract_strided_slice %229 {offsets = [0, 128], sizes = [10, 128], strides = [1, 1]} : vector<10x256xf32> to vector<10x128xf32>
    %234 = arith.truncf %233 : vector<10x128xf32> to vector<10x128xbf16>
    %cst_188 = arith.constant dense<0.000000e+00> : vector<40x128xf32>
    %235 = tpu.matmul %114, %234, %cst_188 {dimension_numbers = #tpu.dot_dimension_numbers<[1], [0], [0], [1], [0, 0, 1, 1], [], []>} : vector<40x10xbf16>, vector<10x128xbf16>, vector<40x128xf32> -> vector<40x128xf32>
    %236 = arith.addf %232, %235 : vector<40x128xf32>
    %c656 = arith.constant 656 : index
    %c0_189 = arith.constant 0 : index
    %237 = vector.load %arg2[%c656, %c0_189] : memref<1260x256xbf16, #tpu.memory_space<vmem>>, vector<128x128xbf16>
    %cst_190 = arith.constant dense<0.000000e+00> : vector<40x128xf32>
    %238 = tpu.matmul %101, %237, %cst_190 {dimension_numbers = #tpu.dot_dimension_numbers<[1], [0], [0], [1], [0, 0, 1, 1], [], []>} : vector<40x128xbf16>, vector<128x128xbf16>, vector<40x128xf32> -> vector<40x128xf32>
    %239 = arith.addf %236, %238 : vector<40x128xf32>
    %c16_191 = arith.constant 16 : index
    %c0_192 = arith.constant 0 : index
    %240 = vector.load %arg3[%c16_191, %c0_192] : memref<122x128xf32, #tpu.memory_space<vmem>>, vector<1x128xf32>
    %241 = vector.broadcast %240 : vector<1x128xf32> to vector<40x128xf32>
    %242 = arith.addf %239, %241 : vector<40x128xf32>
    %243 = arith.negf %242 : vector<40x128xf32>
    %244 = math.exp %243 : vector<40x128xf32>
    %cst_193 = arith.constant 1.000000e+00 : f32
    %245 = vector.broadcast %cst_193 : f32 to vector<40x128xf32>
    %246 = arith.addf %245, %244 : vector<40x128xf32>
    %247 = arith.divf %245, %246 : vector<40x128xf32>
    %248 = arith.mulf %242, %247 : vector<40x128xf32>
    %c656_194 = arith.constant 656 : index
    %c128_195 = arith.constant 128 : index
    %249 = vector.load %arg2[%c656_194, %c128_195] : memref<1260x256xbf16, #tpu.memory_space<vmem>>, vector<128x128xbf16>
    %250 = arith.truncf %248 : vector<40x128xf32> to vector<40x128xbf16>
    %cst_196 = arith.constant dense<0.000000e+00> : vector<40x128xf32>
    %251 = tpu.matmul %250, %249, %cst_196 {dimension_numbers = #tpu.dot_dimension_numbers<[1], [0], [0], [1], [0, 0, 1, 1], [], []>} : vector<40x128xbf16>, vector<128x128xbf16>, vector<40x128xf32> -> vector<40x128xf32>
    %c17 = arith.constant 17 : index
    %c0_197 = arith.constant 0 : index
    %252 = vector.load %arg3[%c17, %c0_197] : memref<122x128xf32, #tpu.memory_space<vmem>>, vector<1x128xf32>
    %253 = vector.broadcast %252 : vector<1x128xf32> to vector<40x128xf32>
    %254 = arith.addf %251, %253 : vector<40x128xf32>
    %255 = arith.negf %254 : vector<40x128xf32>
    %256 = math.exp %255 : vector<40x128xf32>
    %cst_198 = arith.constant 1.000000e+00 : f32
    %257 = vector.broadcast %cst_198 : f32 to vector<40x128xf32>
    %258 = arith.addf %257, %256 : vector<40x128xf32>
    %259 = arith.divf %257, %258 : vector<40x128xf32>
    %260 = arith.mulf %254, %259 : vector<40x128xf32>
    %261 = arith.truncf %260 : vector<40x128xf32> to vector<40x128xbf16>
    %cst_199 = arith.constant dense<0.000000e+00> : vector<10x128xf32>
    %262 = tpu.matmul %115, %261, %cst_199 {dimension_numbers = #tpu.dot_dimension_numbers<[1], [0], [0], [1], [0, 0, 1, 1], [], []>} : vector<10x40xbf16>, vector<40x128xbf16>, vector<10x128xf32> -> vector<10x128xf32>
    %263 = vector.broadcast %116 : vector<10x1xf32> to vector<10x128xf32>
    %264 = arith.mulf %262, %263 : vector<10x128xf32>
    %c784 = arith.constant 784 : index
    %c0_200 = arith.constant 0 : index
    %265 = vector.load %arg2[%c784, %c0_200] : memref<1260x256xbf16, #tpu.memory_space<vmem>>, vector<128x128xbf16>
    %cst_201 = arith.constant dense<0.000000e+00> : vector<10x128xf32>
    %266 = tpu.matmul %227, %265, %cst_201 {dimension_numbers = #tpu.dot_dimension_numbers<[1], [0], [0], [1], [0, 0, 1, 1], [], []>} : vector<10x128xbf16>, vector<128x128xbf16>, vector<10x128xf32> -> vector<10x128xf32>
    %c784_202 = arith.constant 784 : index
    %c128_203 = arith.constant 128 : index
    %267 = vector.load %arg2[%c784_202, %c128_203] : memref<1260x256xbf16, #tpu.memory_space<vmem>>, vector<128x128xbf16>
    %268 = arith.truncf %264 : vector<10x128xf32> to vector<10x128xbf16>
    %cst_204 = arith.constant dense<0.000000e+00> : vector<10x128xf32>
    %269 = tpu.matmul %268, %267, %cst_204 {dimension_numbers = #tpu.dot_dimension_numbers<[1], [0], [0], [1], [0, 0, 1, 1], [], []>} : vector<10x128xbf16>, vector<128x128xbf16>, vector<10x128xf32> -> vector<10x128xf32>
    %270 = arith.addf %266, %269 : vector<10x128xf32>
    %c18 = arith.constant 18 : index
    %c0_205 = arith.constant 0 : index
    %271 = vector.load %arg3[%c18, %c0_205] : memref<122x128xf32, #tpu.memory_space<vmem>>, vector<1x128xf32>
    %272 = vector.broadcast %271 : vector<1x128xf32> to vector<10x128xf32>
    %273 = arith.addf %270, %272 : vector<10x128xf32>
    %274 = arith.negf %273 : vector<10x128xf32>
    %275 = math.exp %274 : vector<10x128xf32>
    %cst_206 = arith.constant 1.000000e+00 : f32
    %276 = vector.broadcast %cst_206 : f32 to vector<10x128xf32>
    %277 = arith.addf %276, %275 : vector<10x128xf32>
    %278 = arith.divf %276, %277 : vector<10x128xf32>
    %279 = arith.mulf %273, %278 : vector<10x128xf32>
    %c912 = arith.constant 912 : index
    %c0_207 = arith.constant 0 : index
    %280 = vector.load %arg2[%c912, %c0_207] : memref<1260x256xbf16, #tpu.memory_space<vmem>>, vector<128x128xbf16>
    %281 = arith.truncf %279 : vector<10x128xf32> to vector<10x128xbf16>
    %cst_208 = arith.constant dense<0.000000e+00> : vector<10x128xf32>
    %282 = tpu.matmul %281, %280, %cst_208 {dimension_numbers = #tpu.dot_dimension_numbers<[1], [0], [0], [1], [0, 0, 1, 1], [], []>} : vector<10x128xbf16>, vector<128x128xbf16>, vector<10x128xf32> -> vector<10x128xf32>
    %c19 = arith.constant 19 : index
    %c0_209 = arith.constant 0 : index
    %283 = vector.load %arg3[%c19, %c0_209] : memref<122x128xf32, #tpu.memory_space<vmem>>, vector<1x128xf32>
    %284 = vector.broadcast %283 : vector<1x128xf32> to vector<10x128xf32>
    %285 = arith.addf %282, %284 : vector<10x128xf32>
    %286 = arith.negf %285 : vector<10x128xf32>
    %287 = math.exp %286 : vector<10x128xf32>
    %cst_210 = arith.constant 1.000000e+00 : f32
    %288 = vector.broadcast %cst_210 : f32 to vector<10x128xf32>
    %289 = arith.addf %288, %287 : vector<10x128xf32>
    %290 = arith.divf %288, %289 : vector<10x128xf32>
    %291 = arith.mulf %285, %290 : vector<10x128xf32>
    %292 = arith.addf %204, %291 : vector<10x128xf32>
    %c2_211 = arith.constant 2 : index
    %c0_212 = arith.constant 0 : index
    %293 = vector.load %arg3[%c2_211, %c0_212] : memref<122x128xf32, #tpu.memory_space<vmem>>, vector<1x128xf32>
    %c3_213 = arith.constant 3 : index
    %c0_214 = arith.constant 0 : index
    %294 = vector.load %arg3[%c3_213, %c0_214] : memref<122x128xf32, #tpu.memory_space<vmem>>, vector<1x128xf32>
    %cst_215 = arith.constant dense<0.000000e+00> : vector<10xf32>
    %295 = vector.multi_reduction <add>, %292, %cst_215 [1] : vector<10x128xf32> to vector<10xf32>
    %296 = vector.shape_cast %295 : vector<10xf32> to vector<10x1xf32>
    %cst_216 = arith.constant 1.280000e+02 : f32
    %297 = vector.broadcast %cst_216 : f32 to vector<10x1xf32>
    %298 = arith.divf %296, %297 : vector<10x1xf32>
    %299 = vector.broadcast %298 : vector<10x1xf32> to vector<10x128xf32>
    %300 = arith.subf %292, %299 : vector<10x128xf32>
    %301 = arith.mulf %300, %300 : vector<10x128xf32>
    %cst_217 = arith.constant dense<0.000000e+00> : vector<10xf32>
    %302 = vector.multi_reduction <add>, %301, %cst_217 [1] : vector<10x128xf32> to vector<10xf32>
    %303 = vector.shape_cast %302 : vector<10xf32> to vector<10x1xf32>
    %cst_218 = arith.constant 1.280000e+02 : f32
    %304 = vector.broadcast %cst_218 : f32 to vector<10x1xf32>
    %305 = arith.divf %303, %304 : vector<10x1xf32>
    %cst_219 = arith.constant 9.99999974E-6 : f32
    %306 = vector.broadcast %cst_219 : f32 to vector<10x1xf32>
    %307 = arith.addf %305, %306 : vector<10x1xf32>
    %308 = math.rsqrt %307 : vector<10x1xf32>
    %309 = vector.broadcast %308 : vector<10x1xf32> to vector<10x128xf32>
    %310 = arith.mulf %300, %309 : vector<10x128xf32>
    %311 = vector.broadcast %293 : vector<1x128xf32> to vector<10x128xf32>
    %312 = arith.mulf %310, %311 : vector<10x128xf32>
    %313 = vector.broadcast %294 : vector<1x128xf32> to vector<10x128xf32>
    %314 = arith.addf %312, %313 : vector<10x128xf32>
    %315 = arith.truncf %314 : vector<10x128xf32> to vector<10x128xbf16>
    %c1040 = arith.constant 1040 : index
    %c0_220 = arith.constant 0 : index
    %316 = vector.load %arg2[%c1040, %c0_220] : memref<1260x256xbf16, #tpu.memory_space<vmem>>, vector<128x128xbf16>
    %cst_221 = arith.constant dense<0.000000e+00> : vector<10x128xf32>
    %317 = tpu.matmul %315, %316, %cst_221 {dimension_numbers = #tpu.dot_dimension_numbers<[1], [0], [0], [1], [0, 0, 1, 1], [], []>} : vector<10x128xbf16>, vector<128x128xbf16>, vector<10x128xf32> -> vector<10x128xf32>
    %c1_222 = arith.constant 1 : index
    %c0_223 = arith.constant 0 : index
    %318 = vector.load %arg3[%c1_222, %c0_223] : memref<122x128xf32, #tpu.memory_space<vmem>>, vector<1x128xf32>
    %319 = vector.broadcast %318 : vector<1x128xf32> to vector<10x128xf32>
    %320 = arith.addf %317, %319 : vector<10x128xf32>
    %c0_224 = arith.constant 0 : index
    %c0_225 = arith.constant 0 : index
    %321 = vector.load %arg9[%c0_224, %c0_225] : memref<10x128xf32, #tpu.memory_space<vmem>>, vector<10x128xf32>
    tpu.vector_store %arg9[%c0_224, %c0_225], %320 {strides = array<i32>} : memref<10x128xf32, #tpu.memory_space<vmem>>, vector<10x128xf32>,
    %c1258 = arith.constant 1258 : index
    %c0_226 = arith.constant 0 : index
    %322 = vector.load %arg2[%c1258, %c0_226] : memref<1260x256xbf16, #tpu.memory_space<vmem>>, vector<2x10xbf16>
    %cst_227 = arith.constant dense<0.000000e+00> : vector<2x128xf32>
    %323 = tpu.matmul %322, %315, %cst_227 {dimension_numbers = #tpu.dot_dimension_numbers<[1], [0], [0], [1], [0, 0, 1, 1], [], []>} : vector<2x10xbf16>, vector<10x128xbf16>, vector<2x128xf32> -> vector<2x128xf32>
    %c120 = arith.constant 120 : index
    %c0_228 = arith.constant 0 : index
    %324 = vector.load %arg3[%c120, %c0_228] : memref<122x128xf32, #tpu.memory_space<vmem>>, vector<2x1xf32>
    %325 = vector.broadcast %324 : vector<2x1xf32> to vector<2x128xf32>
    %326 = arith.mulf %323, %325 : vector<2x128xf32>
    %c1040_229 = arith.constant 1040 : index
    %c128_230 = arith.constant 128 : index
    %327 = vector.load %arg2[%c1040_229, %c128_230] : memref<1260x256xbf16, #tpu.memory_space<vmem>>, vector<128x128xbf16>
    %328 = arith.truncf %326 : vector<2x128xf32> to vector<2x128xbf16>
    %cst_231 = arith.constant dense<0.000000e+00> : vector<2x128xf32>
    %329 = tpu.matmul %328, %327, %cst_231 {dimension_numbers = #tpu.dot_dimension_numbers<[1], [0], [0], [1], [0, 0, 1, 1], [], []>} : vector<2x128xbf16>, vector<128x128xbf16>, vector<2x128xf32> -> vector<2x128xf32>
    %c0_232 = arith.constant 0 : index
    %c0_233 = arith.constant 0 : index
    %330 = vector.load %arg10[%c0_232, %c0_233] : memref<2x128xf32, #tpu.memory_space<vmem>>, vector<2x128xf32>
    tpu.vector_store %arg10[%c0_232, %c0_233], %329 {strides = array<i32>} : memref<2x128xf32, #tpu.memory_space<vmem>>, vector<2x128xf32>,
    %cst_234 = arith.constant 0.000000e+00 : f32
    %331 = vector.broadcast %cst_234 : f32 to vector<6x6xf32>
    %c0_235 = arith.constant 0 : index
    %c0_236 = arith.constant 0 : index
    %332 = vector.load %arg7[%c0_235, %c0_236] : memref<6x6xf32, #tpu.memory_space<vmem>>, vector<6x6xf32>
    tpu.vector_store %arg7[%c0_235, %c0_236], %331 {strides = array<i32>} : memref<6x6xf32, #tpu.memory_space<vmem>>, vector<6x6xf32>,
    %c0_237 = arith.constant 0 : index
    %c0_238 = arith.constant 0 : index
    %333 = vector.load %arg10[%c0_237, %c0_238] : memref<2x128xf32, #tpu.memory_space<vmem>>, vector<1x3xf32>
    %c0_239 = arith.constant 0 : index
    %c0_240 = arith.constant 0 : index
    %334 = vector.load %arg7[%c0_239, %c0_240] : memref<6x6xf32, #tpu.memory_space<vmem>>, vector<1x3xf32>
    tpu.vector_store %arg7[%c0_239, %c0_240], %333 {strides = array<i32>} : memref<6x6xf32, #tpu.memory_space<vmem>>, vector<1x3xf32>,
    %c0_241 = arith.constant 0 : index
    %c3_242 = arith.constant 3 : index
    %335 = vector.load %arg10[%c0_241, %c3_242] : memref<2x128xf32, #tpu.memory_space<vmem>>, vector<1x3xf32>
    %c1_243 = arith.constant 1 : index
    %c0_244 = arith.constant 0 : index
    %336 = vector.load %arg7[%c1_243, %c0_244] : memref<6x6xf32, #tpu.memory_space<vmem>>, vector<1x3xf32>
    tpu.vector_store %arg7[%c1_243, %c0_244], %335 {strides = array<i32>} : memref<6x6xf32, #tpu.memory_space<vmem>>, vector<1x3xf32>,
    %c0_245 = arith.constant 0 : index
    %c6_246 = arith.constant 6 : index
    %337 = vector.load %arg10[%c0_245, %c6_246] : memref<2x128xf32, #tpu.memory_space<vmem>>, vector<1x3xf32>
    %c2_247 = arith.constant 2 : index
    %c0_248 = arith.constant 0 : index
    %338 = vector.load %arg7[%c2_247, %c0_248] : memref<6x6xf32, #tpu.memory_space<vmem>>, vector<1x3xf32>
    tpu.vector_store %arg7[%c2_247, %c0_248], %337 {strides = array<i32>} : memref<6x6xf32, #tpu.memory_space<vmem>>, vector<1x3xf32>,
    %c1_249 = arith.constant 1 : index
    %c0_250 = arith.constant 0 : index
    %339 = vector.load %arg10[%c1_249, %c0_250] : memref<2x128xf32, #tpu.memory_space<vmem>>, vector<1x3xf32>
    %c3_251 = arith.constant 3 : index
    %c3_252 = arith.constant 3 : index
    %340 = vector.load %arg7[%c3_251, %c3_252] : memref<6x6xf32, #tpu.memory_space<vmem>>, vector<1x3xf32>
    tpu.vector_store %arg7[%c3_251, %c3_252], %339 {strides = array<i32>} : memref<6x6xf32, #tpu.memory_space<vmem>>, vector<1x3xf32>,
    %c1_253 = arith.constant 1 : index
    %c3_254 = arith.constant 3 : index
    %341 = vector.load %arg10[%c1_253, %c3_254] : memref<2x128xf32, #tpu.memory_space<vmem>>, vector<1x3xf32>
    %c4_255 = arith.constant 4 : index
    %c3_256 = arith.constant 3 : index
    %342 = vector.load %arg7[%c4_255, %c3_256] : memref<6x6xf32, #tpu.memory_space<vmem>>, vector<1x3xf32>
    tpu.vector_store %arg7[%c4_255, %c3_256], %341 {strides = array<i32>} : memref<6x6xf32, #tpu.memory_space<vmem>>, vector<1x3xf32>,
    %c1_257 = arith.constant 1 : index
    %c6_258 = arith.constant 6 : index
    %343 = vector.load %arg10[%c1_257, %c6_258] : memref<2x128xf32, #tpu.memory_space<vmem>>, vector<1x3xf32>
    %c5_259 = arith.constant 5 : index
    %c3_260 = arith.constant 3 : index
    %344 = vector.load %arg7[%c5_259, %c3_260] : memref<6x6xf32, #tpu.memory_space<vmem>>, vector<1x3xf32>
    tpu.vector_store %arg7[%c5_259, %c3_260], %343 {strides = array<i32>} : memref<6x6xf32, #tpu.memory_space<vmem>>, vector<1x3xf32>,
    %c0_261 = arith.constant 0 : index
    %c0_262 = arith.constant 0 : index
    %345 = vector.load %arg7[%c0_261, %c0_262] : memref<6x6xf32, #tpu.memory_space<vmem>>, vector<6x6xf32>
    %cst_263 = arith.constant dense<0.000000e+00> : vector<6x3xf32>
    %346 = tpu.matmul %345, %54, %cst_263 {dimension_numbers = #tpu.dot_dimension_numbers<[1], [0], [0], [1], [0, 0, 1, 1], [], []>} : vector<6x6xf32>, vector<6x3xf32>, vector<6x3xf32> -> vector<6x3xf32>
    %c0_264 = arith.constant 0 : index
    %c0_265 = arith.constant 0 : index
    %347 = vector.load %arg6[%c0_264, %c0_265] : memref<6x3xf32, #tpu.memory_space<vmem>>, vector<6x3xf32>
    tpu.vector_store %arg6[%c0_264, %c0_265], %346 {strides = array<i32>} : memref<6x3xf32, #tpu.memory_space<vmem>>, vector<6x3xf32>,
    %cst_266 = arith.constant 0.000000e+00 : f32
    %348 = vector.broadcast %cst_266 : f32 to vector<2x104xf32>
    %c0_267 = arith.constant 0 : index
    %c0_268 = arith.constant 0 : index
    %349 = vector.load %arg4[%c0_267, %c0_268] : memref<2x104xf32, #tpu.memory_space<vmem>>, vector<2x104xf32>
    tpu.vector_store %arg4[%c0_267, %c0_268], %348 {strides = array<i32>} : memref<2x104xf32, #tpu.memory_space<vmem>>, vector<2x104xf32>,
    %c0_269 = arith.constant 0 : index
    %c3_270 = arith.constant 3 : index
    %350 = vector.load %arg9[%c0_269, %c3_270] : memref<10x128xf32, #tpu.memory_space<vmem>>, vector<1x16xf32>
    %c0_271 = arith.constant 0 : index
    %c0_272 = arith.constant 0 : index
    %351 = vector.load %arg4[%c0_271, %c0_272] : memref<2x104xf32, #tpu.memory_space<vmem>>, vector<1x16xf32>
    tpu.vector_store %arg4[%c0_271, %c0_272], %350 {strides = array<i32>} : memref<2x104xf32, #tpu.memory_space<vmem>>, vector<1x16xf32>,
    %c0_273 = arith.constant 0 : index
    %c0_274 = arith.constant 0 : index
    %352 = vector.load %arg9[%c0_273, %c0_274] : memref<10x128xf32, #tpu.memory_space<vmem>>, vector<1x3xf32>
    %c0_275 = arith.constant 0 : index
    %c80_276 = arith.constant 80 : index
    %353 = vector.load %arg4[%c0_275, %c80_276] : memref<2x104xf32, #tpu.memory_space<vmem>>, vector<1x3xf32>
    tpu.vector_store %arg4[%c0_275, %c80_276], %352 {strides = array<i32>} : memref<2x104xf32, #tpu.memory_space<vmem>>, vector<1x3xf32>,
    %c1_277 = arith.constant 1 : index
    %c3_278 = arith.constant 3 : index
    %354 = vector.load %arg9[%c1_277, %c3_278] : memref<10x128xf32, #tpu.memory_space<vmem>>, vector<1x16xf32>
    %c0_279 = arith.constant 0 : index
    %c16_280 = arith.constant 16 : index
    %355 = vector.load %arg4[%c0_279, %c16_280] : memref<2x104xf32, #tpu.memory_space<vmem>>, vector<1x16xf32>
    tpu.vector_store %arg4[%c0_279, %c16_280], %354 {strides = array<i32>} : memref<2x104xf32, #tpu.memory_space<vmem>>, vector<1x16xf32>,
    %c1_281 = arith.constant 1 : index
    %c0_282 = arith.constant 0 : index
    %356 = vector.load %arg9[%c1_281, %c0_282] : memref<10x128xf32, #tpu.memory_space<vmem>>, vector<1x3xf32>
    %c0_283 = arith.constant 0 : index
    %c83_284 = arith.constant 83 : index
    %357 = vector.load %arg4[%c0_283, %c83_284] : memref<2x104xf32, #tpu.memory_space<vmem>>, vector<1x3xf32>
    tpu.vector_store %arg4[%c0_283, %c83_284], %356 {strides = array<i32>} : memref<2x104xf32, #tpu.memory_space<vmem>>, vector<1x3xf32>,
    %c2_285 = arith.constant 2 : index
    %c3_286 = arith.constant 3 : index
    %358 = vector.load %arg9[%c2_285, %c3_286] : memref<10x128xf32, #tpu.memory_space<vmem>>, vector<1x16xf32>
    %c0_287 = arith.constant 0 : index
    %c32_288 = arith.constant 32 : index
    %359 = vector.load %arg4[%c0_287, %c32_288] : memref<2x104xf32, #tpu.memory_space<vmem>>, vector<1x16xf32>
    tpu.vector_store %arg4[%c0_287, %c32_288], %358 {strides = array<i32>} : memref<2x104xf32, #tpu.memory_space<vmem>>, vector<1x16xf32>,
    %c2_289 = arith.constant 2 : index
    %c0_290 = arith.constant 0 : index
    %360 = vector.load %arg9[%c2_289, %c0_290] : memref<10x128xf32, #tpu.memory_space<vmem>>, vector<1x3xf32>
    %c0_291 = arith.constant 0 : index
    %c86_292 = arith.constant 86 : index
    %361 = vector.load %arg4[%c0_291, %c86_292] : memref<2x104xf32, #tpu.memory_space<vmem>>, vector<1x3xf32>
    tpu.vector_store %arg4[%c0_291, %c86_292], %360 {strides = array<i32>} : memref<2x104xf32, #tpu.memory_space<vmem>>, vector<1x3xf32>,
    %c0_293 = arith.constant 0 : index
    %c0_294 = arith.constant 0 : index
    %362 = vector.load %arg6[%c0_293, %c0_294] : memref<6x3xf32, #tpu.memory_space<vmem>>, vector<1x3xf32>
    %c0_295 = arith.constant 0 : index
    %c95_296 = arith.constant 95 : index
    %363 = vector.load %arg4[%c0_295, %c95_296] : memref<2x104xf32, #tpu.memory_space<vmem>>, vector<1x3xf32>
    tpu.vector_store %arg4[%c0_295, %c95_296], %362 {strides = array<i32>} : memref<2x104xf32, #tpu.memory_space<vmem>>, vector<1x3xf32>,
    %c1_297 = arith.constant 1 : index
    %c0_298 = arith.constant 0 : index
    %364 = vector.load %arg6[%c1_297, %c0_298] : memref<6x3xf32, #tpu.memory_space<vmem>>, vector<1x3xf32>
    %c0_299 = arith.constant 0 : index
    %c98_300 = arith.constant 98 : index
    %365 = vector.load %arg4[%c0_299, %c98_300] : memref<2x104xf32, #tpu.memory_space<vmem>>, vector<1x3xf32>
    tpu.vector_store %arg4[%c0_299, %c98_300], %364 {strides = array<i32>} : memref<2x104xf32, #tpu.memory_space<vmem>>, vector<1x3xf32>,
    %c2_301 = arith.constant 2 : index
    %c0_302 = arith.constant 0 : index
    %366 = vector.load %arg6[%c2_301, %c0_302] : memref<6x3xf32, #tpu.memory_space<vmem>>, vector<1x3xf32>
    %c0_303 = arith.constant 0 : index
    %c101_304 = arith.constant 101 : index
    %367 = vector.load %arg4[%c0_303, %c101_304] : memref<2x104xf32, #tpu.memory_space<vmem>>, vector<1x3xf32>
    tpu.vector_store %arg4[%c0_303, %c101_304], %366 {strides = array<i32>} : memref<2x104xf32, #tpu.memory_space<vmem>>, vector<1x3xf32>,
    %c5_305 = arith.constant 5 : index
    %c3_306 = arith.constant 3 : index
    %368 = vector.load %arg9[%c5_305, %c3_306] : memref<10x128xf32, #tpu.memory_space<vmem>>, vector<1x16xf32>
    %c1_307 = arith.constant 1 : index
    %c0_308 = arith.constant 0 : index
    %369 = vector.load %arg4[%c1_307, %c0_308] : memref<2x104xf32, #tpu.memory_space<vmem>>, vector<1x16xf32>
    tpu.vector_store %arg4[%c1_307, %c0_308], %368 {strides = array<i32>} : memref<2x104xf32, #tpu.memory_space<vmem>>, vector<1x16xf32>,
    %c5_309 = arith.constant 5 : index
    %c0_310 = arith.constant 0 : index
    %370 = vector.load %arg9[%c5_309, %c0_310] : memref<10x128xf32, #tpu.memory_space<vmem>>, vector<1x3xf32>
    %c1_311 = arith.constant 1 : index
    %c80_312 = arith.constant 80 : index
    %371 = vector.load %arg4[%c1_311, %c80_312] : memref<2x104xf32, #tpu.memory_space<vmem>>, vector<1x3xf32>
    tpu.vector_store %arg4[%c1_311, %c80_312], %370 {strides = array<i32>} : memref<2x104xf32, #tpu.memory_space<vmem>>, vector<1x3xf32>,
    %c6_313 = arith.constant 6 : index
    %c3_314 = arith.constant 3 : index
    %372 = vector.load %arg9[%c6_313, %c3_314] : memref<10x128xf32, #tpu.memory_space<vmem>>, vector<1x16xf32>
    %c1_315 = arith.constant 1 : index
    %c16_316 = arith.constant 16 : index
    %373 = vector.load %arg4[%c1_315, %c16_316] : memref<2x104xf32, #tpu.memory_space<vmem>>, vector<1x16xf32>
    tpu.vector_store %arg4[%c1_315, %c16_316], %372 {strides = array<i32>} : memref<2x104xf32, #tpu.memory_space<vmem>>, vector<1x16xf32>,
    %c6_317 = arith.constant 6 : index
    %c0_318 = arith.constant 0 : index
    %374 = vector.load %arg9[%c6_317, %c0_318] : memref<10x128xf32, #tpu.memory_space<vmem>>, vector<1x3xf32>
    %c1_319 = arith.constant 1 : index
    %c83_320 = arith.constant 83 : index
    %375 = vector.load %arg4[%c1_319, %c83_320] : memref<2x104xf32, #tpu.memory_space<vmem>>, vector<1x3xf32>
    tpu.vector_store %arg4[%c1_319, %c83_320], %374 {strides = array<i32>} : memref<2x104xf32, #tpu.memory_space<vmem>>, vector<1x3xf32>,
    %c7_321 = arith.constant 7 : index
    %c3_322 = arith.constant 3 : index
    %376 = vector.load %arg9[%c7_321, %c3_322] : memref<10x128xf32, #tpu.memory_space<vmem>>, vector<1x16xf32>
    %c1_323 = arith.constant 1 : index
    %c32_324 = arith.constant 32 : index
    %377 = vector.load %arg4[%c1_323, %c32_324] : memref<2x104xf32, #tpu.memory_space<vmem>>, vector<1x16xf32>
    tpu.vector_store %arg4[%c1_323, %c32_324], %376 {strides = array<i32>} : memref<2x104xf32, #tpu.memory_space<vmem>>, vector<1x16xf32>,
    %c7_325 = arith.constant 7 : index
    %c0_326 = arith.constant 0 : index
    %378 = vector.load %arg9[%c7_325, %c0_326] : memref<10x128xf32, #tpu.memory_space<vmem>>, vector<1x3xf32>
    %c1_327 = arith.constant 1 : index
    %c86_328 = arith.constant 86 : index
    %379 = vector.load %arg4[%c1_327, %c86_328] : memref<2x104xf32, #tpu.memory_space<vmem>>, vector<1x3xf32>
    tpu.vector_store %arg4[%c1_327, %c86_328], %378 {strides = array<i32>} : memref<2x104xf32, #tpu.memory_space<vmem>>, vector<1x3xf32>,
    %c8_329 = arith.constant 8 : index
    %c3_330 = arith.constant 3 : index
    %380 = vector.load %arg9[%c8_329, %c3_330] : memref<10x128xf32, #tpu.memory_space<vmem>>, vector<1x16xf32>
    %c1_331 = arith.constant 1 : index
    %c48_332 = arith.constant 48 : index
    %381 = vector.load %arg4[%c1_331, %c48_332] : memref<2x104xf32, #tpu.memory_space<vmem>>, vector<1x16xf32>
    tpu.vector_store %arg4[%c1_331, %c48_332], %380 {strides = array<i32>} : memref<2x104xf32, #tpu.memory_space<vmem>>, vector<1x16xf32>,
    %c8_333 = arith.constant 8 : index
    %c0_334 = arith.constant 0 : index
    %382 = vector.load %arg9[%c8_333, %c0_334] : memref<10x128xf32, #tpu.memory_space<vmem>>, vector<1x3xf32>
    %c1_335 = arith.constant 1 : index
    %c89_336 = arith.constant 89 : index
    %383 = vector.load %arg4[%c1_335, %c89_336] : memref<2x104xf32, #tpu.memory_space<vmem>>, vector<1x3xf32>
    tpu.vector_store %arg4[%c1_335, %c89_336], %382 {strides = array<i32>} : memref<2x104xf32, #tpu.memory_space<vmem>>, vector<1x3xf32>,
    %c9_337 = arith.constant 9 : index
    %c3_338 = arith.constant 3 : index
    %384 = vector.load %arg9[%c9_337, %c3_338] : memref<10x128xf32, #tpu.memory_space<vmem>>, vector<1x16xf32>
    %c1_339 = arith.constant 1 : index
    %c64_340 = arith.constant 64 : index
    %385 = vector.load %arg4[%c1_339, %c64_340] : memref<2x104xf32, #tpu.memory_space<vmem>>, vector<1x16xf32>
    tpu.vector_store %arg4[%c1_339, %c64_340], %384 {strides = array<i32>} : memref<2x104xf32, #tpu.memory_space<vmem>>, vector<1x16xf32>,
    %c9_341 = arith.constant 9 : index
    %c0_342 = arith.constant 0 : index
    %386 = vector.load %arg9[%c9_341, %c0_342] : memref<10x128xf32, #tpu.memory_space<vmem>>, vector<1x3xf32>
    %c1_343 = arith.constant 1 : index
    %c92_344 = arith.constant 92 : index
    %387 = vector.load %arg4[%c1_343, %c92_344] : memref<2x104xf32, #tpu.memory_space<vmem>>, vector<1x3xf32>
    tpu.vector_store %arg4[%c1_343, %c92_344], %386 {strides = array<i32>} : memref<2x104xf32, #tpu.memory_space<vmem>>, vector<1x3xf32>,
    %c3_345 = arith.constant 3 : index
    %c0_346 = arith.constant 0 : index
    %388 = vector.load %arg6[%c3_345, %c0_346] : memref<6x3xf32, #tpu.memory_space<vmem>>, vector<1x3xf32>
    %c1_347 = arith.constant 1 : index
    %c95_348 = arith.constant 95 : index
    %389 = vector.load %arg4[%c1_347, %c95_348] : memref<2x104xf32, #tpu.memory_space<vmem>>, vector<1x3xf32>
    tpu.vector_store %arg4[%c1_347, %c95_348], %388 {strides = array<i32>} : memref<2x104xf32, #tpu.memory_space<vmem>>, vector<1x3xf32>,
    %c4_349 = arith.constant 4 : index
    %c0_350 = arith.constant 0 : index
    %390 = vector.load %arg6[%c4_349, %c0_350] : memref<6x3xf32, #tpu.memory_space<vmem>>, vector<1x3xf32>
    %c1_351 = arith.constant 1 : index
    %c98_352 = arith.constant 98 : index
    %391 = vector.load %arg4[%c1_351, %c98_352] : memref<2x104xf32, #tpu.memory_space<vmem>>, vector<1x3xf32>
    tpu.vector_store %arg4[%c1_351, %c98_352], %390 {strides = array<i32>} : memref<2x104xf32, #tpu.memory_space<vmem>>, vector<1x3xf32>,
    %c5_353 = arith.constant 5 : index
    %c0_354 = arith.constant 0 : index
    %392 = vector.load %arg6[%c5_353, %c0_354] : memref<6x3xf32, #tpu.memory_space<vmem>>, vector<1x3xf32>
    %c1_355 = arith.constant 1 : index
    %c101_356 = arith.constant 101 : index
    %393 = vector.load %arg4[%c1_355, %c101_356] : memref<2x104xf32, #tpu.memory_space<vmem>>, vector<1x3xf32>
    tpu.vector_store %arg4[%c1_355, %c101_356], %392 {strides = array<i32>} : memref<2x104xf32, #tpu.memory_space<vmem>>, vector<1x3xf32>,
    return
  }
}

</mosaic_0001>

<bundles_post_ra>
// kernel: projected_conjugated_forward.1
= control target key start
LH: loop header
LB: loop body
LE: loop exit
PB: predicated region body
PF: predicated region fallthrough
CT: control target
= control target key end

     0   :  { %9 = vsyncpa [#allocation9], 0  ;;  %s6583_s0 = inlined_call_operand.vmem [shape: f32[2,104], index: 0, kind: input, shape index: {}]   ;;  %s6584_s1 = inlined_call_operand.vmem [shape: f32[2,1], index: 1, kind: input, shape index: {}]   ;;  %s6585_s2 = inlined_call_operand.hbm [shape: bf16[1260,256], index: 2, kind: input, shape index: {}]   ;;  %s6586_s3 = inlined_call_operand.hbm [shape: f32[122,128], index: 3, kind: input, shape index: {}]   ;;  %s6587_s4 = inlined_call_operand.hbm [shape: f32[2,104], index: 4, kind: output, shape index: {}]  }
   0x1   :  { %10 = vsyncpa [#allocation12], 0 }
   0x2   :  { %11 = vsyncpa [#allocation10], 0  ;;  %s5452_s15 = smov [#allocation8]  }
   0x3   :  { %s21_s16 = sshll.u32 %s5452_s15, 4  ;;  %s22_s16 = int_to_ptr.vmem [resolvable:$true] %s21_s16 }
   0x4   :  { %s5394_s17 = scalar_lea.vmem %s22_s16, 20224  ;;  %p5399_p1 = scmp.lt.s32.totalorder %s22_s16, %s22_s16 }
   0x5   :  { %p5395_p0 = scmp.ne.s32.totalorder %s22_s16, %s5394_s17  ;;  %p5400_p2 = scmp.lt.s32.totalorder %s5394_s17, %s5394_s17 }
   0x7   :  { %p5401_p3 = por %p5400_p2, %p5399_p1 }
   0x9   :  { %p5402_p4 = pnand %p5401_p3, %p5395_p0 }
   0xb   :  { %5405 = shalt.err (!%p5402_p4)
}
   0xc   :  { %s5453_s18 = smov 128   ;;  %s5454_s19 = smov 8  }
   0xd   :  { %27 = dma.hbm_to_vmem [thread:$0]  %s6585_s2, 20224, %s22_s16, [#allocation9], %s5453_s18, %s5453_s18, %s5454_s19  }
   0xe   :  { %s5455_s22 = smov [#allocation11]  }
   0xf   :  { %s33_s23 = sshll.u32 %s5455_s22, 4  ;;  %s34_s23 = int_to_ptr.vmem [resolvable:$true] %s33_s23 }
  0x10   :  { %s5414_s24 = scalar_lea.vmem %s34_s23, 2048  ;;  %p5419_p6 = scmp.lt.s32.totalorder %s34_s23, %s34_s23 }
  0x11   :  { %p5415_p5 = scmp.ne.s32.totalorder %s34_s23, %s5414_s24  ;;  %p5420_p7 = scmp.lt.s32.totalorder %s5414_s24, %s5414_s24 }
  0x13   :  { %p5421_p8 = por %p5420_p7, %p5419_p6 }
  0x15   :  { %p5422_p9 = pnand %p5421_p8, %p5415_p5 }
  0x17   :  { %5425 = shalt.err (!%p5422_p9)
}
  0x18   :  { %39 = dma.hbm_to_vmem [thread:$0]  %s6586_s3, 2048, %s34_s23, [#allocation12], %s5453_s18, %s5453_s18, %s5454_s19  }
  0x19   :  { %5446 = dma.done.wait [#allocation9], 20224  }
  0x1a   :  { %5447 = vsyncadd [#allocation9], 4294947072 }
  0x1b   :  { %5448 = dma.done.wait [#allocation12], 2048  }
  0x1c   :  { %5449 = vsyncadd [#allocation12], 4294965248  ;;  %v162_v0 = vld [vmem:[%s6583_s0 + $0x1] sm:$0x1]  ;;  %s5456_s30 = smov 55   ;;  %s5457_s5 = smov 80  }
  0x1d   :  { %v156_v1 = vld [vmem:[%s6583_s0 + $0x1] sm:$0x1]  ;;  %164 = vrot.lane.b32.xlu1 %v162_v0, %s5456_s30  ;;  %s5458_s9 = smov 52   ;;  %s5459_s10 = smov 64   ;;  %vm6591_vm0 = vcmask 122880   ;;  %v5464_v20 = vmov 0.0  }
  0x1e   :  { %158 = vrot.lane.b32.xlu0 %v156_v1, %s5457_s5  ;;  %v174_v2 = vld [vmem:[%s6583_s0 + $0x1] sm:$0x1]  ;;  %v69_v4 = vld [vmem:[%s6583_s0] sm:$0x1]  ;;  %s5460_s21 = smov 96   ;;  %s5461_s22 = smov 112   ;;  %4602 = vmatprep.subr.mxu1 %v5464_v20 }
  0x1f   :  { %v168_v3 = vld [vmem:[%s6583_s0 + $0x1] sm:$0x1]  ;;  %v57_v5 = vld [vmem:[%s6583_s0] sm:$0x1]  ;;  %s5462_s13 = smov 61   ;;  %s5463_s18 = smov 58   ;;  %4597 = vmatprep.subr.mxu0 %v5464_v20 }
  0x20   :  { %v47_v6 = vld [vmem:[%s6583_s0] sm:$0x1]  ;;  %v144_v9 = vld [vmem:[%s6583_s0 + $0x1] sm:$0x1]  ;;  %277 = vst [vmem:[#allocation5] sm:$0x3] %v5464_v20 }
  0x21   :  { %176 = vrot.lane.b32.xlu1 %v174_v2, %s5458_s9  ;;  %49 = vst.msk [vmem:[#allocation2] sm:$0x1] %vm6591_vm0, %v47_v6  ;;  %v93_v7 = vld [vmem:[%s6583_s0] sm:$0x1]  ;;  %v132_v10 = vld [vmem:[%s6583_s0 + $0x1] sm:$0x1] }
  0x22   :  { %170 = vrot.lane.b32.xlu0 %v168_v3, %s5459_s10  ;;  %v81_v8 = vld [vmem:[%s6583_s0] sm:$0x1]  ;;  %v124_v11 = vld [vmem:[%s6583_s0 + $0x1] sm:$0x1]  ;;  %vm55_vm1 = vcmask 147584   ;;  %vm5465_vm2 = vmmov 0  }
  0x23   :  { %125 = vst.msk [vmem:[#allocation2 + $0x5] sm:$0x1] %vm6591_vm0, %v124_v11  ;;  %v63_v12 = vld [vmem:[%s6583_s0] sm:$0x1]  ;;  %v126_v16 = vld [vmem:[%s6583_s0 + $0x1] sm:$0x1]  ;;  %4606 = vmatprep.mubr.msk.f32.mxu1 %vm5465_vm2, %v5464_v20  ;;  %4599 = vmatprep.mubr.msk.f32.mxu0 %vm5465_vm2, %v5464_v20 }
  0x24   :  { %v50_v13 = vld [vmem:[%s6583_s0] sm:$0x1]  ;;  %v150_v18 = vld [vmem:[%s6583_s0 + $0x1] sm:$0x1]  ;;  %s5466_s26 = smov 33   ;;  %s5467_s27 = smov 30  }
  0x25   :  { %71 = vrot.lane.b32.xlu1 %v69_v4, %s5460_s21  ;;  %v87_v14 = vld [vmem:[%s6583_s0] sm:$0x1]  ;;  %v138_v19 = vld [vmem:[%s6583_s0 + $0x1] sm:$0x1]  ;;  %s5468_s6 = smov 27   ;;  %vm345_vm3 = vcmask 1041408  }
  0x26   :  { %59 = vrot.lane.b32.xlu0 %v57_v5, %s5461_s22  ;;  %v75_v15 = vld [vmem:[%s6583_s0] sm:$0x1]  ;;  %v180_v45 = vld [vmem:[%s6583_s0 + $0x1] sm:$0x1]  ;;  %v317_v49 = vld [vmem:[#allocation11 + $0x14] sm:$0xff]  ;;  %vm329_vm4 = vcmask 80896  }
  0x27   :  { %v99_v17 = vld [vmem:[%s6583_s0] sm:$0x1]  ;;  %v186_v46 = vld [vmem:[%s6583_s0 + $0x1] sm:$0x1]  ;;  %vm6592_vm5 = vcmask 16384   ;;  %v319_v54 = vld [vmem:[#allocation11 + $0x24] sm:$0xff] }
  0x28   :  { %v105_v42 = vld [vmem:[%s6583_s0] sm:$0x1]  ;;  %v192_v47 = vld [vmem:[%s6583_s0 + $0x1] sm:$0x1]  ;;  %v320_v57 = vld [vmem:[#allocation11 + $0x2c] sm:$0xff]  ;;  %vm201_vm6 = vcmask 23552  }
  0x29   :  { %95 = vrot.lane.b32.xlu1 %v93_v7, %s5459_s10  ;;  %v112_v43 = vld [vmem:[%s6583_s0] sm:$0x1]  ;;  %v321_v60 = vld [vmem:[#allocation11 + $0x34] sm:$0xff]  ;;  %v518_v62 = vld [vmem:[#allocation11 + $0x5] sm:$0x7]  ;;  %vm539_vm7 = vcmask 1042432  }
  0x2a   :  { %83 = vrot.lane.b32.xlu0 %v81_v8, %s5457_s5  ;;  %v118_v44 = vld [vmem:[%s6583_s0] sm:$0x1]  ;;  %s5471_s14 = smov 99   ;;  %s5472_s15 = smov 102  }
  0x2b   :  { %v318_v51 = vld [vmem:[#allocation11 + $0x1c] sm:$0xff]  ;;  %s5480_s16 = smov 125   ;;  %s5481_s17 = smov 122  }
  0x2c   :  { %v1278_v63 = vld [vmem:[%s6584_s1] sm:$0x3]  ;;  %s5470_s1 = smov 93   ;;  %s5483_s19 = smov 83  }
  0x2d   :  { %146 = vrot.lane.b32.xlu1 %v144_v9, %s5460_s21  ;;  %s5484_s20 = smov 29   ;;  %s5485_s23 = smov 86  }
  0x2e   :  { %134 = vrot.lane.b32.xlu0 %v132_v10, %s5461_s22  ;;  %s5486_s24 = smov 45   ;;  %s5492_s25 = smov [#allocation13]  }
  0x31   :  { %65 = vrot.lane.b32.xlu1 %v63_v12, %s5462_s13 }
  0x32   :  { %52 = vrot.lane.b32.xlu0 %v50_v13, %s5459_s10 }
  0x35   :  { %89 = vrot.lane.b32.xlu1 %v87_v14, %s5456_s30  ;;  %s5488_s30 = smov 92  }
  0x36   :  { %77 = vrot.lane.b32.xlu0 %v75_v15, %s5463_s18 }
  0x39   :  { %128 = vrot.lane.b32.xlu1 %v126_v16, %s5459_s10  ;;  %s5491_s10 = smov 101  }
  0x3a   :  { %101 = vrot.lane.b32.xlu0 %v99_v17, %s5458_s9  ;;  %s5490_s9 = smov 98  }
  0x3d   :  { %152 = vrot.lane.b32.xlu1 %v150_v18, %s5463_s18  ;;  %s5482_s18 = smov 13  }
  0x3e   :  { %140 = vrot.lane.b32.xlu0 %v138_v19, %s5462_s13 }
  0x8f   :  { %v165_v21 = vpop.permute.xlu1 %164 }
  0x90   :  { %v159_v22 = vpop.permute.xlu0 %158 }
  0x91   :  { %161 = vst.msk [vmem:[#allocation2 + $0x8] sm:$0x1] %vm6591_vm0, %v159_v22 }
  0x92   :  { %167 = vst.msk [vmem:[#allocation2 + $0x8] sm:$0x1] %vm55_vm1, %v165_v21 }
  0x93   :  { %v177_v23 = vpop.permute.xlu1 %176 }
  0x94   :  { %v171_v24 = vpop.permute.xlu0 %170 }
  0x95   :  { %173 = vst.msk [vmem:[#allocation2 + $0x9] sm:$0x1] %vm6591_vm0, %v171_v24 }
  0x96   :  { %179 = vst.msk [vmem:[#allocation2 + $0x9] sm:$0x1] %vm55_vm1, %v177_v23 }
  0x97   :  { %v72_v25 = vpop.permute.xlu1 %71 }
  0x98   :  { %v60_v26 = vpop.permute.xlu0 %59  ;;  %74 = vst.msk [vmem:[#allocation2 + $0x2] sm:$0x1] %vm6591_vm0, %v72_v25 }
  0x99   :  { %62 = vst.msk [vmem:[#allocation2 + $0x1] sm:$0x1] %vm6591_vm0, %v60_v26 }
  0x9b   :  { %v96_v27 = vpop.permute.xlu1 %95 }
  0x9c   :  { %v84_v28 = vpop.permute.xlu0 %83  ;;  %98 = vst.msk [vmem:[#allocation2 + $0x4] sm:$0x1] %vm6591_vm0, %v96_v27 }
  0x9d   :  { %86 = vst.msk [vmem:[#allocation2 + $0x3] sm:$0x1] %vm6591_vm0, %v84_v28  ;;  %v5613_v29 = vld [vmem:[#allocation2 + $0x8] sm:$0x3] }
  0x9e   :  { %326 = vrot.lane.b32.xlu0 %v5613_v29, %s5461_s22 }
  0x9f   :  { %v147_v30 = vpop.permute.xlu1 %146 }
  0xa0   :  { %v135_v31 = vpop.permute.xlu0 %134  ;;  %149 = vst.msk [vmem:[#allocation2 + $0x7] sm:$0x1] %vm6591_vm0, %v147_v30 }
  0xa1   :  { %137 = vst.msk [vmem:[#allocation2 + $0x6] sm:$0x1] %vm6591_vm0, %v135_v31 }
  0xa2   :  { %107 = vrot.lane.b32.xlu0 %v105_v42, %s5466_s26 }
  0xa3   :  { %v66_v32 = vpop.permute.xlu1 %65 }
  0xa4   :  { %v53_v33 = vpop.permute.xlu0 %52  ;;  %68 = vst.msk [vmem:[#allocation2 + $0x1] sm:$0x1] %vm55_vm1, %v66_v32 }
  0xa5   :  { %56 = vst.msk [vmem:[#allocation2] sm:$0x1] %vm55_vm1, %v53_v33 }
  0xa6   :  { %120 = vrot.lane.b32.xlu0 %v118_v44, %s5468_s6 }
  0xa7   :  { %v90_v34 = vpop.permute.xlu1 %89 }
  0xa8   :  { %v78_v35 = vpop.permute.xlu0 %77  ;;  %92 = vst.msk [vmem:[#allocation2 + $0x3] sm:$0x1] %vm55_vm1, %v90_v34 }
  0xa9   :  { %80 = vst.msk [vmem:[#allocation2 + $0x2] sm:$0x1] %vm55_vm1, %v78_v35 }
  0xaa   :  { %188 = vrot.lane.b32.xlu0 %v186_v46, %s5467_s27 }
  0xab   :  { %v129_v36 = vpop.permute.xlu1 %128 }
  0xac   :  { %v102_v37 = vpop.permute.xlu0 %101  ;;  %131 = vst.msk [vmem:[#allocation2 + $0x5] sm:$0x1] %vm55_vm1, %v129_v36 }
  0xad   :  { %104 = vst.msk [vmem:[#allocation2 + $0x4] sm:$0x1] %vm55_vm1, %v102_v37 }
  0xaf   :  { %v153_v38 = vpop.permute.xlu1 %152 }
  0xb0   :  { %v141_v39 = vpop.permute.xlu0 %140  ;;  %155 = vst.msk [vmem:[#allocation2 + $0x7] sm:$0x1] %vm55_vm1, %v153_v38 }
  0xb1   :  { %143 = vst.msk [vmem:[#allocation2 + $0x6] sm:$0x1] %vm55_vm1, %v141_v39 }
  0xb8   :  { %v5631_v40 = vld [vmem:[#allocation2] sm:$0xff] }
  0xb9   :  { %324 = vrot.lane.b32.xlu1 %v5631_v40, %s5461_s22  ;;  %v1365_v41 = vpack.c.bf16 %v5613_v29, %v5631_v40 }
  0xbd   :  { %114 = vrot.lane.b32.xlu1 %v112_v43, %s5467_s27 }
  0xc1   :  { %182 = vrot.lane.b32.xlu1 %v180_v45, %s5466_s26  ;;  %s4169_s26 = sshll.u32 %s5492_s25, 4  ;;  %s4170_s26 = int_to_ptr.vmem [resolvable:$true] %s4169_s26 }
  0xc2   :  { %s5426_s27 = scalar_lea.vmem %s4170_s26, 32  ;;  %p5431_p11 = scmp.lt.s32.totalorder %s4170_s26, %s4170_s26 }
  0xc3   :  { %p5427_p10 = scmp.ne.s32.totalorder %s4170_s26, %s5426_s27  ;;  %p5432_p12 = scmp.lt.s32.totalorder %s5426_s27, %s5426_s27 }
  0xc5   :  { %194 = vrot.lane.b32.xlu1 %v192_v47, %s5468_s6  ;;  %p5433_p13 = por %p5432_p12, %p5431_p11 }
  0xc7   :  { %p5434_p0 = pnand %p5433_p13, %p5427_p10 }
 0x110   :  { %v327_v48 = vpop.permute.xlu0 %326 }
 0x111   :  { %4603 = vmatpush3.msk.msra.mxu1 %vm345_vm3, %v327_v48 }
 0x112   :  { %4604 = vmatprep.subr.mxu1 %v5464_v20 }
 0x114   :  { %v108_v52 = vpop.permute.xlu0 %107 }
 0x115   :  { %111 = vst.msk [vmem:[#allocation3] sm:$0x1] %vm6592_vm5, %v108_v52 }
 0x118   :  { %v121_v55 = vpop.permute.xlu0 %120 }
 0x119   :  { %123 = vst.msk [vmem:[#allocation3 + $0x2] sm:$0x1] %vm6592_vm5, %v121_v55 }
 0x11c   :  { %v189_v58 = vpop.permute.xlu0 %188 }
 0x11d   :  { %191 = vst.msk [vmem:[#allocation3 + $0x4] sm:$0x1] %vm6592_vm5, %v189_v58 }
 0x12b   :  { %v325_v50 = vpop.permute.xlu1 %324 }
 0x12c   :  { %4605 = vmatpush3.msra.mxu1 %v325_v50 }
 0x12d   :  { %4607 = vmatmul.mubr.msk.f32.vlgmr.msra.gmra.mxu1 %vm329_vm4, %v317_v49  ;;  %4638 = vmatprep.subr.mxu1 %v5464_v20 }
 0x12e   :  { %4609 = vmatprep.mubr.msk.f32.mxu1 %vm5465_vm2, %v5464_v20 }
 0x12f   :  { %v115_v53 = vpop.permute.xlu1 %114 }
 0x130   :  { %117 = vst.msk [vmem:[#allocation3 + $0x1] sm:$0x1] %vm6592_vm5, %v115_v53 }
 0x131   :  { %4610 = vmatmul.mubr.msk.f32.gmra.mxu1 %vm329_vm4, %v318_v51 }
 0x132   :  { %4612 = vmatprep.mubr.msk.f32.mxu1 %vm5465_vm2, %v5464_v20 }
 0x133   :  { %v183_v56 = vpop.permute.xlu1 %182 }
 0x134   :  { %185 = vst.msk [vmem:[#allocation3 + $0x3] sm:$0x1] %vm6592_vm5, %v183_v56 }
 0x135   :  { %4613 = vmatmul.mubr.msk.f32.gmra.mxu1 %vm329_vm4, %v319_v54 }
 0x136   :  { %4615 = vmatprep.mubr.msk.f32.mxu1 %vm5465_vm2, %v5464_v20 }
 0x137   :  { %v195_v59 = vpop.permute.xlu1 %194 }
 0x138   :  { %197 = vst.msk [vmem:[#allocation3 + $0x5] sm:$0x1] %vm6592_vm5, %v195_v59 }
 0x139   :  { %4616 = vmatmul.mubr.msk.f32.gmra.mxu1 %vm329_vm4, %v320_v57 }
 0x13a   :  { %4618 = vmatprep.mubr.msk.f32.mxu1 %vm5465_vm2, %v5464_v20 }
 0x13d   :  { %4619 = vmatmul.mubr.msk.f32.gmra.mxu1 %vm329_vm4, %v321_v60 }
 0x13e   :  { %4640 = vmatprep.mubr.msk.f32.mxu1 %vm5465_vm2, %v5464_v20 }
 0x13f   :  { %v200_v61 = vld [vmem:[#allocation3] sm:$0x3f] }
 0x140   :  { %4598 = vmatpush3.xpose.msk.msra.mxu0 %vm201_vm6, %v200_v61 }
 0x141   :  { %4621 = vmatprep.subr.mxu0 %v5464_v20 }
 0x143   :  { %4600 = vmatmul.mubr.msk.f32.vlgmr.msra.gmra.mxu0 %vm201_vm6, %v200_v61 }
 0x144   :  { %4623 = vmatprep.mubr.msk.f32.mxu0 %vm5465_vm2, %v5464_v20  ;;  %4622 = vmatpush3.msk.msra.mxu0 %vm539_vm7, %v518_v62  ;;  %vm275_vm7 = vcmask 46080  }
 0x145   :  { %4655 = vmatprep.subr.msk.mxu0 %vm345_vm3, %v1278_v63 }
 0x1ed   :  { %v414_v0 = vpop.f32.mrf.mxu1 }
 0x1ee   :  { %v415_v1 = vadd.f32 0.5, %v414_v0 }
 0x1ef   :  { %v4608_v2 = vpop.f32.mrf.mxu1 }
 0x1f0   :  { %v438_v3 = vand.u32 2147483647, %v415_v1  ;;  %v446_v16 = vand.u32 2147483648, %v415_v1 }
 0x1f1   :  { %v419_v4 = vpop.f32.mrf.mxu1 }
 0x1f2   :  { %v441_v5 = vfloor.f32 %v438_v3  ;;  %v420_v6 = vadd.f32 0.5, %v419_v4 }
 0x1f3   :  { %v4611_v7 = vpop.f32.mrf.mxu1 }
 0x1f4   :  { %v442_v8 = vsub.f32 %v438_v3, %v441_v5  ;;  %v448_v9 = vand.u32 2147483647, %v420_v6  ;;  %v456_v25 = vand.u32 2147483648, %v420_v6  ;;  %v1276_v7 = vld [vmem:[#allocation11 + $0x64] sm:$0xff] }
 0x1f5   :  { %v424_v10 = vpop.f32.mrf.mxu1 }
 0x1f6   :  { %vm443_vm8 = vcmp.eq.f32.partialorder %v442_v8, 1.0  ;;  %v451_v11 = vfloor.f32 %v448_v9  ;;  %v425_v12 = vadd.f32 0.5, %v424_v10 }
 0x1f7   :  { %v444_v13 = vsel %vm443_vm8, 0.0, %v442_v8  ;;  %v4614_v14 = vpop.f32.mrf.mxu1  ;;  %v1277_v8 = vld [vmem:[#allocation11 + $0x6c] sm:$0x3] }
 0x1f8   :  { %v445_v15 = vand.u32 2147483647, %v444_v13  ;;  %v452_v17 = vsub.f32 %v448_v9, %v451_v11  ;;  %v458_v18 = vand.u32 2147483647, %v425_v12  ;;  %v466_v42 = vand.u32 2147483648, %v425_v12 }
 0x1f9   :  { %v429_v19 = vpop.f32.mrf.mxu1  ;;  %v5088_v9 = vld [vmem:[#allocation8] ss:$8 sps:$4 sm:$0xff]  }
 0x1fa   :  { %v447_v21 = vor.u32 %v446_v16, %v445_v15  ;;  %vm453_vm9 = vcmp.eq.f32.partialorder %v452_v17, 1.0  ;;  %v461_v22 = vfloor.f32 %v458_v18  ;;  %v430_v23 = vadd.f32 0.5, %v429_v19 }
 0x1fb   :  { %v454_v24 = vsel %vm453_vm9, 0.0, %v452_v17  ;;  %v4617_v26 = vpop.f32.mrf.mxu1  ;;  %v6588_v16 = vmov 0  }
 0x1fc   :  { %vm488_vm10 = vcmp.ne.f32.partialorder %v447_v21, 0.0  ;;  %vm493_vm11 = vcmp.lt.f32.partialorder %v447_v21, 0.0  ;;  %v503_v27 = vadd.f32 1.0, %v447_v21  ;;  %v455_v28 = vand.u32 2147483647, %v454_v24  ;;  %5086 = vset.pattern.permute.xlu0 %v6588_v16  ;;  %5087 = vset.pattern.permute.xlu1 %v6588_v16 }
 0x1fd   :  { %vm498_vm12 = vmand %vm493_vm11, %vm488_vm10  ;;  %v462_v30 = vsub.f32 %v458_v18, %v461_v22  ;;  %v468_v31 = vand.u32 2147483647, %v430_v23  ;;  %v434_v32 = vpop.f32.mrf.mxu1  ;;  %v476_v51 = vand.u32 2147483648, %v430_v23 }
 0x1fe   :  { %v457_v33 = vor.u32 %v456_v25, %v455_v28  ;;  %v435_v34 = vadd.f32 0.5, %v434_v32  ;;  %v508_v35 = vsel %vm498_vm12, %v503_v27, %v447_v21  ;;  %v4228_v32 = vld [vmem:[#allocation11] ss:$0 sm:$0xff] }
 0x1ff   :  { %vm463_vm13 = vcmp.eq.f32.partialorder %v462_v30, 1.0  ;;  %v471_v36 = vfloor.f32 %v468_v31  ;;  %v4620_v37 = vpop.f32.mrf.mxu1  ;;  %v4187_v38 = vadd.f32 -0.5, %v508_v35 }
 0x200   :  { %v464_v39 = vsel %vm463_vm13, 0.0, %v462_v30  ;;  %v478_v43 = vand.u32 2147483647, %v435_v34  ;;  %vm489_vm14 = vcmp.ne.f32.partialorder %v457_v33, 0.0  ;;  %vm494_vm15 = vcmp.lt.f32.partialorder %v457_v33, 0.0 }
 0x201   :  { %v465_v44 = vand.u32 2147483647, %v464_v39  ;;  %v472_v45 = vsub.f32 %v468_v31, %v471_v36  ;;  %4624 = vmatmul.mubr.msk.f32.vlgmr.msra.gmra.mxu0 %vm201_vm6, %v4187_v38  ;;  %v504_v46 = vadd.f32 1.0, %v457_v33  ;;  %vm499_vm1 = vmand %vm494_vm15, %vm489_vm14  ;;  %v486_v62 = vand.u32 2147483648, %v435_v34 }
 0x202   :  { %v481_v47 = vfloor.f32 %v478_v43  ;;  %4626 = vmatprep.mubr.msk.f32.mxu0 %vm5465_vm2, %v5464_v20  ;;  %4656 = vmatpush3.msk.msra.mxu0 %vm345_vm3, %v1278_v63 }
 0x203   :  { %v467_v48 = vor.u32 %v466_v42, %v465_v44  ;;  %vm473_vm8 = vcmp.eq.f32.partialorder %v472_v45, 1.0  ;;  %v509_v49 = vsel %vm499_vm1, %v504_v46, %v457_v33  ;;  %4660 = vmatprep.subr.bf16.mxu0 %v5464_v20  ;;  %v271_v54 = vpop.f32.mrf.mxu0 }
 0x204   :  { %v474_v50 = vsel %vm473_vm8, 0.0, %v472_v45  ;;  %v482_v52 = vsub.f32 %v478_v43, %v481_v47  ;;  %v4188_v53 = vadd.f32 -0.5, %v509_v49  ;;  %276 = vst.msk [vmem:[#allocation4] sm:$0x3f] %vm275_vm7, %v271_v54 }
 0x205   :  { %v475_v55 = vand.u32 2147483647, %v474_v50  ;;  %vm490_vm9 = vcmp.ne.f32.partialorder %v467_v48, 0.0  ;;  %vm495_vm10 = vcmp.lt.f32.partialorder %v467_v48, 0.0  ;;  %v505_v56 = vadd.f32 1.0, %v467_v48  ;;  %v4601_v57 = vpop.f32.mrf.mxu0 }
 0x206   :  { %vm483_vm11 = vcmp.eq.f32.partialorder %v482_v52, 1.0  ;;  %4627 = vmatmul.mubr.msk.f32.gmra.mxu0 %vm201_vm6, %v4188_v53  ;;  %vm500_vm12 = vmand %vm495_vm10, %vm490_vm9  ;;  %vm1159_vm10 = vcmask 15360   ;;  %v5091_v57 = vld [vmem:[#allocation8 + $0x84] ss:$8 sps:$4 sm:$0xff]  }
 0x207   :  { %v477_v58 = vor.u32 %v476_v51, %v475_v55  ;;  %v484_v59 = vsel %vm483_vm11, 0.0, %v482_v52  ;;  %4629 = vmatprep.mubr.msk.f32.mxu0 %vm5465_vm2, %v5464_v20  ;;  %v510_v60 = vsel %vm500_vm12, %v505_v56, %v467_v48  ;;  %vm1389_vm11 = vcmask 130048  }
 0x208   :  { %v485_v61 = vand.u32 2147483647, %v484_v59  ;;  %v4189_v63 = vadd.f32 -0.5, %v510_v60  ;;  %vm297_vm12 = vcmask 852784   ;;  %v5089_v59 = vld [vmem:[#allocation8 + $0x80] ss:$8 sps:$4 sm:$0xff]  }
 0x209   :  { %vm491_vm13 = vcmp.ne.f32.partialorder %v477_v58, 0.0  ;;  %vm496_vm14 = vcmp.lt.f32.partialorder %v477_v58, 0.0  ;;  %v506_v0 = vadd.f32 1.0, %v477_v58 }
 0x20a   :  { %v487_v1 = vor.u32 %v486_v62, %v485_v61  ;;  %4630 = vmatmul.mubr.msk.f32.gmra.mxu0 %vm201_vm6, %v4189_v63  ;;  %vm501_vm15 = vmand %vm496_vm14, %vm491_vm13  ;;  %v5094_v61 = vld [vmem:[#allocation8 + $0x74] ss:$8 sps:$4 sm:$0xff]   ;;  %v1447_v62 = vld [vmem:[#allocation11 + $0x76] sm:$0x3] }
 0x20b   :  { %4632 = vmatprep.mubr.msk.f32.mxu0 %vm5465_vm2, %v5464_v20  ;;  %v511_v2 = vsel %vm501_vm15, %v506_v0, %v477_v58  ;;  %v299_v10 = vld [vmem:[#allocation4 + $0x3] sm:$0x1]  ;;  %v285_v11 = vld [vmem:[#allocation4 + $0x1] sm:$0x1]  ;;  %v278_v12 = vld [vmem:[#allocation4] sm:$0x1] }
 0x20c   :  { %v4190_v3 = vadd.f32 -0.5, %v511_v2  ;;  %vm492_vm1 = vcmp.ne.f32.partialorder %v487_v1, 0.0  ;;  %vm497_vm8 = vcmp.lt.f32.partialorder %v487_v1, 0.0  ;;  %v507_v4 = vadd.f32 1.0, %v487_v1  ;;  %v292_v13 = vld [vmem:[#allocation4 + $0x2] sm:$0x1] }
 0x20d   :  { %vm502_vm9 = vmand %vm497_vm8, %vm492_vm1  ;;  %v305_v14 = vld [vmem:[#allocation4 + $0x4] sm:$0x1]  ;;  %v311_v15 = vld [vmem:[#allocation4 + $0x5] sm:$0x1] }
 0x20e   :  { %4633 = vmatmul.mubr.msk.f32.gmra.mxu0 %vm201_vm6, %v4190_v3  ;;  %v512_v5 = vsel %vm502_vm9, %v507_v4, %v487_v1  ;;  %3907 = vst.msk [vmem:[#allocation4] sm:$0x3f] %vm275_vm7, %v5464_v20  ;;  %vm290_vm7 = vcmask 828184   ;;  %v1153_v58 = vld [vmem:[#allocation11 + $0x3c] sm:$0xff]  ;;  %v1154_v63 = vld [vmem:[#allocation11 + $0x44] sm:$0xff]  ;;  %v1446_v2 = vld [vmem:[#allocation11 + $0x6e] sm:$0xff] }
 0x20f   :  { %4635 = vmatprep.mubr.msk.f32.mxu0 %vm5465_vm2, %v5464_v20  ;;  %v4191_v6 = vadd.f32 -0.5, %v512_v5  ;;  %v5092_v0 = vld [vmem:[#allocation8 + $0x70] ss:$8 sps:$4 sm:$0xff]   ;;  %v5097_v1 = vld [vmem:[#allocation8 + $0x64] ss:$8 sps:$4 sm:$0xff]   ;;  %v1155_v3 = vld [vmem:[#allocation11 + $0x4c] sm:$0xff] }
 0x210   :  { %v5095_v4 = vld [vmem:[#allocation8 + $0x60] ss:$8 sps:$4 sm:$0xff]   ;;  %v5100_v5 = vld [vmem:[#allocation8 + $0x54] ss:$8 sps:$4 sm:$0xff]  }
 0x212   :  { %4636 = vmatmul.mubr.msk.f32.gmra.mxu0 %vm201_vm6, %v4191_v6  ;;  %vm283_vm6 = vcmask 803584   ;;  %v1156_v6 = vld [vmem:[#allocation11 + $0x54] sm:$0xff] }
 0x213   :  { %4657 = vmatprep.mubr.msk.f32.mxu0 %vm1159_vm10, %v1276_v7  ;;  %v5098_v7 = vld [vmem:[#allocation8 + $0x50] ss:$8 sps:$4 sm:$0xff]  }
 0x216   :  { %4658 = vmatmul.mubr.msk.f32.vlgmr.msra.gmra.mxu0 %vm1159_vm10, %v1277_v8  ;;  %v5103_v8 = vld [vmem:[#allocation8 + $0x44] ss:$8 sps:$4 sm:$0xff]  }
 0x217   :  { %4661 = vmatpush3.bf16.msra.mxu0 %v5088_v9  ;;  %4662 = vmatprep.mubr.msk.bf16.mxu0 %vm5465_vm2, %v5464_v20  ;;  %v5758_v9 = vld [vmem:[#allocation11 + $0x4] ss:$0 sm:$0xff] }
 0x218   :  { %4680 = vmatprep.subr.bf16.mxu0 %v5464_v20 }
 0x21a   :  { %4663 = vmatmul.mubr.msk.bf16.vlgmr.msra.gmra.mxu0 %vm1389_vm11, %v1365_v41 }
 0x21b   :  { %4682 = vmatprep.mubr.msk.bf16.mxu0 %vm5465_vm2, %v5464_v20 }
 0x2c1   :  { %v5718_v17 = vpop.f32.mrf.mxu0 }
 0x2c3   :  { %v4625_v29 = vpop.f32.mrf.mxu0 }
 0x2c6   :  { %v5720_v40 = vpop.f32.mrf.mxu0 }
 0x2c8   :  { %v4628_v41 = vpop.f32.mrf.mxu0 }
 0x2c9   :  { %v5109_v41 = vld [vmem:[#allocation8 + $0x24] ss:$8 sps:$4 sm:$0xff]  }
 0x2ca   :  { %v5722_v18 = vpop.f32.mrf.mxu0 }
 0x2cc   :  { %v4631_v19 = vpop.f32.mrf.mxu0 }
 0x2ce   :  { %v5724_v21 = vpop.f32.mrf.mxu0 }
 0x2d0   :  { %v4634_v22 = vpop.f32.mrf.mxu0 }
 0x2d1   :  { %v5107_v22 = vld [vmem:[#allocation8 + $0x20] ss:$8 sps:$4 sm:$0xff]  }
 0x2d2   :  { %v5726_v23 = vpop.f32.mrf.mxu0 }
 0x2d4   :  { %v4637_v24 = vpop.f32.mrf.mxu0 }
 0x2d5   :  { %v5112_v24 = vld [vmem:[#allocation8 + $0x14] ss:$8 sps:$4 sm:$0xff]  }
 0x2d6   :  { %v4659_v25 = vpop.f32.mrf.mxu0 }
 0x2d7   :  { %1374 = vperm.xlu0 %5086, %v4659_v25  }
 0x2d8   :  { %v1354_v26 = vpop.f32.mrf.mxu0 }
 0x2d9   :  { %1369 = vperm.xlu1 %5087, %v1354_v26  }
 0x2da   :  { %v1427_v27 = vpop.f32.mrf.mxu0 }
 0x2dc   :  { %v4664_v28 = vpop.f32.mrf.mxu0 }
 0x2dd   :  { %v5110_v28 = vld [vmem:[#allocation8 + $0x10] ss:$8 sps:$4 sm:$0xff]  }
 0x2de   :  { %v1430_v30 = vpop.f32.mrf.mxu0 }
 0x2e0   :  { %v4665_v31 = vpop.f32.mrf.mxu0 }
 0x352   :  { %v1375_v33 = vpop.permute.xlu0 %1374 }
 0x353   :  { %v1382_v34 = vmul.f32 %v4228_v32, %v1375_v33 }
 0x354   :  { %v1370_v35 = vpop.permute.xlu1 %1369 }
 0x355   :  { %v5728_v36 = vadd.f32 %v1430_v30, %v1382_v34  ;;  %v1381_v37 = vmul.f32 %v4228_v32, %v1370_v35 }
 0x357   :  { %v5730_v38 = vadd.f32 %v1427_v27, %v1381_v37  ;;  %v1452_v39 = vsel %vm345_vm3, %v5728_v36, 0.0  ;;  %v5782_v27 = vadd.f32 %v5758_v9, %v5724_v21 }
 0x358   :  { %1453 = vadd.xlane.f32.xlu1 %v1452_v39 }
 0x359   :  { %1450 = vadd.xlane.f32.xlu0 %v5730_v38 }
 0x369   :  { %301 = vrot.lane.b32.xlu1 %v299_v10, %s5470_s1  ;;  %v1157_v10 = vld [vmem:[#allocation11 + $0x5c] sm:$0xff] }
 0x36d   :  { %287 = vrot.lane.b32.xlu1 %v285_v11, %s5471_s14  ;;  %v5101_v11 = vld [vmem:[#allocation8 + $0x40] ss:$8 sps:$4 sm:$0xff]  }
 0x36f   :  { %280 = vrot.lane.b32.xlu0 %v278_v12, %s5460_s21  ;;  %v5765_v12 = vadd.f32 %v5758_v9, %v5718_v17  ;;  %v5777_v17 = vadd.f32 %v5758_v9, %v5722_v18  ;;  %v948_v18 = vand.u32 2139095040, %v5782_v27 }
 0x371   :  { %294 = vrot.lane.b32.xlu1 %v292_v13, %s5472_s15  ;;  %v5106_v13 = vld [vmem:[#allocation8 + $0x34] ss:$8 sps:$4 sm:$0xff]   ;;  %v636_v29 = vand.u32 2139095040, %v5765_v12  ;;  %v844_v26 = vand.u32 2139095040, %v5777_v17  ;;  %v949_v37 = vshrl.u32 %v948_v18, 23 }
 0x373   :  { %307 = vrot.lane.b32.xlu0 %v305_v14, %s5460_s21  ;;  %v5769_v14 = vadd.f32 %v5758_v9, %v5720_v40  ;;  %v637_v40 = vshrl.u32 %v636_v29, 23  ;;  %v845_v32 = vshrl.u32 %v844_v26, 23  ;;  %s5479_s21 = smov 3  }
 0x375   :  { %v740_v19 = vand.u32 2139095040, %v5769_v14  ;;  %v4199_v30 = vadd.s32 4294967169, %v637_v40  ;;  %v4207_v35 = vadd.s32 4294967169, %v845_v32  ;;  %v5477_v40 = vmov 2131351028  }
 0x377   :  { %313 = vrot.lane.b32.xlu0 %v311_v15, %s5471_s14  ;;  %v5104_v15 = vld [vmem:[#allocation8 + $0x30] ss:$8 sps:$4 sm:$0xff]   ;;  %v741_v25 = vshrl.u32 %v740_v19, 23  ;;  %v643_v33 = vadd.s32 1, %v4199_v30  ;;  %v851_v21 = vadd.s32 1, %v4207_v35 }
 0x378   :  { %v5476_v19 = vmov 683565275  }
 0x379   :  { %v4203_v31 = vadd.s32 4294967169, %v741_v25  ;;  %vm644_vm13 = vcmp.gt.s32.totalorder %v643_v33, 0  ;;  %vm852_vm15 = vcmp.gt.s32.totalorder %v851_v21, 0 }
 0x37a   :  { %v645_v39 = vsel %vm644_vm13, %v643_v33, 0 }
 0x37b   :  { %v747_v34 = vadd.s32 1, %v4203_v31  ;;  %v5478_v31 = vmov 2475754826  }
 0x37d   :  { %vm748_vm14 = vcmp.gt.s32.totalorder %v747_v34, 0 }
 0x3e1   :  { %v1454_v42 = vpop.xlane.xlu1 %1453 }
 0x3e2   :  { %v1457_v43 = vmul.f32 0.0078125, %v1454_v42  ;;  %v1451_v44 = vpop.xlane.xlu0 %1450  ;;  %v4211_v42 = vadd.s32 4294967169, %v949_v37 }
 0x3e3   :  { %v1456_v45 = vmul.f32 0.0078125, %v1451_v44  ;;  %v749_v44 = vsel %vm748_vm14, %v747_v34, 0 }
 0x3e4   :  { %v5738_v46 = vsub.f32 %v5728_v36, %v1457_v43  ;;  %v633_v43 = vand.u32 2147483647, %v5765_v12 }
 0x3e5   :  { %v5741_v47 = vsub.f32 %v5730_v38, %v1456_v45  ;;  %v302_v48 = vpop.permute.xlu1 %301  ;;  %v647_v45 = vand.u32 31, %v645_v39 }
 0x3e6   :  { %304 = vst.msk [vmem:[#allocation5 + $0x1] sm:$0x1] %vm283_vm6, %v302_v48  ;;  %v281_v49 = vpop.permute.xlu0 %280  ;;  %v1461_v50 = vmul.f32 %v5738_v46, %v5738_v46  ;;  %v955_v48 = vadd.s32 1, %v4211_v42 }
 0x3e7   :  { %284 = vst.msk [vmem:[#allocation5] sm:$0x1] %vm283_vm6, %v281_v49  ;;  %v1460_v51 = vmul.f32 %v5741_v47, %v5741_v47  ;;  %v640_v49 = vand.u32 8388607, %v633_v43  ;;  %v653_v34 = vshll.u32 %v5478_v31, %v647_v45  ;;  %v656_v35 = vshll.u32 %v5477_v40, %v647_v45 }
 0x3e8   :  { %v1464_v52 = vsel %vm345_vm3, %v1461_v50, 0.0  ;;  %v737_v50 = vand.u32 2147483647, %v5769_v14  ;;  %vm956_vm1 = vcmp.gt.s32.totalorder %v955_v48, 0 }
 0x3e9   :  { %1462 = vadd.xlane.f32.xlu1 %v1460_v51  ;;  %1465 = vadd.xlane.f32.xlu0 %v1464_v52  ;;  %v288_v53 = vpop.permute.xlu1 %287  ;;  %v5790_v51 = vand.u32 31, %v749_v44  ;;  %v648_v52 = vsub.s32 32, %v647_v45 }
 0x3ea   :  { %291 = vst.msk [vmem:[#allocation5] sm:$0x1] %vm290_vm7, %v288_v53  ;;  %v308_v54 = vpop.permute.xlu0 %307  ;;  %v853_v53 = vsel %vm852_vm15, %v851_v21, 0  ;;  %v650_v21 = vshll.u32 %v5476_v19, %v647_v45 }
 0x3eb   :  { %310 = vst.msk [vmem:[#allocation5 + $0x1] sm:$0x1] %vm290_vm7, %v308_v54  ;;  %v641_v54 = vor.u32 8388608, %v640_v49  ;;  %v5830_v30 = vshrl.u32 %v853_v53, 5  ;;  %v651_v32 = vshrl.u32 %v5478_v31, %v648_v52 }
 0x3ed   :  { %v295_v55 = vpop.permute.xlu1 %294  ;;  %vm874_vm0 = vcmp.lt.s32.totalorder %v5830_v30, 2 }
 0x3ee   :  { %298 = vst.msk [vmem:[#allocation5] sm:$0x1] %vm297_vm12, %v295_v55  ;;  %v314_v56 = vpop.permute.xlu0 %313  ;;  %v5794_v55 = vand.u32 8388607, %v737_v50 }
 0x3ef   :  { %316 = vst.msk [vmem:[#allocation5 + $0x1] sm:$0x1] %vm297_vm12, %v314_v56  ;;  %v5797_v56 = vsub.s32 32, %v5790_v51 }
 0x3f6   :  { %v1158_v60 = vld [vmem:[#allocation5] sm:$0x3] }
 0x3f7   :  { %4639 = vmatpush3.msk.msra.mxu1 %vm345_vm3, %v1158_v60 }
 0x3f8   :  { %4641 = vmatmul.mubr.msk.f32.vlgmr.msra.gmra.mxu1 %vm1159_vm10, %v1153_v58  ;;  %1584 = vmatprep.subr.bf16.mxu1 %v5091_v57  ;;  %v5799_v57 = vshrl.u32 %v645_v39, 5  ;;  %v5801_v58 = vand.u32 31, %v853_v53 }
 0x3f9   :  { %4643 = vmatprep.mubr.msk.f32.mxu1 %vm5465_vm2, %v5464_v20  ;;  %1585 = vmatpush1.bf16.msra.mxu1 %v5089_v59  ;;  %v5473_v59 = vmov 920167782  }
 0x3fa   :  { %2189 = vperm.xlu1 %5087, %v1447_v62   ;;  %1586 = vmatprep.subr.bf16.mxu1 %v5094_v61  ;;  %v660_v60 = vshrl.u32 %v5473_v59, %v648_v52  ;;  %v957_v61 = vsel %vm956_vm1, %v955_v48, 0  ;;  %v5474_v62 = vmov 1326507024   ;;  %vm668_vm8 = vcmp.lt.s32.totalorder %v5799_v57, 4 }
 0x3fb   :  { %v766_v29 = vshll.u32 %v5473_v59, %v5790_v51  ;;  %vm665_vm11 = vcmp.lt.s32.totalorder %v5799_v57, 1  ;;  %vm667_vm6 = vcmp.lt.s32.totalorder %v5799_v57, 3  ;;  %vm666_vm12 = vcmp.lt.s32.totalorder %v5799_v57, 2 }
 0x3fc   :  { %4644 = vmatmul.mubr.msk.f32.gmra.mxu1 %vm1159_vm10, %v1154_v63  ;;  %v663_v63 = vshrl.u32 %v5474_v62, %v648_v52  ;;  %vm873_vm1 = vcmp.lt.s32.totalorder %v5830_v30, 1 }
 0x3fd   :  { %4646 = vmatprep.mubr.msk.f32.mxu1 %vm5465_vm2, %v5464_v20  ;;  %1587 = vmatpush1.bf16.msra.mxu1 %v5092_v0  ;;  %v5805_v0 = vshll.u32 %v641_v54, 8  ;;  %v870_v54 = vshll.u32 %v5473_v59, %v5801_v58 }
 0x3fe   :  { %1588 = vmatprep.subr.bf16.mxu1 %v5097_v1  ;;  %v745_v1 = vor.u32 8388608, %v5794_v55 }
 0x3ff   :  { %2184 = vperm.xlu0 %5086, %v1446_v2   ;;  %v6589_v2 = vmov 2102212464  }
 0x400   :  { %4647 = vmatmul.mubr.msk.f32.gmra.mxu1 %vm1159_vm10, %v1155_v3  ;;  %v659_v3 = vshll.u32 %v6589_v2, %v647_v45  ;;  %v657_v25 = vshrl.u32 %v6589_v2, %v648_v52 }
 0x401   :  { %4649 = vmatprep.mubr.msk.f32.mxu1 %vm5465_vm2, %v5464_v20  ;;  %1589 = vmatpush1.bf16.msra.mxu1 %v5095_v4  ;;  %v764_v4 = vshrl.u32 %v5473_v59, %v5797_v56 }
 0x402   :  { %1590 = vmatprep.subr.bf16.mxu1 %v5100_v5  ;;  %v767_v5 = vshrl.u32 %v5474_v62, %v5797_v56  ;;  %v658_v49 = vor.u32 %v657_v25, %v656_v35  ;;  %v757_v25 = vshll.u32 %v5478_v31, %v5790_v51 }
 0x404   :  { %4650 = vmatmul.mubr.msk.f32.gmra.mxu1 %vm1159_vm10, %v1156_v6  ;;  %v841_v6 = vand.u32 2147483647, %v5777_v17 }
 0x405   :  { %4652 = vmatprep.mubr.msk.f32.mxu1 %vm5465_vm2, %v5464_v20  ;;  %1591 = vmatpush1.bf16.msra.mxu1 %v5098_v7  ;;  %v662_v7 = vshll.u32 %v5473_v59, %v647_v45 }
 0x406   :  { %1592 = vmatprep.subr.bf16.mxu1 %v5103_v8  ;;  %v5817_v8 = vsub.s32 32, %v5801_v58 }
 0x408   :  { %4653 = vmatmul.mubr.msk.f32.gmra.mxu1 %vm1159_vm10, %v1157_v10  ;;  %v5819_v10 = vand.u32 31, %v957_v61  ;;  %v868_v18 = vshrl.u32 %v5473_v59, %v5817_v8  ;;  %v871_v39 = vshrl.u32 %v5474_v62, %v5817_v8  ;;  %vm876_vm10 = vcmp.lt.s32.totalorder %v5830_v30, 4 }
 0x409   :  { %1593 = vmatpush1.bf16.msra.mxu1 %v5101_v11  ;;  %1616 = vmatprep.mubr.bf16.mxu1 %v6588_v16  ;;  %v661_v11 = vor.u32 %v660_v60, %v659_v3  ;;  %v5859_v60 = vshrl.u32 %v957_v61, 5  ;;  %v652_v3 = vor.u32 %v651_v32, %v650_v21 }
 0x40a   :  { %1594 = vmatprep.subr.bf16.mxu1 %v5106_v13  ;;  %v5821_v13 = vshrl.u32 %v749_v44, 5  ;;  %v5836_v33 = vsub.s32 32, %v5819_v10  ;;  %v867_v44 = vshll.u32 %v6589_v2, %v5801_v58  ;;  %v968_v16 = vshll.u32 %v5477_v40, %v5819_v10 }
 0x40b   :  { %v674_v37 = vsel %vm668_vm8, %v661_v11, 920167782  ;;  %vm980_vm7 = vcmp.lt.s32.totalorder %v5859_v60, 4 }
 0x40c   :  { %vm772_vm9 = vcmp.lt.s32.totalorder %v5821_v13, 4  ;;  %v5857_v45 = vor.u32 %v868_v18, %v867_v44  ;;  %v5872_v61 = vshrl.u32 %v5474_v62, %v5836_v33  ;;  %v974_v18 = vshll.u32 %v5473_v59, %v5819_v10 }
 0x40d   :  { %1595 = vmatpush1.bf16.msra.mxu1 %v5104_v15  ;;  %v763_v15 = vshll.u32 %v6589_v2, %v5790_v51  ;;  %vm769_vm13 = vcmp.lt.s32.totalorder %v5821_v13, 1  ;;  %vm771_vm14 = vcmp.lt.s32.totalorder %v5821_v13, 3  ;;  %vm770_vm15 = vcmp.lt.s32.totalorder %v5821_v13, 2 }
 0x40e   :  { %1596 = vmatprep.subr.bf16.mxu1 %v5109_v41  ;;  %v664_v41 = vor.u32 %v663_v63, %v662_v7  ;;  %v972_v63 = vshrl.u32 %v5473_v59, %v5836_v33  ;;  %v761_v7 = vshrl.u32 %v6589_v2, %v5797_v56  ;;  %v882_v21 = vsel %vm876_vm10, %v5857_v45, 920167782 }
 0x40f   :  { %v765_v26 = vor.u32 %v764_v4, %v763_v15  ;;  %v872_v4 = vor.u32 %v871_v39, %v870_v54  ;;  %v971_v15 = vshll.u32 %v6589_v2, %v5819_v10  ;;  %v963_v55 = vshrl.u32 %v5478_v31, %v5836_v33 }
 0x410   :  { %v678_v42 = vsel %vm668_vm8, %v664_v41, 1326507024 }
 0x411   :  { %1597 = vmatpush1.bf16.msra.mxu1 %v5107_v22  ;;  %v649_v22 = vshrl.u32 %v5476_v19, %v648_v52  ;;  %v679_v41 = vsel %vm667_vm6, %v661_v11, %v678_v42  ;;  %v5885_v32 = vor.u32 %v972_v63, %v971_v15  ;;  %v670_v11 = vsel %vm668_vm8, %v658_v49, 2102212464 }
 0x412   :  { %1598 = vmatprep.subr.bf16.mxu1 %v5112_v24  ;;  %v654_v24 = vshrl.u32 %v5477_v40, %v648_v52  ;;  %v778_v52 = vsel %vm772_vm9, %v765_v26, 920167782  ;;  %v886_v42 = vsel %vm876_vm10, %v872_v4, 1326507024  ;;  %v976_v63 = vor.u32 %v5872_v61, %v974_v18 }
 0x413   :  { %v669_v44 = vsel %vm665_vm11, %v649_v22, %v652_v3  ;;  %v986_v4 = vsel %vm980_vm7, %v5885_v32, 920167782  ;;  %v861_v18 = vshll.u32 %v5478_v31, %v5801_v58  ;;  %vm875_vm8 = vcmp.lt.s32.totalorder %v5830_v30, 3 }
 0x414   :  { %v655_v48 = vor.u32 %v654_v24, %v653_v34  ;;  %v755_v24 = vshrl.u32 %v5478_v31, %v5797_v56  ;;  %v754_v34 = vshll.u32 %v5476_v19, %v5790_v51 }
 0x415   :  { %1599 = vmatpush1.bf16.msra.mxu1 %v5110_v28  ;;  %v768_v28 = vor.u32 %v767_v5, %v766_v29  ;;  %v758_v5 = vshrl.u32 %v5477_v40, %v5797_v56 }
 0x416   :  { %4666 = vmatprep.subr.bf16.mxu1 %v5464_v20  ;;  %v677_v29 = vsel %vm665_vm11, %v655_v48, %v658_v49  ;;  %v671_v22 = vsel %vm667_vm6, %v655_v48, %v670_v11  ;;  %v864_v11 = vshll.u32 %v5477_v40, %v5801_v58 }
 0x417   :  { %v782_v53 = vsel %vm772_vm9, %v768_v28, 1326507024  ;;  %v760_v28 = vshll.u32 %v5477_v40, %v5790_v51  ;;  %v5895_v35 = vor.u32 %v758_v5, %v757_v25  ;;  %v680_v54 = vsel %vm666_vm12, %v677_v29, %v679_v41 }
 0x418   :  { %v673_v51 = vsel %vm665_vm11, %v652_v3, %v655_v48  ;;  %v675_v5 = vsel %vm667_vm6, %v658_v49, %v674_v37  ;;  %v5923_v15 = vmul.u32.u64.low %v5805_v0, %v680_v54  ;;  %v5924_v61 = vmul.u32.u64.high %v5805_v0, %v680_v54, %v5923_v15 }
 0x419   :  { %v5897_v39 = vor.u32 %v761_v7, %v760_v28  ;;  %v5913_v7 = vor.u32 %v755_v24, %v754_v34  ;;  %v783_v49 = vsel %vm771_vm14, %v765_v26, %v782_v53  ;;  %v676_v3 = vsel %vm666_vm12, %v673_v51, %v675_v5 }
 0x41a   :  { %v859_v48 = vshrl.u32 %v5478_v31, %v5817_v8  ;;  %v862_v29 = vshrl.u32 %v5477_v40, %v5817_v8  ;;  %v5948_v53 = vshll.u32 %v745_v1, 8  ;;  %v865_v24 = vshrl.u32 %v6589_v2, %v5817_v8 }
 0x41b   :  { %v781_v37 = vsel %vm769_vm13, %v5895_v35, %v5897_v39  ;;  %v777_v41 = vsel %vm769_vm13, %v5913_v7, %v5895_v35  ;;  %v779_v26 = vsel %vm771_vm14, %v5897_v39, %v778_v52  ;;  %v858_v28 = vshll.u32 %v5476_v19, %v5801_v58 }
 0x41c   :  { %v784_v25 = vsel %vm770_vm15, %v781_v37, %v783_v49  ;;  %v945_v52 = vand.u32 2147483647, %v5782_v27  ;;  %v966_v1 = vshrl.u32 %v5477_v40, %v5836_v33  ;;  %v969_v34 = vshrl.u32 %v6589_v2, %v5836_v33 }
 0x41d   :  { %v780_v54 = vsel %vm770_vm15, %v777_v41, %v779_v26  ;;  %v848_v51 = vand.u32 8388607, %v841_v6  ;;  %v5971_v5 = vor.u32 %v859_v48, %v858_v28  ;;  %v5973_v58 = vor.u32 %v862_v29, %v861_v18 }
 0x41e   :  { %v866_v15 = vor.u32 %v865_v24, %v864_v11  ;;  %v962_v37 = vshll.u32 %v5476_v19, %v5819_v10  ;;  %v965_v49 = vshll.u32 %v5478_v31, %v5819_v10  ;;  %v952_v29 = vand.u32 8388607, %v945_v52 }
 0x41f   :  { %v5982_v2 = vmul.u32.u64.low %v5805_v0, %v676_v3  ;;  %v5983_v41 = vmul.u32.u64.high %v5805_v0, %v676_v3, %v5982_v2  ;;  %v5987_v48 = vmul.u32.u64.low %v5948_v53, %v784_v25  ;;  %v5988_v26 = vmul.u32.u64.high %v5948_v53, %v784_v25, %v5987_v48 }
 0x420   :  { %v5992_v24 = vor.u32 %v963_v55, %v962_v37  ;;  %v5994_v28 = vor.u32 %v966_v1, %v965_v49  ;;  %v970_v18 = vor.u32 %v969_v34, %v968_v16  ;;  %v990_v3 = vsel %vm980_vm7, %v976_v63, 1326507024 }
 0x421   :  { %v5997_v11 = vmul.u32.u64.low %v5948_v53, %v780_v54  ;;  %v5998_v10 = vmul.u32.u64.high %v5948_v53, %v780_v54, %v5997_v11  ;;  %v849_v25 = vor.u32 8388608, %v848_v51  ;;  %v881_v55 = vsel %vm873_vm1, %v5971_v5, %v5973_v58 }
 0x422   :  { %v883_v16 = vsel %vm875_vm8, %v866_v15, %v882_v21  ;;  %v885_v1 = vsel %vm873_vm1, %v5973_v58, %v866_v15  ;;  %v887_v34 = vsel %vm875_vm8, %v5857_v45, %v886_v42  ;;  %vm977_vm11 = vcmp.lt.s32.totalorder %v5859_v60, 1 }
 0x423   :  { %vm979_vm6 = vcmp.lt.s32.totalorder %v5859_v60, 3  ;;  %v953_v63 = vor.u32 8388608, %v952_v29  ;;  %v985_v21 = vsel %vm977_vm11, %v5992_v24, %v5994_v28  ;;  %v672_v51 = vsel %vm666_vm12, %v669_v44, %v671_v22 }
 0x424   :  { %v987_v54 = vsel %vm979_vm6, %v970_v18, %v986_v4  ;;  %v884_v45 = vsel %vm874_vm0, %v881_v55, %v883_v16  ;;  %v989_v42 = vsel %vm977_vm11, %v5994_v28, %v970_v18  ;;  %v991_v37 = vsel %vm979_vm6, %v5885_v32, %v990_v3 }
 0x425   :  { %v774_v49 = vsel %vm772_vm9, %v5897_v39, 2102212464  ;;  %v888_v4 = vsel %vm874_vm0, %v885_v1, %v887_v34  ;;  %v889_v57 = vshll.u32 %v849_v25, 8  ;;  %vm978_vm12 = vcmp.lt.s32.totalorder %v5859_v60, 2 }
 0x426   :  { %vm690_vm5 = vc.u32 %v5924_v61, %v5982_v2  ;;  %v691_v44 = vadd.s32 1, %v5983_v41  ;;  %v753_v22 = vshrl.u32 %v5476_v19, %v5797_v56  ;;  %v988_v32 = vsel %vm978_vm12, %v985_v21, %v987_v54 }
 0x427   :  { %v6049_v48 = vmul.u32.u64.low %v889_v57, %v884_v45  ;;  %v6050_v29 = vmul.u32.u64.high %v889_v57, %v884_v45, %v6049_v48  ;;  %v992_v39 = vsel %vm978_vm12, %v989_v42, %v991_v37  ;;  %v993_v3 = vshll.u32 %v953_v63, 8 }
 0x428   :  { %v773_v25 = vsel %vm769_vm13, %v753_v22, %v5913_v7  ;;  %v775_v55 = vsel %vm771_vm14, %v5895_v35, %v774_v49  ;;  %v6061_v56 = vmul.u32.u64.low %v889_v57, %v888_v4  ;;  %v6062_v16 = vmul.u32.u64.high %v889_v57, %v888_v4, %v6061_v56 }
 0x429   :  { %v795_v1 = vadd.s32 1, %v5998_v10  ;;  %v6065_v34 = vmul.u32.u64.low %v993_v3, %v988_v32  ;;  %v6066_v21 = vmul.u32.u64.high %v993_v3, %v988_v32, %v6065_v34  ;;  %v692_v54 = vsel %vm690_vm5, %v691_v44, %v5983_v41 }
 0x42a   :  { %vm794_vm9 = vc.u32 %v5988_v26, %v5997_v11  ;;  %v6072_v63 = vmul.u32.u64.low %v993_v3, %v992_v39  ;;  %v6073_v7 = vmul.u32.u64.high %v993_v3, %v992_v39, %v6072_v63  ;;  %v688_v45 = vmul.u32 %v5805_v0, %v672_v51 }
 0x42b   :  { %v776_v35 = vsel %vm770_vm15, %v773_v25, %v775_v55  ;;  %v878_v42 = vsel %vm876_vm10, %v866_v15, 2102212464  ;;  %v857_v37 = vshrl.u32 %v5476_v19, %v5817_v8  ;;  %v796_v41 = vsel %vm794_vm9, %v795_v1, %v5998_v10 }
 0x42c   :  { %v693_v49 = vadd.s32 %v692_v54, %v688_v45  ;;  %v982_v4 = vsel %vm980_vm7, %v970_v18, 2102212464  ;;  %v792_v44 = vmul.u32 %v5948_v53, %v776_v35  ;;  %v879_v13 = vsel %vm875_vm8, %v5973_v58, %v878_v42 }
 0x42d   :  { %v877_v0 = vsel %vm873_vm1, %v857_v37, %v5971_v5  ;;  %v961_v15 = vshrl.u32 %v5476_v19, %v5836_v33  ;;  %v899_v8 = vadd.s32 1, %v6050_v29  ;;  %vm898_vm5 = vc.u32 %v6062_v16, %v6049_v48 }
 0x42e   :  { %v797_v51 = vadd.s32 %v796_v41, %v792_v44  ;;  %v983_v5 = vsel %vm979_vm6, %v5994_v28, %v982_v4  ;;  %v694_v18 = vadd.s32 536870912, %v693_v49  ;;  %v880_v58 = vsel %vm874_vm0, %v877_v0, %v879_v13 }
 0x42f   :  { %v981_v53 = vsel %vm977_vm11, %v961_v15, %v5992_v24  ;;  %v1003_v33 = vadd.s32 1, %v6066_v21  ;;  %vm1002_vm10 = vc.u32 %v6073_v7, %v6065_v34  ;;  %v900_v10 = vsel %vm898_vm5, %v899_v8, %v6050_v29 }
 0x430   :  { %v984_v22 = vsel %vm978_vm12, %v981_v53, %v983_v5  ;;  %v798_v32 = vadd.s32 536870912, %v797_v51  ;;  %v896_v24 = vmul.u32 %v889_v57, %v880_v58  ;;  %v6111_v39 = vshrl.u32 %v694_v18, 30 }
 0x431   :  { %v1004_v28 = vsel %vm1002_vm10, %v1003_v33, %v6066_v21  ;;  %v1000_v55 = vmul.u32 %v993_v3, %v984_v22  ;;  %vm635_vm15 = vcmp.lt.s32.totalorder %v5765_v12, 0  ;;  %vm739_vm1 = vcmp.lt.s32.totalorder %v5769_v14, 0 }
 0x432   :  { %v901_v25 = vadd.s32 %v900_v10, %v896_v24  ;;  %v6114_v30 = vshrl.u32 %v798_v32, 30  ;;  %v696_v1 = vshll.u32 %v6111_v39, 30  ;;  %vm6165_vm8 = vcmp.le.f32.partialorder %v633_v43, 0.7853982 }
 0x433   :  { %v1005_v56 = vadd.s32 %v1004_v28, %v1000_v55  ;;  %vm6176_vm11 = vcmp.le.f32.partialorder %v737_v50, 0.7853982  ;;  %vm843_vm6 = vcmp.lt.s32.totalorder %v5777_v17, 0  ;;  %vm947_vm12 = vcmp.lt.s32.totalorder %v5782_v27, 0 }
 0x434   :  { %v902_v54 = vadd.s32 536870912, %v901_v25  ;;  %v800_v63 = vshll.u32 %v6114_v30, 30  ;;  %v6118_v45 = vsub.s32 %v693_v49, %v696_v1  ;;  %v719_v50 = vsub.s32 4, %v6111_v39 }
 0x435   :  { %v1006_v29 = vadd.s32 536870912, %v1005_v56  ;;  %vm6191_vm9 = vcmp.le.f32.partialorder %v841_v6, 0.7853982  ;;  %vm6202_vm5 = vcmp.le.f32.partialorder %v945_v52, 0.7853982 }
 0x436   :  { %v6120_v60 = vshrl.u32 %v902_v54, 30  ;;  %v6122_v57 = vsub.s32 %v797_v51, %v800_v63  ;;  %v699_v21 = vsub.s32 0, %v6118_v45  ;;  %v720_v6 = vsel %vm635_vm15, %v719_v50, %v6111_v39 }
 0x437   :  { %v6124_v35 = vshrl.u32 %v1006_v29, 30  ;;  %v722_v52 = vsel %vm6165_vm8, 0, %v720_v6 }
 0x438   :  { %v904_v3 = vshll.u32 %v6120_v60, 30  ;;  %v803_v42 = vsub.s32 0, %v6122_v57  ;;  %v4200_v41 = vmin.u32 %v699_v21, %v6118_v45 }
 0x439   :  { %v1008_v37 = vshll.u32 %v6124_v35, 30  ;;  %v1031_v39 = vsub.s32 4, %v6124_v35 }
 0x43a   :  { %v6131_v4 = vsub.s32 %v901_v25, %v904_v3  ;;  %v4204_v49 = vmin.u32 %v803_v42, %v6122_v57  ;;  %v701_v0 = vclz %v4200_v41 }
 0x43b   :  { %v6134_v44 = vsub.s32 %v1005_v56, %v1008_v37 }
 0x43c   :  { %v907_v13 = vsub.s32 0, %v6131_v4  ;;  %v805_v15 = vclz %v4204_v49  ;;  %v4201_v5 = vadd.s32 4294967294, %v701_v0  ;;  %v4231_v49 = vld [vmem:[#allocation11 + $0x8] ss:$0 sm:$0xff]  ;;  %v689_v0 = vadd.s32 %v5982_v2, %v5924_v61 }
 0x43d   :  { %v1011_v8 = vsub.s32 0, %v6134_v44 }
 0x43e   :  { %v4208_v33 = vmin.u32 %v907_v13, %v6131_v4  ;;  %v4205_v32 = vadd.s32 4294967294, %v805_v15  ;;  %vm4202_vm0 = vcmp.lt.s32.totalorder %v4201_v5, 0 }
 0x43f   :  { %v4212_v24 = vmin.u32 %v1011_v8, %v6134_v44  ;;  %v704_v25 = vsel %vm4202_vm0, 0, %v4201_v5 }
 0x440   :  { %v909_v28 = vclz %v4208_v33  ;;  %vm4206_vm7 = vcmp.lt.s32.totalorder %v4205_v32, 0  ;;  %v709_v1 = vsub.s32 4294967266, %v704_v25  ;;  %v705_v3 = vsub.s32 32, %v704_v25 }
 0x441   :  { %v1013_v55 = vclz %v4212_v24  ;;  %v808_v54 = vsel %vm4206_vm7, 0, %v4205_v32  ;;  %v706_v2 = vshll.u32 %v6118_v45, %v704_v25 }
 0x442   :  { %v4209_v56 = vadd.s32 4294967294, %v909_v28  ;;  %v813_v29 = vsub.s32 4294967266, %v808_v54  ;;  %v710_v21 = vadd.s32 127, %v709_v1  ;;  %v707_v33 = vshrl.u32 %v689_v0, %v705_v3 }
 0x443   :  { %v4213_v63 = vadd.s32 4294967294, %v1013_v55 }
 0x444   :  { %vm4210_vm13 = vcmp.lt.s32.totalorder %v4209_v56, 0  ;;  %v814_v37 = vadd.s32 127, %v813_v29  ;;  %v711_v13 = vshll.u32 %v710_v21, 23  ;;  %v810_v29 = vshll.u32 %v6122_v57, %v808_v54 }
 0x445   :  { %vm4214_vm14 = vcmp.lt.s32.totalorder %v4213_v63, 0  ;;  %v912_v42 = vsel %vm4210_vm13, 0, %v4209_v56  ;;  %v1001_v57 = vadd.s32 %v6065_v34, %v6073_v7 }
 0x446   :  { %v1016_v15 = vsel %vm4214_vm14, 0, %v4213_v63  ;;  %v917_v5 = vsub.s32 4294967266, %v912_v42  ;;  %v815_v32 = vshll.u32 %v814_v37, 23  ;;  %v712_v61 = vor.u32 4788187, %v711_v13 }
 0x447   :  { %v1021_v24 = vsub.s32 4294967266, %v1016_v15  ;;  %v708_v63 = vor.u32 %v707_v33, %v706_v2  ;;  %v913_v21 = vsub.s32 32, %v912_v42  ;;  %v1017_v45 = vsub.s32 32, %v1016_v15 }
 0x448   :  { %v918_v1 = vadd.s32 127, %v917_v5  ;;  %v713_v0 = vand.u32 2147483647, %v712_v61 }
 0x449   :  { %v1022_v3 = vadd.s32 127, %v1021_v24  ;;  %v715_v25 = vcvt.s32.f32 %v708_v63  ;;  %v823_v63 = vsub.s32 4, %v6114_v30 }
 0x44a   :  { %v919_v37 = vshll.u32 %v918_v1, 23 }
 0x44c   :  { %v920_v5 = vor.u32 4788187, %v919_v37  ;;  %v927_v37 = vsub.s32 4, %v6120_v60 }
 0x472   :  { %v1466_v51 = vpop.xlane.xlu0 %1465  ;;  %v1463_v53 = vpop.xlane.xlu1 %1462 }
 0x473   :  { %v1468_v18 = vmul.f32 0.0078125, %v1466_v51  ;;  %v1467_v58 = vmul.f32 0.0078125, %v1463_v53  ;;  %v809_v53 = vsub.s32 32, %v808_v54  ;;  %v1023_v54 = vshll.u32 %v1022_v3, 23 }
 0x475   :  { %v1470_v10 = vadd.f32 1e-05, %v1468_v18  ;;  %v1469_v22 = vadd.f32 1e-05, %v1467_v58  ;;  %v4232_v58 = vld [vmem:[#allocation11 + $0x9] ss:$0 sm:$0xff] }
 0x476   :  { %v1024_v33 = vor.u32 4788187, %v1023_v54 }
 0x477   :  { %5241 = vrsqrt.f32 %v1470_v10 }
 0x478   :  { %5243 = vrsqrt.f32 %v1469_v22  ;;  %v793_v22 = vadd.s32 %v5997_v11, %v5988_v26  ;;  %v897_v11 = vadd.s32 %v6049_v48, %v6062_v16  ;;  %v1019_v48 = vshrl.u32 %v1001_v57, %v1017_v45 }
 0x479   :  { %v1025_v7 = vand.u32 2147483647, %v1024_v33 }
 0x47a   :  { %v811_v56 = vshrl.u32 %v793_v22, %v809_v53  ;;  %v915_v13 = vshrl.u32 %v897_v11, %v913_v21  ;;  %v914_v53 = vshll.u32 %v6131_v4, %v912_v42  ;;  %v921_v22 = vand.u32 2147483647, %v920_v5 }
 0x47c   :  { %v812_v26 = vor.u32 %v811_v56, %v810_v29 }
 0x484   :  { %v5242_v41 = vpop.eup %5241 }
 0x485   :  { %v5244_v8 = vpop.eup %5243  ;;  %v1474_v51 = vmul.f32 %v5242_v41, %v5738_v46 }
 0x486   :  { %v1473_v18 = vmul.f32 %v5244_v8, %v5741_v47  ;;  %v816_v47 = vor.u32 4788187, %v815_v32  ;;  %v716_v8 = vmul.f32 %v715_v25, %v713_v0  ;;  %v726_v25 = vadd.s32 3, %v722_v52 }
 0x487   :  { %v1480_v10 = vmul.f32 %v4231_v49, %v1474_v51  ;;  %v819_v51 = vcvt.s32.f32 %v812_v26  ;;  %v824_v26 = vsel %vm739_vm1, %v823_v63, %v6114_v30  ;;  %v928_v30 = vsel %vm843_vm6, %v927_v37, %v6120_v60 }
 0x488   :  { %v1479_v28 = vmul.f32 %v4231_v49, %v1473_v18  ;;  %v817_v49 = vand.u32 2147483647, %v816_v47  ;;  %v916_v18 = vor.u32 %v915_v13, %v914_v53  ;;  %v826_v11 = vsel %vm6176_vm11, 0, %v824_v26 }
 0x489   :  { %v1486_v55 = vadd.f32 %v4232_v58, %v1480_v10  ;;  %v717_v10 = vxor.u32 2147483648, %v716_v8  ;;  %v830_v13 = vadd.s32 3, %v826_v11 }
 0x48a   :  { %v1485_v46 = vadd.f32 %v4232_v58, %v1479_v28  ;;  %v820_v16 = vmul.f32 %v819_v51, %v817_v49  ;;  %v1018_v58 = vshll.u32 %v6134_v44, %v1016_v15  ;;  %v923_v34 = vcvt.s32.f32 %v916_v18 }
 0x48b   :  { %v718_v28 = vsel %vm635_vm15, %v717_v10, %v716_v8  ;;  %v1032_v8 = vsel %vm947_vm12, %v1031_v39, %v6124_v35  ;;  %v727_v51 = vand.u32 3, %v726_v25  ;;  %v831_v5 = vand.u32 3, %v830_v13 }
 0x48c   :  { %v6148_v41 = vpack.c.bf16 %v1486_v55, %v1485_v46  ;;  %v1020_v32 = vor.u32 %v1019_v48, %v1018_v58  ;;  %v821_v24 = vxor.u32 2147483648, %v820_v16  ;;  %v924_v2 = vmul.f32 %v923_v34, %v921_v22 }
 0x48d   :  { %v721_v61 = vsel %vm6165_vm8, %v5765_v12, %v718_v28  ;;  %v930_v48 = vsel %vm6191_vm9, 0, %v928_v30  ;;  %v1034_v33 = vsel %vm6202_vm5, 0, %v1032_v8  ;;  %vm729_vm10 = vcmp.eq.s32.totalorder %v727_v51, 0 }
 0x48e   :  { %1617 = vmatmul.mubr.bf16.vlgmr.msra.gmra.mxu1 %v6148_v41  ;;  %v1027_v4 = vcvt.s32.f32 %v1020_v32  ;;  %v822_v42 = vsel %vm739_vm1, %v821_v24, %v820_v16  ;;  %v925_v56 = vxor.u32 2147483648, %v924_v2  ;;  %5245 = vcosq.f32 %v721_v61 }
 0x48f   :  { %4668 = vmatprep.mubr.msk.bf16.mxu1 %vm5465_vm2, %v5464_v20  ;;  %v825_v43 = vsel %vm6176_vm11, %v5769_v14, %v822_v42  ;;  %5247 = vsinq.f32 %v721_v61  ;;  %v934_v60 = vadd.s32 3, %v930_v48  ;;  %vm732_vm0 = vcmp.eq.s32.totalorder %v727_v51, 2 }
 0x490   :  { %v1028_v15 = vmul.f32 %v1027_v4, %v1025_v7  ;;  %5249 = vcosq.f32 %v825_v43  ;;  %v926_v46 = vsel %vm843_vm6, %v925_v56, %v924_v2  ;;  %vm833_vm7 = vcmp.eq.s32.totalorder %v831_v5, 0 }
 0x491   :  { %5251 = vsinq.f32 %v825_v43  ;;  %v929_v21 = vsel %vm6191_vm9, %v5777_v17, %v926_v46  ;;  %vm836_vm13 = vcmp.eq.s32.totalorder %v831_v5, 2  ;;  %v1038_v35 = vadd.s32 3, %v1034_v33 }
 0x492   :  { %v1029_v1 = vxor.u32 2147483648, %v1028_v15  ;;  %5253 = vcosq.f32 %v929_v21  ;;  %vm728_vm14 = vcmp.lt.s32.totalorder %v727_v51, 2  ;;  %vm832_vm15 = vcmp.lt.s32.totalorder %v831_v5, 2 }
 0x493   :  { %5255 = vsinq.f32 %v929_v21  ;;  %v935_v44 = vand.u32 3, %v934_v60  ;;  %v1039_v61 = vand.u32 3, %v1038_v35  ;;  %vm725_vm1 = vweird.f32 %v5765_v12 }
 0x494   :  { %v1030_v47 = vsel %vm947_vm12, %v1029_v1, %v1028_v15  ;;  %vm829_vm8 = vweird.f32 %v5769_v14 }
 0x495   :  { %v1033_v0 = vsel %vm6202_vm5, %v5782_v27, %v1030_v47  ;;  %vm937_vm11 = vcmp.eq.s32.totalorder %v935_v44, 0  ;;  %vm940_vm6 = vcmp.eq.s32.totalorder %v935_v44, 2  ;;  %vm1041_vm12 = vcmp.eq.s32.totalorder %v1039_v61, 0 }
 0x496   :  { %5257 = vcosq.f32 %v1033_v0  ;;  %vm1044_vm9 = vcmp.eq.s32.totalorder %v1039_v61, 2  ;;  %vm936_vm5 = vcmp.lt.s32.totalorder %v935_v44, 2 }
 0x497   :  { %5259 = vsinq.f32 %v1033_v0 }
 0x49b   :  { %v5246_v45 = vpop.eup %5245 }
 0x49c   :  { %v5248_v49 = vpop.eup %5247  ;;  %v733_v53 = vxor.u32 2147483648, %v5246_v45 }
 0x49d   :  { %v5250_v57 = vpop.eup %5249  ;;  %v730_v16 = vxor.u32 2147483648, %v5248_v49 }
 0x49e   :  { %v5252_v54 = vpop.eup %5251  ;;  %v837_v58 = vxor.u32 2147483648, %v5250_v57  ;;  %v734_v34 = vsel %vm732_vm0, %v733_v53, %v5248_v49  ;;  %vm933_vm0 = vweird.f32 %v5777_v17  ;;  %v6243_v53 = vadd.f32 %v5758_v9, %v5726_v23 }
 0x49f   :  { %v834_v18 = vxor.u32 2147483648, %v5252_v54  ;;  %v5254_v10 = vpop.eup %5253  ;;  %v731_v24 = vsel %vm729_vm10, %v5246_v45, %v730_v16  ;;  %vm1040_vm10 = vcmp.lt.s32.totalorder %v1039_v61, 2 }
 0x4a0   :  { %v5256_v22 = vpop.eup %5255  ;;  %v838_v28 = vsel %vm836_vm13, %v837_v58, %v5252_v54  ;;  %v735_v42 = vsel %vm728_vm14, %v731_v24, %v734_v34  ;;  %v941_v43 = vxor.u32 2147483648, %v5254_v10  ;;  %v1052_v5 = vand.u32 2139095040, %v6243_v53 }
 0x4a1   :  { %v835_v7 = vsel %vm833_vm7, %v5250_v57, %v834_v18  ;;  %v938_v56 = vxor.u32 2147483648, %v5256_v22  ;;  %v736_v50 = vsel %vm725_vm1, nan, %v735_v42  ;;  %vm1037_vm7 = vweird.f32 %v5782_v27 }
 0x4a2   :  { %v839_v15 = vsel %vm832_vm15, %v835_v7, %v838_v28  ;;  %v942_v0 = vsel %vm940_vm6, %v941_v43, %v5256_v22  ;;  %v1053_v17 = vshrl.u32 %v1052_v5, 23  ;;  %v6601_v22 = vmov 2102212464  }
 0x4a3   :  { %v5258_v32 = vpop.eup %5257  ;;  %v840_v63 = vsel %vm829_vm8, nan, %v839_v15  ;;  %v939_v6 = vsel %vm937_vm11, %v5254_v10, %v938_v56  ;;  %v1049_v23 = vand.u32 2147483647, %v6243_v53 }
 0x4a4   :  { %v5260_v2 = vpop.eup %5259  ;;  %v1045_v46 = vxor.u32 2147483648, %v5258_v32  ;;  %v943_v14 = vsel %vm936_vm5, %v939_v6, %v942_v0  ;;  %v4215_v48 = vadd.s32 4294967169, %v1053_v17 }
 0x4a5   :  { %v1042_v1 = vxor.u32 2147483648, %v5260_v2  ;;  %v944_v45 = vsel %vm933_vm0, nan, %v943_v14  ;;  %vm6317_vm5 = vcmp.le.f32.partialorder %v1049_v23, 0.7853982 }
 0x4a6   :  { %v1046_v52 = vsel %vm1044_vm9, %v1045_v46, %v5260_v2  ;;  %v1059_v27 = vadd.s32 1, %v4215_v48  ;;  %vm1051_vm9 = vcmp.lt.s32.totalorder %v6243_v53, 0 }
 0x4a7   :  { %v1043_v26 = vsel %vm1041_vm12, %v5258_v32, %v1042_v1  ;;  %vm1651_vm12 = vcmask 1044480  }
 0x4a8   :  { %v1047_v37 = vsel %vm1040_vm10, %v1043_v26, %v1046_v52  ;;  %vm1060_vm13 = vcmp.gt.s32.totalorder %v1059_v27, 0 }
 0x4a9   :  { %v1048_v25 = vsel %vm1037_vm7, nan, %v1047_v37  ;;  %v1061_v16 = vsel %vm1060_vm13, %v1059_v27, 0  ;;  %vm1141_vm13 = vweird.f32 %v6243_v53 }
 0x4aa   :  { %v1063_v18 = vand.u32 31, %v1061_v16  ;;  %v1062_v60 = vshrl.u32 %v1061_v16, 5 }
 0x4ac   :  { %v1064_v58 = vsub.s32 32, %v1063_v18  ;;  %v1075_v35 = vshll.u32 %v6601_v22, %v1063_v18  ;;  %v1078_v32 = vshll.u32 %v5473_v59, %v1063_v18  ;;  %v1066_v2 = vshll.u32 %v5476_v19, %v1063_v18 }
 0x4ad   :  { %vm1084_vm14 = vcmp.lt.s32.totalorder %v1062_v60, 4  ;;  %vm1081_vm15 = vcmp.lt.s32.totalorder %v1062_v60, 1  ;;  %vm1083_vm1 = vcmp.lt.s32.totalorder %v1062_v60, 3  ;;  %vm1082_vm8 = vcmp.lt.s32.totalorder %v1062_v60, 2 }
 0x4ae   :  { %v1076_v33 = vshrl.u32 %v5473_v59, %v1064_v58  ;;  %v1079_v10 = vshrl.u32 %v5474_v62, %v1064_v58  ;;  %v1067_v9 = vshrl.u32 %v5478_v31, %v1064_v58  ;;  %v1070_v24 = vshrl.u32 %v5477_v40, %v1064_v58 }
 0x4af   :  { %v1073_v34 = vshrl.u32 %v6601_v22, %v1064_v58  ;;  %v1072_v62 = vshll.u32 %v5477_v40, %v1063_v18  ;;  %v1056_v59 = vand.u32 8388607, %v1049_v23  ;;  %v1065_v0 = vshrl.u32 %v5476_v19, %v1064_v58 }
 0x4b0   :  { %v1077_v7 = vor.u32 %v1076_v33, %v1075_v35  ;;  %v1080_v28 = vor.u32 %v1079_v10, %v1078_v32  ;;  %v1068_v44 = vor.u32 %v1067_v9, %v1066_v2  ;;  %v6283_v2 = vld [vmem:[#allocation8 + $0x490] ss:$8 sps:$4 sm:$0xff]  }
 0x4b1   :  { %v1074_v15 = vor.u32 %v1073_v34, %v1072_v62  ;;  %v1057_v56 = vor.u32 8388608, %v1056_v59  ;;  %v6286_v59 = vld [vmem:[#allocation8 + $0x4b8] ss:$8 sps:$4 sm:$0xff]  }
 0x4b2   :  { %v1090_v61 = vsel %vm1084_vm14, %v1077_v7, 920167782  ;;  %v1085_v26 = vsel %vm1081_vm15, %v1065_v0, %v1068_v44 }
 0x4b3   :  { %v1086_v6 = vsel %vm1084_vm14, %v1074_v15, 2102212464 }
 0x4b8   :  { %v1244_v4 = vpop.f32.mrf.mxu1 }
 0x4b9   :  { %v1268_v47 = vadd.f32 %v1244_v4, %v736_v50  ;;  %v1069_v4 = vshll.u32 %v5478_v31, %v1063_v18  ;;  %v1091_v31 = vsel %vm1083_vm1, %v1074_v15, %v1090_v61  ;;  %v5116_v61 = vld [vmem:[#allocation8 + $0xf0] ss:$8 sps:$4 sm:$0xff]  }
 0x4ba   :  { %v4642_v55 = vpop.f32.mrf.mxu1 }
 0x4bb   :  { %v1071_v42 = vor.u32 %v1070_v24, %v1069_v4  ;;  %v1094_v55 = vsel %vm1084_vm14, %v1080_v28, 1326507024  ;;  %vm2137_vm14 = vcmask 1043456  }
 0x4bc   :  { %v1249_v29 = vpop.f32.mrf.mxu1  ;;  %v1095_v1 = vsel %vm1083_vm1, %v1077_v7, %v1094_v55  ;;  %v6299_v55 = vld [vmem:[#allocation8 + $0x4a0] ss:$8 sps:$4 sm:$0xff]  }
 0x4bd   :  { %v1269_v21 = vadd.f32 %v1249_v29, %v840_v63  ;;  %v1089_v43 = vsel %vm1081_vm15, %v1068_v44, %v1071_v42  ;;  %v1093_v40 = vsel %vm1081_vm15, %v1071_v42, %v1074_v15  ;;  %v1097_v63 = vshll.u32 %v1057_v56, 8  ;;  %v5115_v44 = vld [vmem:[#allocation8 + $0x100] ss:$8 sps:$4 sm:$0xff]  }
 0x4be   :  { %v4645_v3 = vpop.f32.mrf.mxu1  ;;  %v1092_v46 = vsel %vm1082_vm8, %v1089_v43, %v1091_v31  ;;  %v1096_v50 = vsel %vm1082_vm8, %v1093_v40, %v1095_v1  ;;  %v1087_v52 = vsel %vm1083_vm1, %v1071_v42, %v1086_v6  ;;  %v6301_v43 = vld [vmem:[#allocation8 + $0x4c8] ss:$8 sps:$4 sm:$0xff]   ;;  %vm2133_vm15 = vcmask 326656  }
 0x4bf   :  { %v6233_v11 = vpack.c.bf16 %v1269_v21, %v1268_v47  ;;  %v6265_v29 = vmul.u32.u64.low %v1097_v63, %v1092_v46  ;;  %v6266_v47 = vmul.u32.u64.high %v1097_v63, %v1092_v46, %v6265_v29  ;;  %v1088_v14 = vsel %vm1082_vm8, %v1085_v26, %v1087_v52  ;;  %v5117_v31 = vld [vmem:[#allocation8 + $0xe0] ss:$8 sps:$4 sm:$0xff]   ;;  %v5120_v1 = vld [vmem:[#allocation8 + $0xd0] ss:$8 sps:$4 sm:$0xff]  }
 0x4c0   :  { %v1254_v12 = vpop.f32.mrf.mxu1  ;;  %v6268_v21 = vmul.u32.u64.low %v1097_v63, %v1096_v50  ;;  %v6269_v3 = vmul.u32.u64.high %v1097_v63, %v1096_v50, %v6268_v21  ;;  %v6322_v50 = vld [vmem:[#allocation8 + $0x4b0] ss:$0 sps:$4 sm:$0xff]   ;;  %v5125_v6 = vld [vmem:[#allocation8 + $0xa0] ss:$8 sps:$4 sm:$0xff]   ;;  %vm6605_vm1 = vcmask 16384  }
 0x4c1   :  { %v1270_v13 = vadd.f32 %v1254_v12, %v944_v45  ;;  %v1107_v12 = vadd.s32 1, %v6266_v47  ;;  %v5123_v21 = vld [vmem:[#allocation8 + $0xb0] ss:$8 sps:$4 sm:$0xff]   ;;  %vm6606_vm8 = vmmov %vm6605_vm1 }
 0x4c2   :  { %v4648_v39 = vpop.f32.mrf.mxu1  ;;  %vm1106_vm11 = vc.u32 %v6269_v3, %v6265_v29  ;;  %v1105_v58 = vadd.s32 %v6265_v29, %v6269_v3  ;;  %v6327_v29 = vld [vmem:[#allocation8 + $0x4d8] ss:$0 sps:$4 sm:$0xff]  }
 0x4c3   :  { %v1108_v37 = vsel %vm1106_vm11, %v1107_v12, %v6266_v47  ;;  %v1104_v39 = vmul.u32 %v1097_v63, %v1088_v14  ;;  %v5121_v47 = vld [vmem:[#allocation8 + $0xc0] ss:$8 sps:$4 sm:$0xff]   ;;  %v5126_v26 = vld [vmem:[#allocation8 + $0x90] ss:$8 sps:$4 sm:$0xff]   ;;  %vm6607_vm11 = vcmask 122880  }
 0x4c4   :  { %v1259_v49 = vpop.f32.mrf.mxu1 }
 0x4c5   :  { %v1271_v57 = vadd.f32 %v1259_v49, %v1048_v25  ;;  %v1109_v45 = vadd.s32 %v1108_v37, %v1104_v39 }
 0x4c6   :  { %v4651_v30 = vpop.f32.mrf.mxu1 }
 0x4c7   :  { %v6237_v54 = vpack.c.bf16 %v1271_v57, %v1270_v13  ;;  %v1110_v25 = vadd.s32 536870912, %v1109_v45 }
 0x4c8   :  { %v6239_v8 = vpop.f32.mrf.mxu1 }
 0x4c9   :  { %v6278_v49 = vshrl.u32 %v1110_v25, 30 }
 0x4ca   :  { %v4654_v51 = vpop.f32.mrf.mxu1 }
 0x4cb   :  { %v1112_v13 = vshll.u32 %v6278_v49, 30  ;;  %v1135_v23 = vsub.s32 4, %v6278_v49 }
 0x4cd   :  { %v1113_v57 = vsub.s32 %v1109_v45, %v1112_v13  ;;  %v1136_v3 = vsel %vm1051_vm9, %v1135_v23, %v6278_v49  ;;  %v4269_v23 = vld [vmem:[#allocation11 + $0xa] ss:$0 sm:$0xff] }
 0x4ce   :  { %v1138_v0 = vsel %vm6317_vm5, 0, %v1136_v3 }
 0x4cf   :  { %v1115_v19 = vsub.s32 0, %v1113_v57  ;;  %v1142_v52 = vadd.s32 3, %v1138_v0 }
 0x4d1   :  { %v4216_v30 = vmin.u32 %v1115_v19, %v1113_v57  ;;  %v1143_v37 = vand.u32 3, %v1142_v52 }
 0x4d3   :  { %v1117_v51 = vclz %v4216_v30  ;;  %vm1145_vm10 = vcmp.eq.s32.totalorder %v1143_v37, 0  ;;  %vm1148_vm0 = vcmp.eq.s32.totalorder %v1143_v37, 2  ;;  %vm1144_vm7 = vcmp.lt.s32.totalorder %v1143_v37, 2 }
 0x4d5   :  { %v4217_v5 = vadd.s32 4294967294, %v1117_v51  ;;  %v5127_v51 = vld [vmem:[#allocation8 + $0x104] ss:$8 sps:$4 sm:$0xff]  }
 0x4d7   :  { %vm4218_vm6 = vcmp.lt.s32.totalorder %v4217_v5, 0 }
 0x4d8   :  { %v1120_v17 = vsel %vm4218_vm6, 0, %v4217_v5  ;;  %v5128_v5 = vld [vmem:[#allocation8 + $0xf4] ss:$8 sps:$4 sm:$0xff]   ;;  %vm6608_vm6 = vmmov %vm6605_vm1 }
 0x4d9   :  { %v1125_v48 = vsub.s32 4294967266, %v1120_v17  ;;  %v1121_v16 = vsub.s32 32, %v1120_v17  ;;  %v1122_v35 = vshll.u32 %v1113_v57, %v1120_v17  ;;  %v5130_v17 = vld [vmem:[#allocation8 + $0xd4] ss:$8 sps:$4 sm:$0xff]  }
 0x4db   :  { %v1126_v27 = vadd.s32 127, %v1125_v48  ;;  %v1123_v60 = vshrl.u32 %v1105_v58, %v1121_v16  ;;  %v5132_v48 = vld [vmem:[#allocation8 + $0xb4] ss:$8 sps:$4 sm:$0xff]  }
 0x4dc   :  { %v5134_v16 = vld [vmem:[#allocation8 + $0x94] ss:$8 sps:$4 sm:$0xff]  }
 0x4dd   :  { %v1127_v33 = vshll.u32 %v1126_v27, 23  ;;  %v1124_v34 = vor.u32 %v1123_v60, %v1122_v35  ;;  %v5133_v27 = vld [vmem:[#allocation8 + $0xa4] ss:$8 sps:$4 sm:$0xff]  }
 0x4df   :  { %v1128_v32 = vor.u32 4788187, %v1127_v33  ;;  %v1131_v42 = vcvt.s32.f32 %v1124_v34 }
 0x4e1   :  { %v1129_v4 = vand.u32 2147483647, %v1128_v32 }
 0x4e3   :  { %v1132_v15 = vmul.f32 %v1131_v42, %v1129_v4 }
 0x4e5   :  { %v1133_v56 = vxor.u32 2147483648, %v1132_v15 }
 0x4e7   :  { %v1134_v40 = vsel %vm1051_vm9, %v1133_v56, %v1132_v15  ;;  %vm4037_vm9 = vcmask 254080  }
 0x4e8   :  { %v1137_v63 = vsel %vm6317_vm5, %v6243_v53, %v1134_v40  ;;  %v5129_v53 = vld [vmem:[#allocation8 + $0xe4] ss:$8 sps:$4 sm:$0xff]   ;;  %vm6609_vm5 = vmmov %vm6607_vm11 }
 0x4e9   :  { %5261 = vcosq.f32 %v1137_v63 }
 0x4ea   :  { %5263 = vsinq.f32 %v1137_v63 }
 0x4f6   :  { %v5262_v12 = vpop.eup %5261 }
 0x4f7   :  { %v5264_v14 = vpop.eup %5263  ;;  %v1149_v45 = vxor.u32 2147483648, %v5262_v12 }
 0x4f8   :  { %v1146_v39 = vxor.u32 2147483648, %v5264_v14 }
 0x4f9   :  { %v1150_v49 = vsel %vm1148_vm0, %v1149_v45, %v5264_v14  ;;  %vm3938_vm0 = vcmask 48128  }
 0x4fa   :  { %v1147_v25 = vsel %vm1145_vm10, %v5262_v12, %v1146_v39  ;;  %vm4044_vm10 = vcmask 696984  }
 0x4fb   :  { %v1151_v13 = vsel %vm1144_vm7, %v1147_v25, %v1150_v49  ;;  %vm4051_vm7 = vcmask 385280  }
 0x4fc   :  { %v1152_v57 = vsel %vm1141_vm13, nan, %v1151_v13  ;;  %vm4058_vm13 = vcmask 721584  }
 0x4fd   :  { %v1272_v19 = vadd.f32 %v6239_v8, %v1152_v57  ;;  %v5131_v8 = vld [vmem:[#allocation8 + $0xc4] ss:$8 sps:$4 sm:$0xff]  }
 0x4ff   :  { %v6356_v30 = vpack.c.bf16 %v1272_v19, %v1272_v19 }
 0x54e   :  { %v1618_v18 = vpop.f32.mrf.mxu1 }
 0x550   :  { %v1620_v10 = vpop.f32.mrf.mxu1 }
 0x552   :  { %v1622_v22 = vpop.f32.mrf.mxu1 }
 0x553   :  { %v1627_v9 = vpack.c.bf16 %v1622_v22, %v1618_v18 }
 0x554   :  { %v1624_v24 = vpop.f32.mrf.mxu1 }
 0x555   :  { %v1734_v7 = vsel %vm1651_vm12, %v1627_v9, 0  ;;  %v1628_v28 = vpack.c.bf16 %v1624_v24, %v1620_v10 }
 0x556   :  { %4681 = vmatpush3.bf16.msra.mxu0 %v1734_v7 }
 0x557   :  { %v1653_v62 = vsel %vm1651_vm12, %v1628_v28, 0  ;;  %4722 = vmatprep.subr.bf16.mxu0 %v5464_v20 }
 0x558   :  { %4667 = vmatpush3.bf16.msra.mxu1 %v1653_v62 }
 0x559   :  { %4683 = vmatmul.mubr.msk.bf16.vlgmr.msra.gmra.mxu0 %vm329_vm4, %v6283_v2  ;;  %4694 = vmatprep.subr.bf16.mxu1 %v5464_v20 }
 0x55a   :  { %4686 = vmatprep.mubr.msk.bf16.mxu0 %vm5465_vm2, %v5464_v20  ;;  %4723 = vmatpush3.bf16.msra.mxu0 %v5127_v51 }
 0x55b   :  { %4669 = vmatmul.mubr.msk.bf16.vlgmr.msra.gmra.mxu1 %vm329_vm4, %v6286_v59  ;;  %4724 = vmatprep.subr.bf16.mxu0 %v5464_v20 }
 0x55c   :  { %4695 = vmatpush3.bf16.msra.mxu1 %v5115_v44  ;;  %4672 = vmatprep.mubr.msk.bf16.mxu1 %vm5465_vm2, %v5464_v20 }
 0x55d   :  { %4696 = vmatprep.subr.bf16.mxu1 %v5464_v20 }
 0x55e   :  { %4725 = vmatpush3.bf16.msra.mxu0 %v5128_v5 }
 0x55f   :  { %4726 = vmatprep.subr.bf16.mxu0 %v5464_v20 }
 0x560   :  { %4697 = vmatpush3.bf16.msra.mxu1 %v5116_v61 }
 0x561   :  { %4698 = vmatprep.subr.bf16.mxu1 %v5464_v20  ;;  %4687 = vmatmul.mubr.msk.bf16.gmra.mxu0 %vm329_vm4, %v6299_v55 }
 0x562   :  { %4690 = vmatprep.mubr.msk.bf16.mxu0 %vm5465_vm2, %v5464_v20  ;;  %4727 = vmatpush3.bf16.msra.mxu0 %v5129_v53 }
 0x563   :  { %4673 = vmatmul.mubr.msk.bf16.gmra.mxu1 %vm329_vm4, %v6301_v43  ;;  %4728 = vmatprep.subr.bf16.mxu0 %v5464_v20 }
 0x564   :  { %4699 = vmatpush3.bf16.msra.mxu1 %v5117_v31  ;;  %4676 = vmatprep.mubr.msk.bf16.mxu1 %vm5465_vm2, %v5464_v20 }
 0x565   :  { %4700 = vmatprep.subr.bf16.mxu1 %v5464_v20 }
 0x566   :  { %4729 = vmatpush3.bf16.msra.mxu0 %v5130_v17 }
 0x567   :  { %4730 = vmatprep.subr.bf16.mxu0 %v5464_v20 }
 0x568   :  { %4701 = vmatpush3.bf16.msra.mxu1 %v5120_v1 }
 0x569   :  { %4702 = vmatprep.subr.bf16.mxu1 %v5464_v20  ;;  %4691 = vmatmul.mubr.msk.bf16.gmra.mxu0 %vm329_vm4, %v6322_v50 }
 0x56a   :  { %4738 = vmatprep.mubr.msk.bf16.mxu0 %vm5465_vm2, %v5464_v20  ;;  %4731 = vmatpush3.bf16.msra.mxu0 %v5131_v8 }
 0x56b   :  { %4677 = vmatmul.mubr.msk.bf16.gmra.mxu1 %vm329_vm4, %v6327_v29  ;;  %4732 = vmatprep.subr.bf16.mxu0 %v5464_v20 }
 0x56c   :  { %4703 = vmatpush3.bf16.msra.mxu1 %v5121_v47  ;;  %4710 = vmatprep.mubr.msk.bf16.mxu1 %vm5465_vm2, %v5464_v20 }
 0x56d   :  { %4704 = vmatprep.subr.bf16.mxu1 %v5464_v20 }
 0x56e   :  { %4733 = vmatpush3.bf16.msra.mxu0 %v5132_v48 }
 0x56f   :  { %4734 = vmatprep.subr.bf16.mxu0 %v5464_v20 }
 0x570   :  { %4705 = vmatpush3.bf16.msra.mxu1 %v5123_v21 }
 0x571   :  { %4706 = vmatprep.subr.bf16.mxu1 %v5464_v20 }
 0x572   :  { %4735 = vmatpush3.bf16.msra.mxu0 %v5133_v27 }
 0x573   :  { %4736 = vmatprep.subr.bf16.mxu0 %v5464_v20 }
 0x574   :  { %4707 = vmatpush3.bf16.msra.mxu1 %v5125_v6 }
 0x575   :  { %4708 = vmatprep.subr.bf16.mxu1 %v5464_v20 }
 0x576   :  { %4737 = vmatpush3.bf16.msra.mxu0 %v5134_v16 }
 0x577   :  { %4760 = vmatprep.subr.bf16.mxu0 %v5464_v20 }
 0x578   :  { %4709 = vmatpush3.bf16.msra.mxu1 %v5126_v26 }
 0x579   :  { %4750 = vmatprep.subr.bf16.mxu1 %v5464_v20 }
 0x57b   :  { %4711 = vmatmul.mubr.bf16.vlgmr.msra.gmra.mxu1 %v6233_v11 }
 0x57c   :  { %4714 = vmatprep.mubr.msk.bf16.mxu1 %vm5465_vm2, %v5464_v20 }
 0x583   :  { %4715 = vmatmul.mubr.bf16.gmra.mxu1 %v6237_v54 }
 0x584   :  { %4718 = vmatprep.mubr.msk.bf16.mxu1 %vm5465_vm2, %v5464_v20 }
 0x58b   :  { %4719 = vmatmul.mubr.bf16.gmra.mxu1 %v6356_v30 }
 0x58c   :  { %4756 = vmatprep.mubr.msk.bf16.mxu1 %vm5465_vm2, %v5464_v20 }
 0x619   :  { %v1770_v18 = vpop.f32.mrf.mxu0 }
 0x61b   :  { %v1689_v58 = vpop.f32.mrf.mxu1  ;;  %v4684_v33 = vpop.f32.mrf.mxu0 }
 0x61c   :  { %v1771_v63 = vadd.f32 %v1770_v18, %v1689_v58 }
 0x61d   :  { %v4670_v10 = vpop.f32.mrf.mxu1  ;;  %v1773_v60 = vpop.f32.mrf.mxu0 }
 0x61f   :  { %v1692_v22 = vpop.f32.mrf.mxu1  ;;  %v4685_v35 = vpop.f32.mrf.mxu0 }
 0x620   :  { %v1774_v6 = vadd.f32 %v1773_v60, %v1692_v22 }
 0x621   :  { %v4671_v32 = vpop.f32.mrf.mxu1  ;;  %v1778_v9 = vpop.f32.mrf.mxu0 }
 0x623   :  { %v1697_v24 = vpop.f32.mrf.mxu1  ;;  %v4688_v34 = vpop.f32.mrf.mxu0 }
 0x624   :  { %v1779_v37 = vadd.f32 %v1778_v9, %v1697_v24 }
 0x625   :  { %v4674_v7 = vpop.f32.mrf.mxu1  ;;  %v1781_v28 = vpop.f32.mrf.mxu0 }
 0x627   :  { %v1700_v4 = vpop.f32.mrf.mxu1  ;;  %v4689_v62 = vpop.f32.mrf.mxu0 }
 0x628   :  { %v1782_v57 = vadd.f32 %v1781_v28, %v1700_v4 }
 0x629   :  { %v4675_v44 = vpop.f32.mrf.mxu1  ;;  %v1786_v42 = vpop.f32.mrf.mxu0 }
 0x62b   :  { %v1705_v15 = vpop.f32.mrf.mxu1  ;;  %v4692_v61 = vpop.f32.mrf.mxu0 }
 0x62c   :  { %v1787_v8 = vadd.f32 %v1786_v42, %v1705_v15 }
 0x62d   :  { %v4678_v56 = vpop.f32.mrf.mxu1  ;;  %v1789_v31 = vpop.f32.mrf.mxu0 }
 0x62f   :  { %v1708_v40 = vpop.f32.mrf.mxu1  ;;  %v4693_v1 = vpop.f32.mrf.mxu0 }
 0x631   :  { %v4679_v46 = vpop.f32.mrf.mxu1 }
 0x63b   :  { %v1890_v47 = vpop.f32.mrf.mxu1 }
 0x63c   :  { %v1912_v21 = vadd.f32 %v1890_v47, %v1771_v63 }
 0x63d   :  { %v4712_v3 = vpop.f32.mrf.mxu1 }
 0x63e   :  { %v1922_v0 = vadd.f32 %v4269_v23, %v1912_v21 }
 0x63f   :  { %v1893_v26 = vpop.f32.mrf.mxu1 }
 0x640   :  { %v4270_v52 = vmul.f32 -1.442695, %v1922_v0  ;;  %v1913_v12 = vadd.f32 %v1893_v26, %v1774_v6  ;;  %v5144_v6 = vld [vmem:[#allocation8 + $0x184] ss:$8 sps:$4 sm:$0xff]  }
 0x641   :  { %v4713_v14 = vpop.f32.mrf.mxu1  ;;  %v5146_v26 = vld [vmem:[#allocation8 + $0x164] ss:$8 sps:$4 sm:$0xff]  }
 0x642   :  { %5265 = vpow2.f32 %v4270_v52  ;;  %v1923_v39 = vadd.f32 %v4269_v23, %v1913_v12  ;;  %v5147_v52 = vld [vmem:[#allocation8 + $0x154] ss:$8 sps:$4 sm:$0xff]   ;;  %v5148_v12 = vld [vmem:[#allocation8 + $0x144] ss:$8 sps:$4 sm:$0xff]  }
 0x643   :  { %v1898_v45 = vpop.f32.mrf.mxu1  ;;  %v5149_v14 = vld [vmem:[#allocation8 + $0x134] ss:$8 sps:$4 sm:$0xff]  }
 0x644   :  { %v4271_v25 = vmul.f32 -1.442695, %v1923_v39  ;;  %v1914_v49 = vadd.f32 %v1898_v45, %v1779_v37 }
 0x645   :  { %v4716_v13 = vpop.f32.mrf.mxu1 }
 0x646   :  { %5267 = vpow2.f32 %v4271_v25  ;;  %v1924_v19 = vadd.f32 %v4269_v23, %v1914_v49 }
 0x647   :  { %v1901_v51 = vpop.f32.mrf.mxu1 }
 0x648   :  { %v4272_v5 = vmul.f32 -1.442695, %v1924_v19  ;;  %v1915_v53 = vadd.f32 %v1901_v51, %v1782_v57  ;;  %v4275_v57 = vld [vmem:[#allocation11 + $0xb] ss:$0 sm:$0xff] }
 0x649   :  { %v4717_v17 = vpop.f32.mrf.mxu1 }
 0x64a   :  { %5269 = vpow2.f32 %v4272_v5  ;;  %v1925_v48 = vadd.f32 %v4269_v23, %v1915_v53 }
 0x64b   :  { %v1906_v27 = vpop.f32.mrf.mxu1 }
 0x64c   :  { %v4273_v16 = vmul.f32 -1.442695, %v1925_v48  ;;  %v1916_v18 = vadd.f32 %v1906_v27, %v1787_v8 }
 0x64d   :  { %v4720_v58 = vpop.f32.mrf.mxu1 }
 0x64e   :  { %5271 = vpow2.f32 %v4273_v16  ;;  %v1926_v33 = vadd.f32 %v4269_v23, %v1916_v18 }
 0x64f   :  { %v5266_v10 = vpop.eup %5265  ;;  %v1909_v60 = vpop.f32.mrf.mxu1 }
 0x650   :  { %v1942_v22 = vadd.f32 1.0, %v5266_v10  ;;  %v4274_v35 = vmul.f32 -1.442695, %v1926_v33 }
 0x651   :  { %v4721_v32 = vpop.f32.mrf.mxu1 }
 0x652   :  { %5273 = vpow2.f32 %v4274_v35 }
 0x653   :  { %v5268_v9 = vpop.eup %5267  ;;  %5275 = vrcp.f32 %v1942_v22 }
 0x654   :  { %v1943_v24 = vadd.f32 1.0, %v5268_v9 }
 0x656   :  { %5277 = vrcp.f32 %v1943_v24 }
 0x657   :  { %v5270_v34 = vpop.eup %5269 }
 0x658   :  { %v1944_v7 = vadd.f32 1.0, %v5270_v34 }
 0x65a   :  { %5279 = vrcp.f32 %v1944_v7 }
 0x65b   :  { %v5272_v28 = vpop.eup %5271 }
 0x65c   :  { %v1945_v4 = vadd.f32 1.0, %v5272_v28 }
 0x65e   :  { %5281 = vrcp.f32 %v1945_v4 }
 0x65f   :  { %v5274_v62 = vpop.eup %5273 }
 0x660   :  { %v5276_v44 = vpop.eup %5275  ;;  %v1946_v42 = vadd.f32 1.0, %v5274_v62 }
 0x661   :  { %v1957_v61 = vmul.f32 %v5276_v44, %v1922_v0  ;;  %v5145_v0 = vld [vmem:[#allocation8 + $0x174] ss:$8 sps:$4 sm:$0xff]  }
 0x662   :  { %5283 = vrcp.f32 %v1946_v42 }
 0x663   :  { %v5278_v15 = vpop.eup %5277 }
 0x664   :  { %v1958_v56 = vmul.f32 %v5278_v15, %v1923_v39 }
 0x666   :  { %v1978_v31 = vpack.c.bf16 %v1958_v56, %v1957_v61 }
 0x667   :  { %v5280_v40 = vpop.eup %5279 }
 0x668   :  { %4739 = vmatmul.mubr.bf16.vlgmr.msra.gmra.mxu0 %v1978_v31  ;;  %v1959_v46 = vmul.f32 %v5280_v40, %v1924_v19 }
 0x669   :  { %4742 = vmatprep.mubr.msk.bf16.mxu0 %vm5465_vm2, %v5464_v20  ;;  %4761 = vmatpush3.bf16.msra.mxu0 %v5144_v6 }
 0x66a   :  { %4762 = vmatprep.subr.bf16.mxu0 %v5464_v20 }
 0x66b   :  { %v5282_v1 = vpop.eup %5281 }
 0x66c   :  { %v1960_v63 = vmul.f32 %v5282_v1, %v1925_v48 }
 0x66d   :  { %4763 = vmatpush3.bf16.msra.mxu0 %v5145_v0 }
 0x66e   :  { %v1979_v47 = vpack.c.bf16 %v1960_v63, %v1959_v46  ;;  %4764 = vmatprep.subr.bf16.mxu0 %v5464_v20 }
 0x66f   :  { %v5284_v23 = vpop.eup %5283 }
 0x670   :  { %4743 = vmatmul.mubr.bf16.gmra.mxu0 %v1979_v47  ;;  %v1961_v21 = vmul.f32 %v5284_v23, %v1926_v33 }
 0x671   :  { %4746 = vmatprep.mubr.msk.bf16.mxu0 %vm5465_vm2, %v5464_v20  ;;  %4765 = vmatpush3.bf16.msra.mxu0 %v5146_v26  ;;  %v6384_v26 = vld [vmem:[#allocation8 + $0x4e0] ss:$8 sps:$4 sm:$0x1f]  }
 0x672   :  { %v1980_v3 = vpack.c.bf16 %v1961_v21, %v1961_v21  ;;  %4766 = vmatprep.subr.bf16.mxu0 %v5464_v20 }
 0x675   :  { %4767 = vmatpush3.bf16.msra.mxu0 %v5147_v52  ;;  %v5136_v52 = vld [vmem:[#allocation8 + $0x180] ss:$8 sps:$4 sm:$0xff]  }
 0x676   :  { %4768 = vmatprep.subr.bf16.mxu0 %v5464_v20 }
 0x678   :  { %4747 = vmatmul.mubr.bf16.gmra.mxu0 %v1980_v3 }
 0x679   :  { %4776 = vmatprep.mubr.msk.bf16.mxu0 %vm5465_vm2, %v5464_v20  ;;  %4769 = vmatpush3.bf16.msra.mxu0 %v5148_v12  ;;  %v5137_v12 = vld [vmem:[#allocation8 + $0x170] ss:$8 sps:$4 sm:$0xff]  }
 0x67a   :  { %4770 = vmatprep.subr.bf16.mxu0 %v5464_v20 }
 0x67d   :  { %4771 = vmatpush3.bf16.msra.mxu0 %v5149_v14  ;;  %v5138_v14 = vld [vmem:[#allocation8 + $0x160] ss:$8 sps:$4 sm:$0xff]  }
 0x67e   :  { %4772 = vmatprep.subr.bf16.mxu0 %v5464_v20 }
 0x728   :  { %v2068_v37 = vpop.f32.mrf.mxu0 }
 0x729   :  { %v2069_v27 = vadd.f32 %v4275_v57, %v2068_v37  ;;  %v5139_v37 = vld [vmem:[#allocation8 + $0x150] ss:$8 sps:$4 sm:$0xff]  }
 0x72a   :  { %v4740_v39 = vpop.f32.mrf.mxu0 }
 0x72b   :  { %v4284_v22 = vmul.f32 -1.442695, %v2069_v27  ;;  %v5140_v39 = vld [vmem:[#allocation8 + $0x140] ss:$8 sps:$4 sm:$0xff]  }
 0x72c   :  { %v2071_v45 = vpop.f32.mrf.mxu0 }
 0x72d   :  { %v2072_v17 = vadd.f32 %v4275_v57, %v2071_v45  ;;  %v5141_v45 = vld [vmem:[#allocation8 + $0x130] ss:$8 sps:$4 sm:$0xff]  }
 0x72e   :  { %v4741_v25 = vpop.f32.mrf.mxu0 }
 0x72f   :  { %v4285_v33 = vmul.f32 -1.442695, %v2072_v17  ;;  %v5142_v25 = vld [vmem:[#allocation8 + $0x120] ss:$8 sps:$4 sm:$0xff]  }
 0x730   :  { %v2076_v49 = vpop.f32.mrf.mxu0 }
 0x731   :  { %v2077_v51 = vadd.f32 %v4275_v57, %v2076_v49  ;;  %v5143_v49 = vld [vmem:[#allocation8 + $0x110] ss:$8 sps:$4 sm:$0xff]  }
 0x732   :  { %v4744_v13 = vpop.f32.mrf.mxu0 }
 0x733   :  { %v4286_v16 = vmul.f32 -1.442695, %v2077_v51  ;;  %v6604_v13 = vmov 0  }
 0x734   :  { %v2079_v19 = vpop.f32.mrf.mxu0 }
 0x735   :  { %v2080_v5 = vadd.f32 %v4275_v57, %v2079_v19  ;;  %v5151_v19 = vld [vmem:[#allocation8 + $0x114] ss:$8 sps:$4 sm:$0xff]  }
 0x736   :  { %v4745_v53 = vpop.f32.mrf.mxu0 }
 0x737   :  { %v4287_v8 = vmul.f32 -1.442695, %v2080_v5  ;;  %v6402_v53 = vpop.permute.xlu1 %2189 }
 0x738   :  { %v2084_v48 = vpop.f32.mrf.mxu0 }
 0x739   :  { %v2085_v18 = vadd.f32 %v4275_v57, %v2084_v48  ;;  %5285 = vpow2.f32 %v4287_v8  ;;  %v5150_v57 = vld [vmem:[#allocation8 + $0x124] ss:$8 sps:$4 sm:$0xff]  }
 0x73a   :  { %v4748_v58 = vpop.f32.mrf.mxu0  ;;  %5287 = vpow2.f32 %v4286_v16  ;;  %4773 = vmatpush3.bf16.msra.mxu0 %v5150_v57 }
 0x73b   :  { %v4288_v10 = vmul.f32 -1.442695, %v2085_v18  ;;  %4774 = vmatprep.subr.bf16.mxu0 %v5464_v20 }
 0x73c   :  { %v2087_v60 = vpop.f32.mrf.mxu0 }
 0x73d   :  { %5289 = vpow2.f32 %v4288_v10  ;;  %v5152_v60 = vld [vmem:[#allocation8 + $0x200] ss:$8 sps:$4 sm:$0xff]  }
 0x73e   :  { %v4749_v35 = vpop.f32.mrf.mxu0  ;;  %5291 = vpow2.f32 %v4285_v33  ;;  %4775 = vmatpush3.bf16.msra.mxu0 %v5151_v19 }
 0x73f   :  { %5293 = vpow2.f32 %v4284_v22  ;;  %4800 = vmatprep.subr.bf16.mxu0 %v5464_v20  ;;  %v5153_v22 = vld [vmem:[#allocation8 + $0x1f0] ss:$8 sps:$4 sm:$0xff]   ;;  %v5154_v35 = vld [vmem:[#allocation8 + $0x1e0] ss:$8 sps:$4 sm:$0xff]  }
 0x746   :  { %v5286_v32 = vpop.eup %5285 }
 0x747   :  { %v5288_v9 = vpop.eup %5287  ;;  %v2108_v34 = vadd.f32 1.0, %v5286_v32  ;;  %v5155_v32 = vld [vmem:[#allocation8 + $0x1d0] ss:$8 sps:$4 sm:$0xff]  }
 0x748   :  { %v2107_v4 = vadd.f32 1.0, %v5288_v9  ;;  %v5156_v9 = vld [vmem:[#allocation8 + $0x1c0] ss:$8 sps:$4 sm:$0xff]  }
 0x74a   :  { %v5290_v24 = vpop.eup %5289 }
 0x74b   :  { %v5292_v7 = vpop.eup %5291  ;;  %v2109_v28 = vadd.f32 1.0, %v5290_v24  ;;  %v5157_v24 = vld [vmem:[#allocation8 + $0x1b0] ss:$8 sps:$4 sm:$0xff]  }
 0x74c   :  { %v5294_v62 = vpop.eup %5293  ;;  %v2106_v44 = vadd.f32 1.0, %v5292_v7  ;;  %v5159_v7 = vld [vmem:[#allocation8 + $0x190] ss:$8 sps:$4 sm:$0xff]  }
 0x74d   :  { %5295 = vrcp.f32 %v2109_v28  ;;  %v2105_v42 = vadd.f32 1.0, %v5294_v62 }
 0x74e   :  { %5297 = vrcp.f32 %v2108_v34  ;;  %v5158_v34 = vld [vmem:[#allocation8 + $0x1a0] ss:$8 sps:$4 sm:$0xff]  }
 0x74f   :  { %5299 = vrcp.f32 %v2107_v4  ;;  %v4307_v4 = vld [vmem:[#allocation11 + $0xc] ss:$0 sm:$0xff] }
 0x750   :  { %5301 = vrcp.f32 %v2106_v44 }
 0x751   :  { %5303 = vrcp.f32 %v2105_v42 }
 0x75a   :  { %v5296_v15 = vpop.eup %5295 }
 0x75b   :  { %v5298_v61 = vpop.eup %5297  ;;  %v2124_v56 = vmul.f32 %v5296_v15, %v2085_v18 }
 0x75c   :  { %v5300_v31 = vpop.eup %5299  ;;  %v2123_v1 = vmul.f32 %v5298_v61, %v2080_v5 }
 0x75d   :  { %v2127_v40 = vpack.c.bf16 %v2124_v56, %v2124_v56  ;;  %v5302_v46 = vpop.eup %5301  ;;  %v2122_v47 = vmul.f32 %v5300_v31, %v2077_v51 }
 0x75e   :  { %v5304_v23 = vpop.eup %5303  ;;  %v2121_v21 = vmul.f32 %v5302_v46, %v2072_v17  ;;  %v6404_v17 = vpop.permute.xlu0 %2184 }
 0x75f   :  { %v2139_v63 = vsel %vm2137_vm14, %v2127_v40, 0  ;;  %v2126_v3 = vpack.c.bf16 %v2123_v1, %v2122_v47  ;;  %v2120_v6 = vmul.f32 %v5304_v23, %v2069_v27 }
 0x760   :  { %4751 = vmatpush3.bf16.msra.mxu1 %v2139_v63 }
 0x761   :  { %4752 = vmatprep.subr.bf16.mxu1 %v5464_v20  ;;  %v2125_v0 = vpack.c.bf16 %v2121_v21, %v2120_v6 }
 0x764   :  { %4753 = vmatpush3.bf16.msra.mxu1 %v2126_v3 }
 0x765   :  { %4754 = vmatprep.subr.bf16.mxu1 %v5464_v20 }
 0x768   :  { %4755 = vmatpush3.bf16.msra.mxu1 %v2125_v0 }
 0x769   :  { %4780 = vmatprep.subr.bf16.mxu1 %v5464_v20 }
 0x76b   :  { %4757 = vmatmul.mubr.msk.bf16.vlgmr.msra.gmra.mxu1 %vm2133_vm15, %v6384_v26 }
 0x76c   :  { %4781 = vmatpush3.bf16.msra.mxu1 %v5136_v52  ;;  %4796 = vmatprep.mubr.msk.bf16.mxu1 %vm5465_vm2, %v5464_v20 }
 0x76d   :  { %4782 = vmatprep.subr.bf16.mxu1 %v5464_v20 }
 0x770   :  { %4783 = vmatpush3.bf16.msra.mxu1 %v5137_v12  ;;  %v4310_v12 = vld [vmem:[#allocation11 + $0xd] ss:$0 sm:$0xff] }
 0x771   :  { %4784 = vmatprep.subr.bf16.mxu1 %v5464_v20 }
 0x774   :  { %4785 = vmatpush3.bf16.msra.mxu1 %v5138_v14 }
 0x775   :  { %4786 = vmatprep.subr.bf16.mxu1 %v5464_v20 }
 0x778   :  { %4787 = vmatpush3.bf16.msra.mxu1 %v5139_v37 }
 0x779   :  { %4788 = vmatprep.subr.bf16.mxu1 %v5464_v20 }
 0x77c   :  { %4789 = vmatpush3.bf16.msra.mxu1 %v5140_v39 }
 0x77d   :  { %4790 = vmatprep.subr.bf16.mxu1 %v5464_v20 }
 0x780   :  { %4791 = vmatpush3.bf16.msra.mxu1 %v5141_v45 }
 0x781   :  { %4792 = vmatprep.subr.bf16.mxu1 %v5464_v20 }
 0x784   :  { %4793 = vmatpush3.bf16.msra.mxu1 %v5142_v25 }
 0x785   :  { %4794 = vmatprep.subr.bf16.mxu1 %v5464_v20 }
 0x788   :  { %4795 = vmatpush3.bf16.msra.mxu1 %v5143_v49 }
 0x78b   :  { %4797 = vmatmul.mubr.bf16.vlgmr.msra.gmra.mxu1 %v6148_v41 }
 0x78c   :  { %2720 = vmatprep.mubr.bf16.mxu1 %v6604_v13 }
 0x82b   :  { %v2175_v51 = vpop.f32.mrf.mxu1 }
 0x82c   :  { %v2192_v48 = vmul.f32 %v6404_v17, %v2175_v51 }
 0x82d   :  { %v4758_v5 = vpop.f32.mrf.mxu1 }
 0x82f   :  { %v2178_v8 = vpop.f32.mrf.mxu1 }
 0x830   :  { %v2193_v41 = vmul.f32 %v6402_v53, %v2178_v8 }
 0x831   :  { %v4759_v27 = vpop.f32.mrf.mxu1 }
 0x832   :  { %v2226_v16 = vpack.c.bf16 %v2193_v41, %v2192_v48 }
 0x834   :  { %4777 = vmatmul.mubr.bf16.vlgmr.msra.gmra.mxu0 %v2226_v16 }
 0x835   :  { %4816 = vmatprep.mubr.msk.bf16.mxu0 %vm5465_vm2, %v5464_v20  ;;  %4801 = vmatpush3.bf16.msra.mxu0 %v5152_v60 }
 0x836   :  { %4802 = vmatprep.subr.bf16.mxu0 %v5464_v20 }
 0x839   :  { %4803 = vmatpush3.bf16.msra.mxu0 %v5153_v22 }
 0x83a   :  { %4804 = vmatprep.subr.bf16.mxu0 %v5464_v20 }
 0x83d   :  { %4805 = vmatpush3.bf16.msra.mxu0 %v5154_v35 }
 0x83e   :  { %4806 = vmatprep.subr.bf16.mxu0 %v5464_v20 }
 0x841   :  { %4807 = vmatpush3.bf16.msra.mxu0 %v5155_v32 }
 0x842   :  { %4808 = vmatprep.subr.bf16.mxu0 %v5464_v20 }
 0x845   :  { %4809 = vmatpush3.bf16.msra.mxu0 %v5156_v9 }
 0x846   :  { %4810 = vmatprep.subr.bf16.mxu0 %v5464_v20 }
 0x849   :  { %4811 = vmatpush3.bf16.msra.mxu0 %v5157_v24 }
 0x84a   :  { %4812 = vmatprep.subr.bf16.mxu0 %v5464_v20 }
 0x84b   :  { %v2398_v18 = vpop.f32.mrf.mxu1 }
 0x84d   :  { %v4798_v58 = vpop.f32.mrf.mxu1  ;;  %4813 = vmatpush3.bf16.msra.mxu0 %v5158_v34 }
 0x84e   :  { %4814 = vmatprep.subr.bf16.mxu0 %v5464_v20 }
 0x84f   :  { %v2401_v33 = vpop.f32.mrf.mxu1 }
 0x851   :  { %v4799_v10 = vpop.f32.mrf.mxu1  ;;  %4815 = vmatpush3.bf16.msra.mxu0 %v5159_v7  ;;  %v5162_v7 = vld [vmem:[#allocation8 + $0x284] ss:$8 sps:$4 sm:$0xff]  }
 0x852   :  { %4820 = vmatprep.subr.bf16.mxu0 %v5464_v20  ;;  %2688 = vmatprep.subr.bf16.mxu1 %v5162_v7 }
 0x8f4   :  { %v2309_v28 = vpop.f32.mrf.mxu0 }
 0x8f5   :  { %v2399_v62 = vadd.f32 %v2398_v18, %v2309_v28  ;;  %v5165_v28 = vld [vmem:[#allocation8 + $0x274] ss:$8 sps:$4 sm:$0xff]  }
 0x8f6   :  { %v4778_v44 = vpop.f32.mrf.mxu0 }
 0x8f7   :  { %v2410_v42 = vadd.f32 %v4307_v4, %v2399_v62  ;;  %v5168_v62 = vld [vmem:[#allocation8 + $0x264] ss:$8 sps:$4 sm:$0xff]   ;;  %v5166_v44 = vld [vmem:[#allocation8 + $0x260] ss:$8 sps:$4 sm:$0xff]  }
 0x8f8   :  { %v2312_v15 = vpop.f32.mrf.mxu0 }
 0x8f9   :  { %v4308_v61 = vmul.f32 -1.442695, %v2410_v42  ;;  %v2402_v56 = vadd.f32 %v2401_v33, %v2312_v15  ;;  %v5169_v15 = vld [vmem:[#allocation8 + $0x250] ss:$8 sps:$4 sm:$0xff]  }
 0x8fa   :  { %v4779_v31 = vpop.f32.mrf.mxu0 }
 0x8fb   :  { %5305 = vpow2.f32 %v4308_v61  ;;  %v2411_v40 = vadd.f32 %v4307_v4, %v2402_v56  ;;  %v5163_v4 = vld [vmem:[#allocation8 + $0x270] ss:$8 sps:$4 sm:$0xff]   ;;  %v5174_v61 = vld [vmem:[#allocation8 + $0x244] ss:$8 sps:$4 sm:$0xff]   ;;  %v5172_v56 = vld [vmem:[#allocation8 + $0x240] ss:$8 sps:$4 sm:$0xff]  }
 0x8fc   :  { %v5177_v31 = vld [vmem:[#allocation8 + $0x234] ss:$8 sps:$4 sm:$0xff]  }
 0x8fd   :  { %v4309_v1 = vmul.f32 -1.442695, %v2411_v40 }
 0x8ff   :  { %5307 = vpow2.f32 %v4309_v1  ;;  %v5180_v1 = vld [vmem:[#allocation8 + $0x224] ss:$8 sps:$4 sm:$0xff]  }
 0x908   :  { %v5306_v46 = vpop.eup %5305 }
 0x909   :  { %v2418_v63 = vadd.f32 1.0, %v5306_v46  ;;  %v5178_v46 = vld [vmem:[#allocation8 + $0x220] ss:$8 sps:$4 sm:$0xff]  }
 0x90b   :  { %5309 = vrcp.f32 %v2418_v63  ;;  %v5183_v63 = vld [vmem:[#allocation8 + $0x214] ss:$8 sps:$4 sm:$0xff]  }
 0x90c   :  { %v5308_v47 = vpop.eup %5307 }
 0x90d   :  { %v2419_v23 = vadd.f32 1.0, %v5308_v47  ;;  %v5181_v47 = vld [vmem:[#allocation8 + $0x210] ss:$8 sps:$4 sm:$0xff]  }
 0x90f   :  { %5311 = vrcp.f32 %v2419_v23 }
 0x918   :  { %v5310_v21 = vpop.eup %5309 }
 0x919   :  { %v2424_v6 = vmul.f32 %v5310_v21, %v2410_v42  ;;  %v5171_v42 = vld [vmem:[#allocation8 + $0x254] ss:$8 sps:$4 sm:$0xff]  }
 0x91c   :  { %v5312_v3 = vpop.eup %5311 }
 0x91d   :  { %v2425_v0 = vmul.f32 %v5312_v3, %v2411_v40  ;;  %v5175_v40 = vld [vmem:[#allocation8 + $0x230] ss:$8 sps:$4 sm:$0xff]  }
 0x91f   :  { %v2442_v52 = vpack.c.bf16 %v2425_v0, %v2424_v6 }
 0x921   :  { %4817 = vmatmul.mubr.bf16.vlgmr.msra.gmra.mxu0 %v2442_v52 }
 0x922   :  { %4822 = vmatprep.mubr.msk.bf16.mxu0 %vm5465_vm2, %v5464_v20 }
 0x9e1   :  { %v2530_v14 = vpop.f32.mrf.mxu0 }
 0x9e2   :  { %v2531_v37 = vadd.f32 %v4310_v12, %v2530_v14 }
 0x9e3   :  { %v4818_v39 = vpop.f32.mrf.mxu0 }
 0x9e4   :  { %v4319_v45 = vmul.f32 -1.442695, %v2531_v37 }
 0x9e5   :  { %v2533_v25 = vpop.f32.mrf.mxu0 }
 0x9e6   :  { %5313 = vpow2.f32 %v4319_v45  ;;  %v2534_v49 = vadd.f32 %v4310_v12, %v2533_v25 }
 0x9e7   :  { %v4819_v13 = vpop.f32.mrf.mxu0 }
 0x9e8   :  { %v4320_v57 = vmul.f32 -1.442695, %v2534_v49 }
 0x9ea   :  { %5315 = vpow2.f32 %v4320_v57 }
 0x9f3   :  { %v5314_v19 = vpop.eup %5313 }
 0x9f4   :  { %v2543_v51 = vadd.f32 1.0, %v5314_v19 }
 0x9f6   :  { %5317 = vrcp.f32 %v2543_v51 }
 0x9f7   :  { %v5316_v5 = vpop.eup %5315 }
 0x9f8   :  { %v2544_v8 = vadd.f32 1.0, %v5316_v5 }
 0x9fa   :  { %5319 = vrcp.f32 %v2544_v8 }
 0xa03   :  { %v5318_v48 = vpop.eup %5317 }
 0xa04   :  { %v2549_v41 = vmul.f32 %v5318_v48, %v2531_v37  ;;  %v4321_v37 = vld [vmem:[#allocation11 + $0xe] ss:$0 sm:$0xff] }
 0xa06   :  { %v6421_v27 = vadd.f32 %v2549_v41, %v5730_v38 }
 0xa07   :  { %v5320_v16 = vpop.eup %5319 }
 0xa08   :  { %v2550_v18 = vmul.f32 %v5320_v16, %v2534_v49  ;;  %2555 = vadd.xlane.f32.xlu0 %v6421_v27  ;;  %v4322_v49 = vld [vmem:[#allocation11 + $0xf] ss:$0 sm:$0xff] }
 0xa0a   :  { %v6425_v58 = vadd.f32 %v2550_v18, %v5728_v36  ;;  %v5160_v36 = vld [vmem:[#allocation8 + $0x280] ss:$8 sps:$4 sm:$0xff]  }
 0xa0b   :  { %2689 = vmatpush1.bf16.msra.mxu1 %v5160_v36 }
 0xa0c   :  { %v2557_v33 = vsel %vm345_vm3, %v6425_v58, 0.0  ;;  %2690 = vmatprep.subr.bf16.mxu1 %v5165_v28 }
 0xa0d   :  { %2558 = vadd.xlane.f32.xlu1 %v2557_v33 }
 0xa0f   :  { %2691 = vmatpush1.bf16.msra.mxu1 %v5163_v4 }
 0xa10   :  { %2692 = vmatprep.subr.bf16.mxu1 %v5168_v62 }
 0xa13   :  { %2693 = vmatpush1.bf16.msra.mxu1 %v5166_v44 }
 0xa14   :  { %2694 = vmatprep.subr.bf16.mxu1 %v5171_v42 }
 0xa17   :  { %2695 = vmatpush1.bf16.msra.mxu1 %v5169_v15 }
 0xa18   :  { %2696 = vmatprep.subr.bf16.mxu1 %v5174_v61 }
 0xa1b   :  { %2697 = vmatpush1.bf16.msra.mxu1 %v5172_v56 }
 0xa1c   :  { %2698 = vmatprep.subr.bf16.mxu1 %v5177_v31 }
 0xa1f   :  { %2699 = vmatpush1.bf16.msra.mxu1 %v5175_v40 }
 0xa20   :  { %2700 = vmatprep.subr.bf16.mxu1 %v5180_v1 }
 0xa23   :  { %2701 = vmatpush1.bf16.msra.mxu1 %v5178_v46 }
 0xa24   :  { %2702 = vmatprep.subr.bf16.mxu1 %v5183_v63 }
 0xa27   :  { %2703 = vmatpush1.bf16.msra.mxu1 %v5181_v47 }
 0xa28   :  { %4834 = vmatprep.subr.bf16.mxu1 %v5464_v20 }
 0xa91   :  { %v2556_v10 = vpop.xlane.xlu0 %2555 }
 0xa92   :  { %v2560_v60 = vmul.f32 0.0078125, %v2556_v10 }
 0xa94   :  { %v2562_v22 = vsub.f32 %v6421_v27, %v2560_v60  ;;  %v5184_v60 = vld [vmem:[#allocation8 + $0x300] ss:$8 sps:$4 sm:$0xff]  }
 0xa96   :  { %v2559_v35 = vpop.xlane.xlu1 %2558  ;;  %v2564_v32 = vmul.f32 %v2562_v22, %v2562_v22 }
 0xa97   :  { %v2561_v9 = vmul.f32 0.0078125, %v2559_v35  ;;  %v5186_v35 = vld [vmem:[#allocation8 + $0x2e0] ss:$8 sps:$4 sm:$0xff]  }
 0xa98   :  { %2566 = vadd.xlane.f32.xlu0 %v2564_v32  ;;  %v5191_v32 = vld [vmem:[#allocation8 + $0x290] ss:$8 sps:$4 sm:$0xff]  }
 0xa99   :  { %v2563_v38 = vsub.f32 %v6425_v58, %v2561_v9  ;;  %v5195_v9 = vld [vmem:[#allocation8 + $0x2d4] ss:$8 sps:$4 sm:$0xff]  }
 0xa9b   :  { %v2565_v24 = vmul.f32 %v2563_v38, %v2563_v38 }
 0xa9d   :  { %v2568_v34 = vsel %vm345_vm3, %v2565_v24, 0.0  ;;  %v5199_v24 = vld [vmem:[#allocation8 + $0x294] ss:$8 sps:$4 sm:$0xff]  }
 0xa9e   :  { %2569 = vadd.xlane.f32.xlu1 %v2568_v34 }
 0xb21   :  { %v2567_v23 = vpop.xlane.xlu0 %2566 }
 0xb22   :  { %v2571_v21 = vmul.f32 0.0078125, %v2567_v23 }
 0xb24   :  { %v2573_v3 = vadd.f32 1e-05, %v2571_v21 }
 0xb26   :  { %5321 = vrsqrt.f32 %v2573_v3 }
 0xb27   :  { %v2570_v6 = vpop.xlane.xlu1 %2569 }
 0xb28   :  { %v2572_v0 = vmul.f32 0.0078125, %v2570_v6 }
 0xb2a   :  { %v2574_v52 = vadd.f32 1e-05, %v2572_v0 }
 0xb2c   :  { %5323 = vrsqrt.f32 %v2574_v52 }
 0xb33   :  { %v5322_v12 = vpop.eup %5321 }
 0xb34   :  { %v2577_v14 = vmul.f32 %v5322_v12, %v2562_v22  ;;  %v5185_v22 = vld [vmem:[#allocation8 + $0x2f0] ss:$8 sps:$4 sm:$0xff]  }
 0xb36   :  { %v2583_v25 = vmul.f32 %v4321_v37, %v2577_v14 }
 0xb38   :  { %v2589_v57 = vadd.f32 %v4322_v49, %v2583_v25 }
 0xb39   :  { %v5324_v39 = vpop.eup %5323 }
 0xb3a   :  { %v2578_v45 = vmul.f32 %v5324_v39, %v2563_v38  ;;  %v5198_v38 = vld [vmem:[#allocation8 + $0x2a4] ss:$8 sps:$4 sm:$0xff]   ;;  %v4353_v39 = vld [vmem:[#allocation11 + $0x10] ss:$0 sm:$0xff] }
 0xb3c   :  { %v2584_v13 = vmul.f32 %v4321_v37, %v2578_v45 }
 0xb3e   :  { %v2590_v19 = vadd.f32 %v4322_v49, %v2584_v13 }
 0xb40   :  { %v6433_v51 = vpack.c.bf16 %v2590_v19, %v2589_v57 }
 0xb42   :  { %2721 = vmatmul.mubr.bf16.vlgmr.msra.gmra.mxu1 %v6433_v51 }
 0xb43   :  { %4836 = vmatprep.mubr.msk.bf16.mxu1 %vm5465_vm2, %v5464_v20 }
 0xc02   :  { %v2722_v5 = vpop.f32.mrf.mxu1 }
 0xc04   :  { %v2724_v8 = vpop.f32.mrf.mxu1 }
 0xc06   :  { %v2726_v48 = vpop.f32.mrf.mxu1 }
 0xc07   :  { %v2731_v41 = vpack.c.bf16 %v2726_v48, %v2722_v5 }
 0xc08   :  { %v2728_v16 = vpop.f32.mrf.mxu1 }
 0xc09   :  { %v2793_v18 = vsel %vm1651_vm12, %v2731_v41, 0  ;;  %v2732_v33 = vpack.c.bf16 %v2728_v16, %v2724_v8 }
 0xc0a   :  { %4835 = vmatpush3.bf16.msra.mxu1 %v2793_v18 }
 0xc0b   :  { %v2734_v10 = vsel %vm1651_vm12, %v2732_v33, 0  ;;  %4876 = vmatprep.subr.bf16.mxu1 %v5464_v20 }
 0xc0c   :  { %4821 = vmatpush3.bf16.msra.mxu0 %v2734_v10 }
 0xc0d   :  { %4837 = vmatmul.mubr.msk.bf16.vlgmr.msra.gmra.mxu1 %vm329_vm4, %v6283_v2  ;;  %4848 = vmatprep.subr.bf16.mxu0 %v5464_v20  ;;  %v5187_v2 = vld [vmem:[#allocation8 + $0x2d0] ss:$8 sps:$4 sm:$0xff]  }
 0xc0e   :  { %4840 = vmatprep.mubr.msk.bf16.mxu1 %vm5465_vm2, %v5464_v20 }
 0xc0f   :  { %4823 = vmatmul.mubr.msk.bf16.vlgmr.msra.gmra.mxu0 %vm329_vm4, %v6286_v59  ;;  %v5188_v59 = vld [vmem:[#allocation8 + $0x2c0] ss:$8 sps:$4 sm:$0xff]  }
 0xc10   :  { %4849 = vmatpush3.bf16.msra.mxu0 %v5184_v60  ;;  %4826 = vmatprep.mubr.msk.bf16.mxu0 %vm5465_vm2, %v5464_v20 }
 0xc11   :  { %4850 = vmatprep.subr.bf16.mxu0 %v5464_v20 }
 0xc14   :  { %4851 = vmatpush3.bf16.msra.mxu0 %v5185_v22 }
 0xc15   :  { %4852 = vmatprep.subr.bf16.mxu0 %v5464_v20  ;;  %4841 = vmatmul.mubr.msk.bf16.gmra.mxu1 %vm329_vm4, %v6299_v55  ;;  %v5189_v55 = vld [vmem:[#allocation8 + $0x2b0] ss:$8 sps:$4 sm:$0xff]  }
 0xc16   :  { %4844 = vmatprep.mubr.msk.bf16.mxu1 %vm5465_vm2, %v5464_v20 }
 0xc17   :  { %4827 = vmatmul.mubr.msk.bf16.gmra.mxu0 %vm329_vm4, %v6301_v43  ;;  %v5190_v43 = vld [vmem:[#allocation8 + $0x2a0] ss:$8 sps:$4 sm:$0xff]  }
 0xc18   :  { %4853 = vmatpush3.bf16.msra.mxu0 %v5186_v35  ;;  %4830 = vmatprep.mubr.msk.bf16.mxu0 %vm5465_vm2, %v5464_v20 }
 0xc19   :  { %4854 = vmatprep.subr.bf16.mxu0 %v5464_v20 }
 0xc1c   :  { %4855 = vmatpush3.bf16.msra.mxu0 %v5187_v2 }
 0xc1d   :  { %4856 = vmatprep.subr.bf16.mxu0 %v5464_v20  ;;  %4845 = vmatmul.mubr.msk.bf16.gmra.mxu1 %vm329_vm4, %v6322_v50  ;;  %v5192_v50 = vld [vmem:[#allocation8 + $0x304] ss:$8 sps:$4 sm:$0xff]  }
 0xc1e   :  { %4892 = vmatprep.mubr.msk.bf16.mxu1 %vm5465_vm2, %v5464_v20  ;;  %4877 = vmatpush3.bf16.msra.mxu1 %v5192_v50 }
 0xc1f   :  { %4831 = vmatmul.mubr.msk.bf16.gmra.mxu0 %vm329_vm4, %v6327_v29  ;;  %v5193_v29 = vld [vmem:[#allocation8 + $0x2f4] ss:$8 sps:$4 sm:$0xff]   ;;  %4878 = vmatprep.subr.bf16.mxu1 %v5464_v20 }
 0xc20   :  { %4857 = vmatpush3.bf16.msra.mxu0 %v5188_v59  ;;  %4864 = vmatprep.mubr.msk.bf16.mxu0 %vm5465_vm2, %v5464_v20 }
 0xc21   :  { %4858 = vmatprep.subr.bf16.mxu0 %v5464_v20 }
 0xc22   :  { %4879 = vmatpush3.bf16.msra.mxu1 %v5193_v29 }
 0xc23   :  { %4880 = vmatprep.subr.bf16.mxu1 %v5464_v20 }
 0xc24   :  { %4859 = vmatpush3.bf16.msra.mxu0 %v5189_v55 }
 0xc25   :  { %4860 = vmatprep.subr.bf16.mxu0 %v5464_v20 }
 0xc28   :  { %4861 = vmatpush3.bf16.msra.mxu0 %v5190_v43 }
 0xc29   :  { %4862 = vmatprep.subr.bf16.mxu0 %v5464_v20 }
 0xc2c   :  { %4863 = vmatpush3.bf16.msra.mxu0 %v5191_v32 }
 0xc2d   :  { %4904 = vmatprep.subr.bf16.mxu0 %v5464_v20 }
 0xc2f   :  { %4865 = vmatmul.mubr.bf16.vlgmr.msra.gmra.mxu0 %v6233_v11  ;;  %v5194_v11 = vld [vmem:[#allocation8 + $0x2e4] ss:$8 sps:$4 sm:$0xff]  }
 0xc30   :  { %4868 = vmatprep.mubr.msk.bf16.mxu0 %vm5465_vm2, %v5464_v20  ;;  %4881 = vmatpush3.bf16.msra.mxu1 %v5194_v11 }
 0xc31   :  { %4882 = vmatprep.subr.bf16.mxu1 %v5464_v20 }
 0xc34   :  { %4883 = vmatpush3.bf16.msra.mxu1 %v5195_v9 }
 0xc35   :  { %4884 = vmatprep.subr.bf16.mxu1 %v5464_v20 }
 0xc37   :  { %4869 = vmatmul.mubr.bf16.gmra.mxu0 %v6237_v54  ;;  %v5196_v54 = vld [vmem:[#allocation8 + $0x2c4] ss:$8 sps:$4 sm:$0xff]  }
 0xc38   :  { %4872 = vmatprep.mubr.msk.bf16.mxu0 %vm5465_vm2, %v5464_v20  ;;  %4885 = vmatpush3.bf16.msra.mxu1 %v5196_v54 }
 0xc39   :  { %4886 = vmatprep.subr.bf16.mxu1 %v5464_v20 }
 0xc3f   :  { %4873 = vmatmul.mubr.bf16.gmra.mxu0 %v6356_v30  ;;  %v5197_v30 = vld [vmem:[#allocation8 + $0x2b4] ss:$8 sps:$4 sm:$0xff]  }
 0xc40   :  { %4910 = vmatprep.mubr.msk.bf16.mxu0 %vm5465_vm2, %v5464_v20  ;;  %4887 = vmatpush3.bf16.msra.mxu1 %v5197_v30 }
 0xc41   :  { %4888 = vmatprep.subr.bf16.mxu1 %v5464_v20 }
 0xc44   :  { %4889 = vmatpush3.bf16.msra.mxu1 %v5198_v38 }
 0xc45   :  { %4890 = vmatprep.subr.bf16.mxu1 %v5464_v20 }
 0xc48   :  { %4891 = vmatpush3.bf16.msra.mxu1 %v5199_v24 }
 0xc49   :  { %4914 = vmatprep.subr.bf16.mxu1 %v5464_v20 }
 0xccd   :  { %v2829_v34 = vpop.f32.mrf.mxu1 }
 0xccf   :  { %v2770_v36 = vpop.f32.mrf.mxu0  ;;  %v4838_v7 = vpop.f32.mrf.mxu1 }
 0xcd0   :  { %v2830_v14 = vadd.f32 %v2829_v34, %v2770_v36 }
 0xcd1   :  { %v4824_v28 = vpop.f32.mrf.mxu0  ;;  %v2832_v4 = vpop.f32.mrf.mxu1 }
 0xcd3   :  { %v2773_v62 = vpop.f32.mrf.mxu0  ;;  %v4839_v44 = vpop.f32.mrf.mxu1 }
 0xcd4   :  { %v2833_v49 = vadd.f32 %v2832_v4, %v2773_v62 }
 0xcd5   :  { %v4825_v42 = vpop.f32.mrf.mxu0  ;;  %v2837_v15 = vpop.f32.mrf.mxu1 }
 0xcd7   :  { %v2778_v61 = vpop.f32.mrf.mxu0  ;;  %v4842_v56 = vpop.f32.mrf.mxu1 }
 0xcd8   :  { %v2838_v48 = vadd.f32 %v2837_v15, %v2778_v61 }
 0xcd9   :  { %v4828_v31 = vpop.f32.mrf.mxu0  ;;  %v2840_v40 = vpop.f32.mrf.mxu1 }
 0xcdb   :  { %v2781_v1 = vpop.f32.mrf.mxu0  ;;  %v4843_v46 = vpop.f32.mrf.mxu1 }
 0xcdc   :  { %v2841_v60 = vadd.f32 %v2840_v40, %v2781_v1 }
 0xcdd   :  { %v4829_v63 = vpop.f32.mrf.mxu0  ;;  %v2845_v47 = vpop.f32.mrf.mxu1 }
 0xcdf   :  { %v2786_v23 = vpop.f32.mrf.mxu0  ;;  %v4846_v21 = vpop.f32.mrf.mxu1 }
 0xce0   :  { %v2846_v43 = vadd.f32 %v2845_v47, %v2786_v23 }
 0xce1   :  { %v4832_v3 = vpop.f32.mrf.mxu0  ;;  %v2848_v6 = vpop.f32.mrf.mxu1 }
 0xce3   :  { %v2789_v0 = vpop.f32.mrf.mxu0  ;;  %v4847_v52 = vpop.f32.mrf.mxu1 }
 0xce5   :  { %v4833_v12 = vpop.f32.mrf.mxu0 }
 0xce6   :  { %v5208_v12 = vld [vmem:[#allocation8 + $0x384] ss:$8 sps:$4 sm:$0xff]  }
 0xcef   :  { %v2949_v37 = vpop.f32.mrf.mxu0 }
 0xcf0   :  { %v2971_v45 = vadd.f32 %v2949_v37, %v2830_v14  ;;  %v5209_v14 = vld [vmem:[#allocation8 + $0x374] ss:$8 sps:$4 sm:$0xff]   ;;  %v5210_v37 = vld [vmem:[#allocation8 + $0x364] ss:$8 sps:$4 sm:$0xff]  }
 0xcf1   :  { %v4866_v25 = vpop.f32.mrf.mxu0 }
 0xcf2   :  { %v2981_v13 = vadd.f32 %v4353_v39, %v2971_v45  ;;  %v5212_v45 = vld [vmem:[#allocation8 + $0x344] ss:$8 sps:$4 sm:$0xff]   ;;  %v5213_v25 = vld [vmem:[#allocation8 + $0x334] ss:$8 sps:$4 sm:$0xff]  }
 0xcf3   :  { %v2952_v57 = vpop.f32.mrf.mxu0 }
 0xcf4   :  { %v4354_v19 = vmul.f32 -1.442695, %v2981_v13  ;;  %v2972_v5 = vadd.f32 %v2952_v57, %v2833_v49 }
 0xcf5   :  { %v4867_v8 = vpop.f32.mrf.mxu0 }
 0xcf6   :  { %5325 = vpow2.f32 %v4354_v19  ;;  %v2982_v41 = vadd.f32 %v4353_v39, %v2972_v5 }
 0xcf7   :  { %v2957_v16 = vpop.f32.mrf.mxu0 }
 0xcf8   :  { %v4355_v18 = vmul.f32 -1.442695, %v2982_v41  ;;  %v2973_v33 = vadd.f32 %v2957_v16, %v2838_v48  ;;  %v4359_v48 = vld [vmem:[#allocation11 + $0x11] ss:$0 sm:$0xff] }
 0xcf9   :  { %v4870_v10 = vpop.f32.mrf.mxu0 }
 0xcfa   :  { %5327 = vpow2.f32 %v4355_v18  ;;  %v2983_v22 = vadd.f32 %v4353_v39, %v2973_v33 }
 0xcfb   :  { %v2960_v35 = vpop.f32.mrf.mxu0 }
 0xcfc   :  { %v4356_v2 = vmul.f32 -1.442695, %v2983_v22  ;;  %v2974_v59 = vadd.f32 %v2960_v35, %v2841_v60 }
 0xcfd   :  { %v4871_v55 = vpop.f32.mrf.mxu0 }
 0xcfe   :  { %5329 = vpow2.f32 %v4356_v2  ;;  %v2984_v32 = vadd.f32 %v4353_v39, %v2974_v59 }
 0xcff   :  { %v2965_v50 = vpop.f32.mrf.mxu0 }
 0xd00   :  { %v4357_v29 = vmul.f32 -1.442695, %v2984_v32  ;;  %v2975_v11 = vadd.f32 %v2965_v50, %v2846_v43 }
 0xd01   :  { %v4874_v9 = vpop.f32.mrf.mxu0 }
 0xd02   :  { %5331 = vpow2.f32 %v4357_v29  ;;  %v2985_v54 = vadd.f32 %v4353_v39, %v2975_v11  ;;  %v5211_v39 = vld [vmem:[#allocation8 + $0x354] ss:$8 sps:$4 sm:$0xff]  }
 0xd03   :  { %v5326_v30 = vpop.eup %5325  ;;  %v2968_v38 = vpop.f32.mrf.mxu0 }
 0xd04   :  { %v3001_v24 = vadd.f32 1.0, %v5326_v30  ;;  %v4358_v34 = vmul.f32 -1.442695, %v2985_v54 }
 0xd05   :  { %v4875_v36 = vpop.f32.mrf.mxu0 }
 0xd06   :  { %5333 = vpow2.f32 %v4358_v34 }
 0xd07   :  { %v5328_v7 = vpop.eup %5327  ;;  %5335 = vrcp.f32 %v3001_v24 }
 0xd08   :  { %v3002_v28 = vadd.f32 1.0, %v5328_v7 }
 0xd0a   :  { %5337 = vrcp.f32 %v3002_v28 }
 0xd0b   :  { %v5330_v4 = vpop.eup %5329 }
 0xd0c   :  { %v3003_v62 = vadd.f32 1.0, %v5330_v4 }
 0xd0e   :  { %5339 = vrcp.f32 %v3003_v62 }
 0xd0f   :  { %v5332_v44 = vpop.eup %5331 }
 0xd10   :  { %v3004_v42 = vadd.f32 1.0, %v5332_v44 }
 0xd12   :  { %5341 = vrcp.f32 %v3004_v42 }
 0xd13   :  { %v5334_v15 = vpop.eup %5333 }
 0xd14   :  { %v5336_v61 = vpop.eup %5335  ;;  %v3005_v56 = vadd.f32 1.0, %v5334_v15 }
 0xd15   :  { %v3016_v40 = vmul.f32 %v5336_v61, %v2981_v13 }
 0xd16   :  { %5343 = vrcp.f32 %v3005_v56 }
 0xd17   :  { %v5338_v31 = vpop.eup %5337 }
 0xd18   :  { %v3017_v1 = vmul.f32 %v5338_v31, %v2982_v41 }
 0xd1a   :  { %v3037_v46 = vpack.c.bf16 %v3017_v1, %v3016_v40 }
 0xd1b   :  { %v5340_v63 = vpop.eup %5339 }
 0xd1c   :  { %4893 = vmatmul.mubr.bf16.vlgmr.msra.gmra.mxu1 %v3037_v46  ;;  %v3018_v23 = vmul.f32 %v5340_v63, %v2983_v22 }
 0xd1d   :  { %4896 = vmatprep.mubr.msk.bf16.mxu1 %vm5465_vm2, %v5464_v20  ;;  %4915 = vmatpush3.bf16.msra.mxu1 %v5208_v12  ;;  %v5204_v12 = vld [vmem:[#allocation8 + $0x340] ss:$8 sps:$4 sm:$0xff]  }
 0xd1e   :  { %4916 = vmatprep.subr.bf16.mxu1 %v5464_v20 }
 0xd1f   :  { %v5342_v47 = vpop.eup %5341 }
 0xd20   :  { %v3019_v21 = vmul.f32 %v5342_v47, %v2984_v32 }
 0xd21   :  { %4917 = vmatpush3.bf16.msra.mxu1 %v5209_v14  ;;  %v5206_v14 = vld [vmem:[#allocation8 + $0x320] ss:$8 sps:$4 sm:$0xff]  }
 0xd22   :  { %v3038_v3 = vpack.c.bf16 %v3019_v21, %v3018_v23  ;;  %4918 = vmatprep.subr.bf16.mxu1 %v5464_v20 }
 0xd23   :  { %v5344_v6 = vpop.eup %5343 }
 0xd24   :  { %4897 = vmatmul.mubr.bf16.gmra.mxu1 %v3038_v3  ;;  %v3020_v0 = vmul.f32 %v5344_v6, %v2985_v54  ;;  %v5200_v3 = vld [vmem:[#allocation8 + $0x380] ss:$8 sps:$4 sm:$0xff]   ;;  %v5201_v6 = vld [vmem:[#allocation8 + $0x370] ss:$8 sps:$4 sm:$0xff]  }
 0xd25   :  { %4900 = vmatprep.mubr.msk.bf16.mxu1 %vm5465_vm2, %v5464_v20  ;;  %4919 = vmatpush3.bf16.msra.mxu1 %v5210_v37  ;;  %v5207_v37 = vld [vmem:[#allocation8 + $0x310] ss:$8 sps:$4 sm:$0xff]  }
 0xd26   :  { %v3039_v52 = vpack.c.bf16 %v3020_v0, %v3020_v0  ;;  %4920 = vmatprep.subr.bf16.mxu1 %v5464_v20  ;;  %v5202_v0 = vld [vmem:[#allocation8 + $0x360] ss:$8 sps:$4 sm:$0xff]  }
 0xd29   :  { %4921 = vmatpush3.bf16.msra.mxu1 %v5211_v39  ;;  %v5214_v39 = vld [vmem:[#allocation8 + $0x324] ss:$8 sps:$4 sm:$0xff]  }
 0xd2a   :  { %4922 = vmatprep.subr.bf16.mxu1 %v5464_v20 }
 0xd2c   :  { %4901 = vmatmul.mubr.bf16.gmra.mxu1 %v3039_v52  ;;  %v5203_v52 = vld [vmem:[#allocation8 + $0x350] ss:$8 sps:$4 sm:$0xff]  }
 0xd2d   :  { %4930 = vmatprep.mubr.msk.bf16.mxu1 %vm5465_vm2, %v5464_v20  ;;  %4923 = vmatpush3.bf16.msra.mxu1 %v5212_v45  ;;  %v5215_v45 = vld [vmem:[#allocation8 + $0x314] ss:$8 sps:$4 sm:$0xff]  }
 0xd2e   :  { %4924 = vmatprep.subr.bf16.mxu1 %v5464_v20 }
 0xd31   :  { %4925 = vmatpush3.bf16.msra.mxu1 %v5213_v25 }
 0xd32   :  { %4926 = vmatprep.subr.bf16.mxu1 %v5464_v20 }
 0xd35   :  { %4927 = vmatpush3.bf16.msra.mxu1 %v5214_v39 }
 0xd36   :  { %4928 = vmatprep.subr.bf16.mxu1 %v5464_v20 }
 0xd39   :  { %4929 = vmatpush3.bf16.msra.mxu1 %v5215_v45 }
 0xd3a   :  { %4954 = vmatprep.subr.bf16.mxu1 %v5464_v20 }
 0xddc   :  { %v3127_v49 = vpop.f32.mrf.mxu1 }
 0xddd   :  { %v3128_v35 = vadd.f32 %v4359_v48, %v3127_v49 }
 0xdde   :  { %v4894_v13 = vpop.f32.mrf.mxu1 }
 0xddf   :  { %v4368_v29 = vmul.f32 -1.442695, %v3128_v35 }
 0xde0   :  { %v3130_v57 = vpop.f32.mrf.mxu1 }
 0xde1   :  { %v3131_v10 = vadd.f32 %v4359_v48, %v3130_v57 }
 0xde2   :  { %v4895_v19 = vpop.f32.mrf.mxu1 }
 0xde3   :  { %v4369_v43 = vmul.f32 -1.442695, %v3131_v10 }
 0xde4   :  { %v3135_v5 = vpop.f32.mrf.mxu1 }
 0xde5   :  { %v3136_v16 = vadd.f32 %v4359_v48, %v3135_v5 }
 0xde6   :  { %v4898_v8 = vpop.f32.mrf.mxu1 }
 0xde7   :  { %v4370_v2 = vmul.f32 -1.442695, %v3136_v16 }
 0xde8   :  { %v3138_v41 = vpop.f32.mrf.mxu1 }
 0xde9   :  { %v3139_v18 = vadd.f32 %v4359_v48, %v3138_v41 }
 0xdea   :  { %v4899_v33 = vpop.f32.mrf.mxu1 }
 0xdeb   :  { %v4371_v60 = vmul.f32 -1.442695, %v3139_v18  ;;  %v5217_v33 = vld [vmem:[#allocation8 + $0x3f0] ss:$8 sps:$4 sm:$0xff]  }
 0xdec   :  { %v3143_v22 = vpop.f32.mrf.mxu1 }
 0xded   :  { %v3144_v59 = vadd.f32 %v4359_v48, %v3143_v22  ;;  %5345 = vpow2.f32 %v4371_v60  ;;  %v5221_v60 = vld [vmem:[#allocation8 + $0x3b0] ss:$8 sps:$4 sm:$0xff]   ;;  %v5222_v22 = vld [vmem:[#allocation8 + $0x3a0] ss:$8 sps:$4 sm:$0xff]  }
 0xdee   :  { %v4902_v55 = vpop.f32.mrf.mxu1  ;;  %5347 = vpow2.f32 %v4370_v2 }
 0xdef   :  { %v4372_v32 = vmul.f32 -1.442695, %v3144_v59 }
 0xdf0   :  { %v3146_v50 = vpop.f32.mrf.mxu1 }
 0xdf1   :  { %5349 = vpow2.f32 %v4372_v32 }
 0xdf2   :  { %v4903_v11 = vpop.f32.mrf.mxu1  ;;  %5351 = vpow2.f32 %v4369_v43 }
 0xdf3   :  { %5353 = vpow2.f32 %v4368_v29 }
 0xdfa   :  { %v5346_v9 = vpop.eup %5345 }
 0xdfb   :  { %v5348_v54 = vpop.eup %5347  ;;  %v3167_v38 = vadd.f32 1.0, %v5346_v9 }
 0xdfc   :  { %v3166_v36 = vadd.f32 1.0, %v5348_v54 }
 0xdfe   :  { %v5350_v30 = vpop.eup %5349 }
 0xdff   :  { %v5352_v24 = vpop.eup %5351  ;;  %v3168_v34 = vadd.f32 1.0, %v5350_v30 }
 0xe00   :  { %v5354_v7 = vpop.eup %5353  ;;  %v3165_v28 = vadd.f32 1.0, %v5352_v24 }
 0xe01   :  { %5355 = vrcp.f32 %v3168_v34  ;;  %v3164_v4 = vadd.f32 1.0, %v5354_v7 }
 0xe02   :  { %5357 = vrcp.f32 %v3167_v38 }
 0xe03   :  { %5359 = vrcp.f32 %v3166_v36 }
 0xe04   :  { %5361 = vrcp.f32 %v3165_v28 }
 0xe05   :  { %5363 = vrcp.f32 %v3164_v4 }
 0xe0e   :  { %v5356_v62 = vpop.eup %5355 }
 0xe0f   :  { %v5358_v44 = vpop.eup %5357  ;;  %v3183_v42 = vmul.f32 %v5356_v62, %v3144_v59  ;;  %v4390_v59 = vld [vmem:[#allocation11 + $0x12] ss:$0 sm:$0xff] }
 0xe10   :  { %v5360_v15 = vpop.eup %5359  ;;  %v3182_v56 = vmul.f32 %v5358_v44, %v3139_v18  ;;  %v5216_v18 = vld [vmem:[#allocation8 + $0x400] ss:$8 sps:$4 sm:$0xff]  }
 0xe11   :  { %v3186_v61 = vpack.c.bf16 %v3183_v42, %v3183_v42  ;;  %v5362_v31 = vpop.eup %5361  ;;  %v3181_v1 = vmul.f32 %v5360_v15, %v3136_v16  ;;  %v4393_v42 = vld [vmem:[#allocation11 + $0x13] ss:$0 sm:$0xff] }
 0xe12   :  { %v5364_v46 = vpop.eup %5363  ;;  %v3180_v63 = vmul.f32 %v5362_v31, %v3131_v10  ;;  %v5218_v10 = vld [vmem:[#allocation8 + $0x3e0] ss:$8 sps:$4 sm:$0xff]  }
 0xe13   :  { %v3188_v40 = vsel %vm2137_vm14, %v3186_v61, 0  ;;  %v3185_v47 = vpack.c.bf16 %v3182_v56, %v3181_v1  ;;  %v3179_v23 = vmul.f32 %v5364_v46, %v3128_v35  ;;  %v5223_v35 = vld [vmem:[#allocation8 + $0x390] ss:$8 sps:$4 sm:$0xff]   ;;  %vm4122_vm14 = vcmask 516480  }
 0xe14   :  { %4905 = vmatpush3.bf16.msra.mxu0 %v3188_v40 }
 0xe15   :  { %4906 = vmatprep.subr.bf16.mxu0 %v5464_v20  ;;  %v3184_v21 = vpack.c.bf16 %v3180_v63, %v3179_v23 }
 0xe18   :  { %4907 = vmatpush3.bf16.msra.mxu0 %v3185_v47 }
 0xe19   :  { %4908 = vmatprep.subr.bf16.mxu0 %v5464_v20 }
 0xe1c   :  { %4909 = vmatpush3.bf16.msra.mxu0 %v3184_v21 }
 0xe1d   :  { %4934 = vmatprep.subr.bf16.mxu0 %v5464_v20 }
 0xe1f   :  { %4911 = vmatmul.mubr.msk.bf16.vlgmr.msra.gmra.mxu0 %vm2133_vm15, %v6384_v26  ;;  %v5205_v26 = vld [vmem:[#allocation8 + $0x330] ss:$8 sps:$4 sm:$0xff]   ;;  %vm4129_vm15 = vcmask 746184  }
 0xe20   :  { %4935 = vmatpush3.bf16.msra.mxu0 %v5200_v3  ;;  %4950 = vmatprep.mubr.msk.bf16.mxu0 %vm5465_vm2, %v5464_v20 }
 0xe21   :  { %4936 = vmatprep.subr.bf16.mxu0 %v5464_v20 }
 0xe24   :  { %4937 = vmatpush3.bf16.msra.mxu0 %v5201_v6 }
 0xe25   :  { %4938 = vmatprep.subr.bf16.mxu0 %v5464_v20 }
 0xe28   :  { %4939 = vmatpush3.bf16.msra.mxu0 %v5202_v0 }
 0xe29   :  { %4940 = vmatprep.subr.bf16.mxu0 %v5464_v20 }
 0xe2c   :  { %4941 = vmatpush3.bf16.msra.mxu0 %v5203_v52 }
 0xe2d   :  { %4942 = vmatprep.subr.bf16.mxu0 %v5464_v20 }
 0xe30   :  { %4943 = vmatpush3.bf16.msra.mxu0 %v5204_v12 }
 0xe31   :  { %4944 = vmatprep.subr.bf16.mxu0 %v5464_v20 }
 0xe34   :  { %4945 = vmatpush3.bf16.msra.mxu0 %v5205_v26 }
 0xe35   :  { %4946 = vmatprep.subr.bf16.mxu0 %v5464_v20 }
 0xe38   :  { %4947 = vmatpush3.bf16.msra.mxu0 %v5206_v14 }
 0xe39   :  { %4948 = vmatprep.subr.bf16.mxu0 %v5464_v20 }
 0xe3c   :  { %4949 = vmatpush3.bf16.msra.mxu0 %v5207_v37 }
 0xe3d   :  { %4974 = vmatprep.subr.bf16.mxu0 %v5464_v20 }
 0xe3f   :  { %4951 = vmatmul.mubr.bf16.vlgmr.msra.gmra.mxu0 %v6433_v51 }
 0xe40   :  { %4990 = vmatprep.mubr.msk.bf16.mxu0 %vm5465_vm2, %v5464_v20 }
 0xedf   :  { %v3224_v25 = vpop.f32.mrf.mxu0 }
 0xee0   :  { %v3231_v57 = vmul.f32 %v3224_v25, %v6404_v17  ;;  %v5220_v17 = vld [vmem:[#allocation8 + $0x3c0] ss:$8 sps:$4 sm:$0xff]  }
 0xee1   :  { %v4912_v49 = vpop.f32.mrf.mxu0 }
 0xee3   :  { %v3227_v13 = vpop.f32.mrf.mxu0 }
 0xee4   :  { %v3232_v19 = vmul.f32 %v3227_v13, %v6402_v53  ;;  %v5219_v53 = vld [vmem:[#allocation8 + $0x3d0] ss:$8 sps:$4 sm:$0xff]  }
 0xee5   :  { %v4913_v5 = vpop.f32.mrf.mxu0 }
 0xee6   :  { %v3265_v51 = vpack.c.bf16 %v3232_v19, %v3231_v57 }
 0xee8   :  { %4931 = vmatmul.mubr.bf16.vlgmr.msra.gmra.mxu1 %v3265_v51 }
 0xee9   :  { %4970 = vmatprep.mubr.msk.bf16.mxu1 %vm5465_vm2, %v5464_v20  ;;  %4955 = vmatpush3.bf16.msra.mxu1 %v5216_v18  ;;  %v5229_v18 = vld [vmem:[#allocation8 + $0x430] ss:$8 sps:$4 sm:$0xff]  }
 0xeea   :  { %4956 = vmatprep.subr.bf16.mxu1 %v5464_v20 }
 0xeed   :  { %4957 = vmatpush3.bf16.msra.mxu1 %v5217_v33  ;;  %v5230_v33 = vld [vmem:[#allocation8 + $0x420] ss:$8 sps:$4 sm:$0xff]  }
 0xeee   :  { %4958 = vmatprep.subr.bf16.mxu1 %v5464_v20 }
 0xef1   :  { %4959 = vmatpush3.bf16.msra.mxu1 %v5218_v10  ;;  %v5231_v10 = vld [vmem:[#allocation8 + $0x410] ss:$8 sps:$4 sm:$0xff]  }
 0xef2   :  { %4960 = vmatprep.subr.bf16.mxu1 %v5464_v20 }
 0xef5   :  { %4961 = vmatpush3.bf16.msra.mxu1 %v5219_v53 }
 0xef6   :  { %4962 = vmatprep.subr.bf16.mxu1 %v5464_v20 }
 0xef9   :  { %4963 = vmatpush3.bf16.msra.mxu1 %v5220_v17 }
 0xefa   :  { %4964 = vmatprep.subr.bf16.mxu1 %v5464_v20 }
 0xefd   :  { %4965 = vmatpush3.bf16.msra.mxu1 %v5221_v60 }
 0xefe   :  { %4966 = vmatprep.subr.bf16.mxu1 %v5464_v20 }
 0xeff   :  { %v3437_v8 = vpop.f32.mrf.mxu0 }
 0xf01   :  { %v4952_v48 = vpop.f32.mrf.mxu0  ;;  %4967 = vmatpush3.bf16.msra.mxu1 %v5222_v22 }
 0xf02   :  { %4968 = vmatprep.subr.bf16.mxu1 %v5464_v20  ;;  %v5226_v48 = vld [vmem:[#allocation8 + $0x460] ss:$8 sps:$4 sm:$0xff]  }
 0xf03   :  { %v3440_v41 = vpop.f32.mrf.mxu0 }
 0xf05   :  { %v4953_v16 = vpop.f32.mrf.mxu0  ;;  %4969 = vmatpush3.bf16.msra.mxu1 %v5223_v35 }
 0xf06   :  { %4994 = vmatprep.subr.bf16.mxu1 %v5464_v20  ;;  %v5228_v16 = vld [vmem:[#allocation8 + $0x440] ss:$8 sps:$4 sm:$0xff]  }
 0xfa8   :  { %v3348_v2 = vpop.f32.mrf.mxu1 }
 0xfa9   :  { %v3438_v55 = vadd.f32 %v3437_v8, %v3348_v2  ;;  %v5225_v8 = vld [vmem:[#allocation8 + $0x470] ss:$8 sps:$4 sm:$0xff]  }
 0xfaa   :  { %v4932_v43 = vpop.f32.mrf.mxu1 }
 0xfab   :  { %v3449_v32 = vadd.f32 %v4390_v59, %v3438_v55  ;;  %v4404_v43 = vld [vmem:[#allocation11 + $0x2] ss:$0 sm:$0xff] }
 0xfac   :  { %v3351_v50 = vpop.f32.mrf.mxu1 }
 0xfad   :  { %v4391_v29 = vmul.f32 -1.442695, %v3449_v32  ;;  %v3441_v11 = vadd.f32 %v3440_v41, %v3351_v50  ;;  %v5227_v41 = vld [vmem:[#allocation8 + $0x450] ss:$8 sps:$4 sm:$0xff]  }
 0xfae   :  { %v4933_v9 = vpop.f32.mrf.mxu1 }
 0xfaf   :  { %5365 = vpow2.f32 %v4391_v29  ;;  %v3450_v54 = vadd.f32 %v4390_v59, %v3441_v11  ;;  %v4405_v11 = vld [vmem:[#allocation11 + $0x3] ss:$0 sm:$0xff] }
 0xfb1   :  { %v4392_v30 = vmul.f32 -1.442695, %v3450_v54 }
 0xfb3   :  { %5367 = vpow2.f32 %v4392_v30 }
 0xfbc   :  { %v5366_v38 = vpop.eup %5365 }
 0xfbd   :  { %v3457_v24 = vadd.f32 1.0, %v5366_v38  ;;  %v5232_v38 = vld [vmem:[#allocation8 + $0x4e8] ss:$0 sps:$4 sm:$0x22]  }
 0xfbf   :  { %5369 = vrcp.f32 %v3457_v24  ;;  %v5233_v24 = vld [vmem:[#allocation8 + $0x484] ss:$8 sps:$4 sm:$0xff]  }
 0xfc0   :  { %v5368_v34 = vpop.eup %5367 }
 0xfc1   :  { %v3458_v36 = vadd.f32 1.0, %v5368_v34 }
 0xfc3   :  { %5371 = vrcp.f32 %v3458_v36 }
 0xfcc   :  { %v5370_v7 = vpop.eup %5369 }
 0xfcd   :  { %v3463_v4 = vmul.f32 %v5370_v7, %v3449_v32  ;;  %v3747_v7 = vrot.slane %v5232_v38, 1 }
 0xfd0   :  { %v5372_v28 = vpop.eup %5371 }
 0xfd1   :  { %v3464_v62 = vmul.f32 %v5372_v28, %v3450_v54  ;;  %v5234_v28 = vld [vmem:[#allocation8 + $0x474] ss:$8 sps:$4 sm:$0xff]  }
 0xfd3   :  { %v3481_v44 = vpack.c.bf16 %v3464_v62, %v3463_v4  ;;  %v5385_v4 = vld [vmem:[#allocation3] sm:$0x3f]  ;;  %v5235_v62 = vld [vmem:[#allocation8 + $0x464] ss:$8 sps:$4 sm:$0xff]  }
 0xfd5   :  { %4971 = vmatmul.mubr.bf16.vlgmr.msra.gmra.mxu1 %v3481_v44  ;;  %v5236_v44 = vld [vmem:[#allocation8 + $0x454] ss:$8 sps:$4 sm:$0xff]  }
 0xfd6   :  { %4996 = vmatprep.mubr.msk.bf16.mxu1 %vm5465_vm2, %v5464_v20 }
0x1095   :  { %v3569_v15 = vpop.f32.mrf.mxu1 }
0x1096   :  { %v3570_v61 = vadd.f32 %v4393_v42, %v3569_v15  ;;  %v5238_v15 = vld [vmem:[#allocation8 + $0x434] ss:$8 sps:$4 sm:$0xff]  }
0x1097   :  { %v4972_v56 = vpop.f32.mrf.mxu1 }
0x1098   :  { %v4402_v31 = vmul.f32 -1.442695, %v3570_v61  ;;  %v5240_v56 = vld [vmem:[#allocation8 + $0x414] ss:$8 sps:$4 sm:$0xff]  }
0x1099   :  { %v3572_v40 = vpop.f32.mrf.mxu1 }
0x109a   :  { %5373 = vpow2.f32 %v4402_v31  ;;  %v3573_v1 = vadd.f32 %v4393_v42, %v3572_v40  ;;  %v5237_v42 = vld [vmem:[#allocation8 + $0x444] ss:$8 sps:$4 sm:$0xff]   ;;  %v4406_v31 = vld [vmem:[#allocation11 + $0x1] ss:$0 sm:$0xff] }
0x109b   :  { %v4973_v46 = vpop.f32.mrf.mxu1 }
0x109c   :  { %v4403_v63 = vmul.f32 -1.442695, %v3573_v1 }
0x109e   :  { %5375 = vpow2.f32 %v4403_v63 }
0x10a7   :  { %v5374_v47 = vpop.eup %5373 }
0x10a8   :  { %v3582_v23 = vadd.f32 1.0, %v5374_v47 }
0x10aa   :  { %5377 = vrcp.f32 %v3582_v23 }
0x10ab   :  { %v5376_v21 = vpop.eup %5375 }
0x10ac   :  { %v3583_v3 = vadd.f32 1.0, %v5376_v21 }
0x10ae   :  { %5379 = vrcp.f32 %v3583_v3 }
0x10b7   :  { %v5378_v6 = vpop.eup %5377 }
0x10b8   :  { %v3588_v0 = vmul.f32 %v5378_v6, %v3570_v61  ;;  %v5239_v61 = vld [vmem:[#allocation8 + $0x424] ss:$8 sps:$4 sm:$0xff]  }
0x10ba   :  { %v3590_v52 = vadd.f32 %v3588_v0, %v6421_v27  ;;  %v5224_v27 = vld [vmem:[#allocation8 + $0x480] ss:$8 sps:$4 sm:$0xff]  }
0x10bb   :  { %v5380_v12 = vpop.eup %5379  ;;  %4975 = vmatpush3.bf16.msra.mxu0 %v5224_v27 }
0x10bc   :  { %v3589_v26 = vmul.f32 %v5380_v12, %v3573_v1  ;;  %3594 = vadd.xlane.f32.xlu1 %v3590_v52  ;;  %4976 = vmatprep.subr.bf16.mxu0 %v5464_v20 }
0x10be   :  { %v3591_v14 = vadd.f32 %v3589_v26, %v6425_v58  ;;  %v3794_v58 = vld [vmem:[#allocation11 + $0x78] sm:$0x3] }
0x10bf   :  { %4977 = vmatpush3.bf16.msra.mxu0 %v5225_v8 }
0x10c0   :  { %v3596_v37 = vsel %vm345_vm3, %v3591_v14, 0.0  ;;  %4978 = vmatprep.subr.bf16.mxu0 %v5464_v20 }
0x10c1   :  { %3597 = vadd.xlane.f32.xlu0 %v3596_v37 }
0x10c3   :  { %4979 = vmatpush3.bf16.msra.mxu0 %v5226_v48 }
0x10c4   :  { %4980 = vmatprep.subr.bf16.mxu0 %v5464_v20 }
0x10c7   :  { %4981 = vmatpush3.bf16.msra.mxu0 %v5227_v41 }
0x10c8   :  { %4982 = vmatprep.subr.bf16.mxu0 %v5464_v20 }
0x10cb   :  { %4983 = vmatpush3.bf16.msra.mxu0 %v5228_v16 }
0x10cc   :  { %4984 = vmatprep.subr.bf16.mxu0 %v5464_v20 }
0x10cf   :  { %4985 = vmatpush3.bf16.msra.mxu0 %v5229_v18 }
0x10d0   :  { %4986 = vmatprep.subr.bf16.mxu0 %v5464_v20 }
0x10d3   :  { %4987 = vmatpush3.bf16.msra.mxu0 %v5230_v33 }
0x10d4   :  { %4988 = vmatprep.subr.bf16.mxu0 %v5464_v20 }
0x10d7   :  { %4989 = vmatpush3.bf16.msra.mxu0 %v5231_v10 }
0x10d8   :  { %5000 = vmatprep.subr.bf16.mxu0 %v5464_v20 }
0x1145   :  { %v3595_v39 = vpop.xlane.xlu1 %3594 }
0x1146   :  { %v3599_v45 = vmul.f32 0.0078125, %v3595_v39 }
0x1148   :  { %v3601_v25 = vsub.f32 %v3590_v52, %v3599_v45 }
0x114a   :  { %v3598_v49 = vpop.xlane.xlu0 %3597  ;;  %v3603_v13 = vmul.f32 %v3601_v25, %v3601_v25 }
0x114b   :  { %v3600_v57 = vmul.f32 0.0078125, %v3598_v49 }
0x114c   :  { %3605 = vadd.xlane.f32.xlu0 %v3603_v13 }
0x114d   :  { %v3602_v19 = vsub.f32 %v3591_v14, %v3600_v57 }
0x114f   :  { %v3604_v5 = vmul.f32 %v3602_v19, %v3602_v19 }
0x1151   :  { %v3607_v51 = vsel %vm345_vm3, %v3604_v5, 0.0  ;;  %vm3942_vm3 = vcmask 1045504  }
0x1152   :  { %3608 = vadd.xlane.f32.xlu1 %v3607_v51 }
0x1162   :  { %3797 = vperm.xlu0 %5086, %v3794_v58  }
0x11d5   :  { %v3606_v53 = vpop.xlane.xlu0 %3605 }
0x11d6   :  { %v3610_v17 = vmul.f32 0.0078125, %v3606_v53 }
0x11d8   :  { %v3612_v60 = vadd.f32 1e-05, %v3610_v17 }
0x11da   :  { %5381 = vrsqrt.f32 %v3612_v60 }
0x11db   :  { %v3609_v22 = vpop.xlane.xlu1 %3608 }
0x11dc   :  { %v3611_v35 = vmul.f32 0.0078125, %v3609_v22 }
0x11dd   :  { %v3798_v63 = vpop.permute.xlu0 %3797 }
0x11de   :  { %v3613_v2 = vadd.f32 1e-05, %v3611_v35 }
0x11e0   :  { %5383 = vrsqrt.f32 %v3613_v2 }
0x11e7   :  { %v5382_v59 = vpop.eup %5381 }
0x11e8   :  { %v3616_v55 = vmul.f32 %v5382_v59, %v3601_v25 }
0x11ea   :  { %v3622_v29 = vmul.f32 %v4404_v43, %v3616_v55 }
0x11ec   :  { %v3628_v54 = vadd.f32 %v4405_v11, %v3622_v29 }
0x11ed   :  { %v5384_v32 = vpop.eup %5383 }
0x11ee   :  { %v3617_v50 = vmul.f32 %v5384_v32, %v3602_v19 }
0x11f0   :  { %v3623_v9 = vmul.f32 %v4404_v43, %v3617_v50 }
0x11f2   :  { %v3629_v30 = vadd.f32 %v4405_v11, %v3623_v9 }
0x11f4   :  { %v3630_v34 = vpack.c.bf16 %v3629_v30, %v3628_v54 }
0x11f6   :  { %4991 = vmatmul.mubr.bf16.vlgmr.msra.gmra.mxu0 %v3630_v34  ;;  %v3752_v36 = vsel %vm1651_vm12, %v3630_v34, 0  ;;  %vm4030_vm12 = vcmask 672384  }
0x11f7   :  { %4995 = vmatpush3.bf16.msra.mxu1 %v3752_v36  ;;  %5001 = vmatpush3.bf16.msra.mxu0 %v5233_v24 }
0x11f8   :  { %5020 = vmatprep.subr.mxu1 %v5464_v20  ;;  %5002 = vmatprep.subr.bf16.mxu0 %v5464_v20 }
0x11f9   :  { %5016 = vmatprep.mubr.msk.bf16.mxu0 %vm5465_vm2, %v5464_v20 }
0x11fa   :  { %4997 = vmatmul.mubr.msk.bf16.vlgmr.msra.gmra.mxu1 %vm329_vm4, %v3747_v7  ;;  %vm3927_vm4 = vcmask 40984  }
0x11fb   :  { %5021 = vmatpush3.msk.msra.mxu1 %vm3942_vm3, %v5385_v4  ;;  %5003 = vmatpush3.bf16.msra.mxu0 %v5234_v28  ;;  %vm4136_vm3 = vcmask 647680  }
0x11fc   :  { %5004 = vmatprep.subr.bf16.mxu0 %v5464_v20  ;;  %5022 = vmatprep.mubr.msk.f32.mxu1 %vm5465_vm2, %v5464_v20  ;;  %vm4017_vm2 = vcmask 844800  }
0x11fd   :  { %4018 = vst.msk [vmem:[#allocation13] sm:$0x3] %vm4017_vm2, %v5464_v20  ;;  %vm4143_vm2 = vcmask 770784  }
0x11ff   :  { %5005 = vmatpush3.bf16.msra.mxu0 %v5235_v62 }
0x1200   :  { %5006 = vmatprep.subr.bf16.mxu0 %v5464_v20 }
0x1203   :  { %5007 = vmatpush3.bf16.msra.mxu0 %v5236_v44 }
0x1204   :  { %5008 = vmatprep.subr.bf16.mxu0 %v5464_v20 }
0x1207   :  { %5009 = vmatpush3.bf16.msra.mxu0 %v5237_v42 }
0x1208   :  { %5010 = vmatprep.subr.bf16.mxu0 %v5464_v20 }
0x120b   :  { %5011 = vmatpush3.bf16.msra.mxu0 %v5238_v15 }
0x120c   :  { %5012 = vmatprep.subr.bf16.mxu0 %v5464_v20 }
0x120f   :  { %5013 = vmatpush3.bf16.msra.mxu0 %v5239_v61 }
0x1210   :  { %5014 = vmatprep.subr.bf16.mxu0 %v5464_v20 }
0x1213   :  { %5015 = vmatpush3.bf16.msra.mxu0 %v5240_v56 }
0x12b6   :  { %v3734_v40 = vpop.f32.mrf.mxu0 }
0x12b7   :  { %v3735_v1 = vadd.f32 %v4406_v31, %v3734_v40 }
0x12b8   :  { %v4992_v46 = vpop.f32.mrf.mxu0 }
0x12b9   :  { %3741 = vst [vmem:[#allocation6] sm:$0xff] %v3735_v1 }
0x12ba   :  { %v3737_v47 = vpop.f32.mrf.mxu0  ;;  %v3788_v23 = vpop.f32.mrf.mxu1 }
0x12bb   :  { %v3738_v21 = vadd.f32 %v4406_v31, %v3737_v47  ;;  %v3800_v3 = vmul.f32 %v3798_v63, %v3788_v23 }
0x12bc   :  { %v4993_v6 = vpop.f32.mrf.mxu0  ;;  %v4998_v0 = vpop.f32.mrf.mxu1 }
0x12bd   :  { %3742 = vst [vmem:[#allocation6 + $0x8] sm:$0x3] %v3738_v21  ;;  %v3817_v52 = vpack.c.bf16 %v3800_v3, %v3800_v3 }
0x12be   :  { %v3791_v12 = vpop.f32.mrf.mxu1 }
0x12bf   :  { %5017 = vmatmul.mubr.bf16.vlgmr.msra.gmra.mxu0 %v3817_v52 }
0x12c0   :  { %v4999_v26 = vpop.f32.mrf.mxu1  ;;  %v4081_v19 = vld [vmem:[#allocation6 + $0x5] sm:$0x1]  ;;  %v4093_v5 = vld [vmem:[#allocation6 + $0x6] sm:$0x1]  ;;  %v4019_v27 = vld [vmem:[#allocation6] sm:$0x1] }
0x12c1   :  { %v4087_v8 = vld [vmem:[#allocation6 + $0x5] sm:$0x1]  ;;  %v4025_v58 = vld [vmem:[#allocation6] sm:$0x1]  ;;  %v4099_v48 = vld [vmem:[#allocation6 + $0x6] sm:$0x1] }
0x12c2   :  { %v4032_v41 = vld [vmem:[#allocation6 + $0x1] sm:$0x1]  ;;  %v4105_v16 = vld [vmem:[#allocation6 + $0x7] sm:$0x1]  ;;  %v4046_v10 = vld [vmem:[#allocation6 + $0x2] sm:$0x1] }
0x12c3   :  { %v4039_v18 = vld [vmem:[#allocation6 + $0x1] sm:$0x1]  ;;  %v4111_v33 = vld [vmem:[#allocation6 + $0x7] sm:$0x1]  ;;  %v4053_v17 = vld [vmem:[#allocation6 + $0x2] sm:$0x1] }
0x12c4   :  { %v4117_v53 = vld [vmem:[#allocation6 + $0x8] sm:$0x1]  ;;  %v4131_v22 = vld [vmem:[#allocation6 + $0x9] sm:$0x1] }
0x12c5   :  { %v4124_v60 = vld [vmem:[#allocation6 + $0x8] sm:$0x1]  ;;  %v4138_v35 = vld [vmem:[#allocation6 + $0x9] sm:$0x1] }
0x137f   :  { %v3900_v14 = vpop.f32.mrf.mxu0 }
0x1380   :  { %3906 = vst [vmem:[#allocation7] sm:$0x3] %v3900_v14 }
0x1381   :  { %v5018_v37 = vpop.f32.mrf.mxu0 }
0x1383   :  { %v3903_v39 = vpop.f32.mrf.mxu0 }
0x1385   :  { %v5019_v45 = vpop.f32.mrf.mxu0 }
0x1387   :  { %v3922_v25 = vld [vmem:[#allocation7 + $0x1] sm:$0x1]  ;;  %v3910_v49 = vld [vmem:[#allocation7] sm:$0x1] }
0x1388   :  { %3924 = vrot.lane.b32.xlu0 %v3922_v25, %s5479_s21  ;;  %3912 = vrot.lane.b32.xlu1 %v3910_v49, %s5480_s16  ;;  %v3929_v13 = vld [vmem:[#allocation7 + $0x1] sm:$0x1]  ;;  %v3908_v57 = vld [vmem:[#allocation7] sm:$0x1] }
0x1389   :  { %3930 = vst.msk [vmem:[#allocation4 + $0x4] sm:$0x1] %vm3927_vm4, %v3929_v13  ;;  %v3916_v20 = vld [vmem:[#allocation7] sm:$0x1]  ;;  %v3931_v51 = vld [vmem:[#allocation7 + $0x1] sm:$0x1] }
0x138a   :  { %3909 = vst.msk [vmem:[#allocation4] sm:$0x1] %vm6605_vm1, %v3908_v57  ;;  %vm4065_vm1 = vcmask 795384  }
0x138c   :  { %4083 = vrot.lane.b32.xlu0 %v4081_v19, %s5480_s16  ;;  %3918 = vrot.lane.b32.xlu1 %v3916_v20, %s5481_s17 }
0x1390   :  { %4095 = vrot.lane.b32.xlu0 %v4093_v5, %s5482_s18  ;;  %3933 = vrot.lane.b32.xlu1 %v3931_v51, %s5480_s16 }
0x1394   :  { %4021 = vrot.lane.b32.xlu0 %v4019_v27, %s5480_s16  ;;  %4089 = vrot.lane.b32.xlu1 %v4087_v8, %s5457_s5 }
0x1398   :  { %4027 = vrot.lane.b32.xlu0 %v4025_v58, %s5457_s5  ;;  %4101 = vrot.lane.b32.xlu1 %v4099_v48, %s5483_s19  ;;  %s5487_s5 = smov 89  }
0x139c   :  { %4034 = vrot.lane.b32.xlu0 %v4032_v41, %s5482_s18  ;;  %4107 = vrot.lane.b32.xlu1 %v4105_v16, %s5484_s20 }
0x13a0   :  { %4041 = vrot.lane.b32.xlu0 %v4039_v18, %s5483_s19  ;;  %4113 = vrot.lane.b32.xlu1 %v4111_v33, %s5485_s23 }
0x13a4   :  { %4048 = vrot.lane.b32.xlu0 %v4046_v10, %s5484_s20  ;;  %4119 = vrot.lane.b32.xlu1 %v4117_v53, %s5486_s24 }
0x13a8   :  { %4055 = vrot.lane.b32.xlu0 %v4053_v17, %s5485_s23  ;;  %4126 = vrot.lane.b32.xlu1 %v4124_v60, %s5487_s5 }
0x13ac   :  { %4133 = vrot.lane.b32.xlu1 %v4131_v22, %s5462_s13  ;;  %s5489_s13 = smov 95  }
0x13b0   :  { %4140 = vrot.lane.b32.xlu1 %v4138_v35, %s5488_s30 }
0x13fa   :  { %v3925_v2 = vpop.permute.xlu0 %3924  ;;  %v3913_v59 = vpop.permute.xlu1 %3912 }
0x13fb   :  { %3928 = vst.msk [vmem:[#allocation4 + $0x3] sm:$0x1] %vm3927_vm4, %v3925_v2 }
0x13fc   :  { %3915 = vst.msk [vmem:[#allocation4 + $0x1] sm:$0x1] %vm6606_vm8, %v3913_v59  ;;  %vm4072_vm8 = vcmask 819984  }
0x13fe   :  { %v4084_v55 = vpop.permute.xlu0 %4083  ;;  %v3919_v43 = vpop.permute.xlu1 %3918 }
0x13ff   :  { %4086 = vst.msk [vmem:[#allocation13 + $0x1] sm:$0x1] %vm6607_vm11, %v4084_v55  ;;  %vm4079_vm11 = vcmask 844584  }
0x1400   :  { %3921 = vst.msk [vmem:[#allocation4 + $0x2] sm:$0x1] %vm6608_vm6, %v3919_v43 }
0x1402   :  { %v4096_v32 = vpop.permute.xlu0 %4095  ;;  %v3934_v50 = vpop.permute.xlu1 %3933 }
0x1403   :  { %3936 = vst.msk [vmem:[#allocation4 + $0x5] sm:$0x1] %vm3927_vm4, %v3934_v50  ;;  %vm4015_vm4 = vcmask 21504  }
0x1406   :  { %v4022_v29 = vpop.permute.xlu0 %4021  ;;  %v4090_v11 = vpop.permute.xlu1 %4089 }
0x1407   :  { %4024 = vst.msk [vmem:[#allocation13] sm:$0x1] %vm6609_vm5, %v4022_v29 }
0x1408   :  { %4092 = vst.msk [vmem:[#allocation13 + $0x1] sm:$0x1] %vm4030_vm12, %v4090_v11 }
0x1409   :  { %4098 = vst.msk [vmem:[#allocation13 + $0x1] sm:$0x1] %vm4037_vm9, %v4096_v32 }
0x140a   :  { %v4028_v9 = vpop.permute.xlu0 %4027  ;;  %v4102_v54 = vpop.permute.xlu1 %4101  ;;  %v3937_v30 = vld [vmem:[#allocation4] sm:$0x3f] }
0x140b   :  { %4031 = vst.msk [vmem:[#allocation13] sm:$0x1] %vm4030_vm12, %v4028_v9  ;;  %5023 = vmatmul.mubr.msk.f32.vlgmr.msra.gmra.mxu1 %vm3938_vm0, %v3937_v30 }
0x140c   :  { %4104 = vst.msk [vmem:[#allocation13 + $0x1] sm:$0x1] %vm4044_vm10, %v4102_v54 }
0x140e   :  { %v4035_v38 = vpop.permute.xlu0 %4034  ;;  %v4108_v24 = vpop.permute.xlu1 %4107 }
0x140f   :  { %4038 = vst.msk [vmem:[#allocation13] sm:$0x1] %vm4037_vm9, %v4035_v38 }
0x1410   :  { %4110 = vst.msk [vmem:[#allocation13 + $0x1] sm:$0x1] %vm4051_vm7, %v4108_v24 }
0x1412   :  { %v4042_v34 = vpop.permute.xlu0 %4041  ;;  %v4114_v36 = vpop.permute.xlu1 %4113 }
0x1413   :  { %4045 = vst.msk [vmem:[#allocation13] sm:$0x1] %vm4044_vm10, %v4042_v34 }
0x1414   :  { %4116 = vst.msk [vmem:[#allocation13 + $0x1] sm:$0x1] %vm4058_vm13, %v4114_v36 }
0x1416   :  { %v4049_v7 = vpop.permute.xlu0 %4048  ;;  %v4120_v28 = vpop.permute.xlu1 %4119 }
0x1417   :  { %4052 = vst.msk [vmem:[#allocation13] sm:$0x1] %vm4051_vm7, %v4049_v7 }
0x1418   :  { %4123 = vst.msk [vmem:[#allocation13 + $0x1] sm:$0x1] %vm4122_vm14, %v4120_v28 }
0x141a   :  { %v4056_v4 = vpop.permute.xlu0 %4055  ;;  %v4127_v62 = vpop.permute.xlu1 %4126 }
0x141b   :  { %4059 = vst.msk [vmem:[#allocation13] sm:$0x1] %vm4058_vm13, %v4056_v4 }
0x141c   :  { %4130 = vst.msk [vmem:[#allocation13 + $0x1] sm:$0x1] %vm4129_vm15, %v4127_v62 }
0x141e   :  { %v4134_v44 = vpop.permute.xlu1 %4133 }
0x141f   :  { %4137 = vst.msk [vmem:[#allocation13 + $0x1] sm:$0x1] %vm4136_vm3, %v4134_v44 }
0x1422   :  { %v4141_v42 = vpop.permute.xlu1 %4140 }
0x1423   :  { %4144 = vst.msk [vmem:[#allocation13 + $0x1] sm:$0x1] %vm4143_vm2, %v4141_v42 }
0x14cb   :  { %v4011_v15 = vpop.f32.mrf.mxu1 }
0x14cc   :  { %4016 = vst.msk [vmem:[#allocation3] sm:$0x3f] %vm4015_vm4, %v4011_v15 }
0x14cd   :  { %v5024_v61 = vpop.f32.mrf.mxu1 }
0x14d3   :  { %v4145_v56 = vld [vmem:[#allocation3 + $0x3] sm:$0x1]  ;;  %v4060_v31 = vld [vmem:[#allocation3] sm:$0x1]  ;;  %v4151_v40 = vld [vmem:[#allocation3 + $0x4] sm:$0x1] }
0x14d4   :  { %4147 = vrot.lane.b32.xlu1 %v4145_v56, %s5489_s13  ;;  %4062 = vrot.lane.b32.xlu0 %v4060_v31, %s5489_s13  ;;  %v4067_v1 = vld [vmem:[#allocation3 + $0x1] sm:$0x1]  ;;  %v4157_v46 = vld [vmem:[#allocation3 + $0x5] sm:$0x1]  ;;  %v4074_v63 = vld [vmem:[#allocation3 + $0x2] sm:$0x1] }
0x14d8   :  { %4153 = vrot.lane.b32.xlu1 %v4151_v40, %s5490_s9  ;;  %4069 = vrot.lane.b32.xlu0 %v4067_v1, %s5490_s9 }
0x14dc   :  { %4159 = vrot.lane.b32.xlu1 %v4157_v46, %s5491_s10  ;;  %4076 = vrot.lane.b32.xlu0 %v4074_v63, %s5491_s10 }
0x1546   :  { %v4148_v47 = vpop.permute.xlu1 %4147  ;;  %v4063_v23 = vpop.permute.xlu0 %4062 }
0x1547   :  { %4150 = vst.msk [vmem:[#allocation13 + $0x1] sm:$0x1] %vm4065_vm1, %v4148_v47  ;;  %4066 = vst.msk [vmem:[#allocation13] sm:$0x1] %vm4065_vm1, %v4063_v23 }
0x154a   :  { %v4154_v21 = vpop.permute.xlu1 %4153  ;;  %v4070_v3 = vpop.permute.xlu0 %4069 }
0x154b   :  { %4156 = vst.msk [vmem:[#allocation13 + $0x1] sm:$0x1] %vm4072_vm8, %v4154_v21  ;;  %4073 = vst.msk [vmem:[#allocation13] sm:$0x1] %vm4072_vm8, %v4070_v3 }
0x154e   :  { %v4160_v6 = vpop.permute.xlu1 %4159  ;;  %v4077_v0 = vpop.permute.xlu0 %4076 }
0x154f   :  { %4080 = vst.msk [vmem:[#allocation13] sm:$0x1] %vm4079_vm11, %v4077_v0  ;;  %4162 = vst.msk [vmem:[#allocation13 + $0x1] sm:$0x1] %vm4079_vm11, %v4160_v6 }
0x1550   :  { %5437 = shalt.err (!%p5434_p0)
}
0x1551   :  { %4172 = dma.vmem_to_hbm [thread:$0]  %s4170_s26, 32, %s6587_s4, [#allocation10]  }
0x1552   :  { %5450 = dma.done.wait [#allocation10], 32  }
0x1553   :  { %5451 = vsyncadd [#allocation10], 4294967264 }
0x1554   :  { %4176 = vsyncpa [#allocation9], 1 }
0x1555   :  { %4177 = vsyncpa [#allocation12], 1 }
0x1556   :  { %4178 = vsyncpa [#allocation10], 1 }

</bundles_post_ra>
